<compile_context>
chip_gen: v7x
topology: tpu7x:2x2x1
jax: 0.10.0
libtpu: 0.0.40
codegen_flags: <defaults>
</compile_context>

<pallas_src>
import functools

import jax
import jax.numpy as jnp
from jax.experimental import pallas as pl
from jax.experimental.pallas import tpu as pltpu


def _round_up(x, m):
    return (x + m - 1) // m * m


# ----------------------------------------------------------------------------
# Pallas kernel: one batch tile of bidirectional LSTM + linear classifier
# ----------------------------------------------------------------------------
def _bilstm_classify_kernel(S, TB, Hp, Cp,
                            emb_ref,                      # (S*TB, Hp)
                            wih_ref,                      # (Hp, 8Hp)  [fwd | bwd]
                            whh_f_ref, whh_b_ref,         # (Hp, 4Hp) each
                            b_ref,                        # (1, 8Hp)   [fwd | bwd]
                            wcls_ref,                     # (2Hp, Cp)  [fwd ; bwd]
                            bcls_ref,                     # (1, Cp)
                            out_ref,                      # (S*TB, Cp)
                            xg_ref,                       # (S*TB, 8Hp) scratch
                            h_all_ref):                   # (S*TB, 2Hp) scratch
    f32 = jnp.float32

    # ---- (1) input projection hoisted out of the recurrence: ONE GEMM over
    #          all timesteps and both directions, bias folded in once. ----
    xg_ref[...] = (jnp.dot(emb_ref[...], wih_ref[...],
                           preferred_element_type=f32) + b_ref[...])

    whh_f = whh_f_ref[...]          # hoisted weight loads (CSE across steps)
    whh_b = whh_b_ref[...]

    def gates_to_hc(gates, c):
        # PyTorch gate order i | f | g | o ; each block lane-aligned to Hp.
        i = jax.nn.sigmoid(gates[:, 0 * Hp:1 * Hp])
        f = jax.nn.sigmoid(gates[:, 1 * Hp:2 * Hp])
        g = jnp.tanh(gates[:, 2 * Hp:3 * Hp])
        o = jax.nn.sigmoid(gates[:, 3 * Hp:4 * Hp])
        c_new = f * c + i * g
        h_new = o * jnp.tanh(c_new)
        return h_new, c_new

    # ---- (2) recurrence: fwd and bwd directions interleaved in one FULLY
    #          UNROLLED loop (S is small & static), two independent chains. ----
    zeros = jnp.zeros((TB, Hp), f32)
    hf, cf = zeros, zeros
    hb, cb = zeros, zeros
    for t in range(S):   # static full unroll (for long S: fori_loop(unroll=k))
        tb = S - 1 - t
        gf = (xg_ref[pl.ds(t * TB, TB), 0:4 * Hp]
              + jnp.dot(hf, whh_f, preferred_element_type=f32))
        gb = (xg_ref[pl.ds(tb * TB, TB), 4 * Hp:8 * Hp]
              + jnp.dot(hb, whh_b, preferred_element_type=f32))
        hf, cf = gates_to_hc(gf, cf)
        hb, cb = gates_to_hc(gb, cb)
        h_all_ref[pl.ds(t * TB, TB), 0:Hp] = hf
        h_all_ref[pl.ds(tb * TB, TB), Hp:2 * Hp] = hb

    # ---- (3) classifier hoisted out of the recurrence: ONE GEMM over all
    #          timesteps and both directions, one lane-dense store. ----
    out_ref[...] = (jnp.dot(h_all_ref[...], wcls_ref[...],
                            preferred_element_type=f32)
                    + bcls_ref[...]).astype(out_ref.dtype)


# ----------------------------------------------------------------------------
# Parameter padding: H -> Hp (128-lane aligned gate blocks), C -> Cp.
# Padded hidden lanes see zero weights/bias => gate preact 0 => i=f=o=0.5, g=0,
# so padded c and h stay exactly 0: padding does not change the math.
# ----------------------------------------------------------------------------
def _pad_gate_blocks(w, H, Hp):
    """(R, 4H) -> (R, 4Hp): gate k's block moved to columns [k*Hp, k*Hp+H)."""
    out = jnp.zeros((w.shape[0], 4 * Hp), w.dtype)
    for k in range(4):
        out = out.at[:, k * Hp:k * Hp + H].set(w[:, k * H:(k + 1) * H])
    return out


def _pad_params(p, H, C, Hp, Cp):
    pad_rows = lambda w: jnp.pad(w, ((0, Hp - w.shape[0]), (0, 0)))
    wih_f = pad_rows(_pad_gate_blocks(p["wih_f"], H, Hp))
    wih_b = pad_rows(_pad_gate_blocks(p["wih_b"], H, Hp))
    whh_f = pad_rows(_pad_gate_blocks(p["whh_f"], H, Hp))
    whh_b = pad_rows(_pad_gate_blocks(p["whh_b"], H, Hp))
    b_f = _pad_gate_blocks(p["b_f"], H, Hp)
    b_b = _pad_gate_blocks(p["b_b"], H, Hp)
    wcls_f = jnp.pad(p["wcls_f"], ((0, Hp - H), (0, Cp - C)))
    wcls_b = jnp.pad(p["wcls_b"], ((0, Hp - H), (0, Cp - C)))
    return {
        "emb_table": jnp.pad(p["emb_table"], ((0, 0), (0, Hp - H))),
        "wih": jnp.concatenate([wih_f, wih_b], axis=1),     # (Hp, 8Hp)
        "whh_f": whh_f,
        "whh_b": whh_b,
        "b": jnp.concatenate([b_f, b_b], axis=1),            # (1, 8Hp)
        "wcls": jnp.concatenate([wcls_f, wcls_b], axis=0),   # (2Hp, Cp)
        "bcls": jnp.pad(p["bcls"], ((0, 0), (0, Cp - C))),
    }


# ----------------------------------------------------------------------------
# Full forward pass of TorchModel (use_bert=False, use_crf=False, target=None)
# ----------------------------------------------------------------------------
@functools.partial(jax.jit, static_argnames=("tile_b",))
def torch_model_forward(x_tokens, params, *, tile_b=8):
    B, S = x_tokens.shape
    H = params["wih_f"].shape[0]
    C = params["bcls"].shape[-1]
    Hp = _round_up(H, 128)
    Cp = _round_up(C, 128)
    TB = min(tile_b, B)
    Bp = _round_up(B, TB)
    NB = Bp // TB

    pp = _pad_params(params, H, C, Hp, Cp)

    # Embedding gather emitted directly in the kernel's per-tile time-major
    # layout (row = t*TB + j): only the tiny int32 id tensor is rearranged, so
    # there is no extra HBM pass over the (B, S, H) activation.
    x_pad = jnp.pad(x_tokens, ((0, Bp - B), (0, 0)))            # pad = token 0
    ids = jnp.transpose(x_pad.reshape(NB, TB, S), (0, 2, 1))    # (NB, S, TB)
    emb = pp["emb_table"][ids].reshape(NB, S * TB, Hp).astype(jnp.float32)

    kernel = functools.partial(_bilstm_classify_kernel, S, TB, Hp, Cp)
    out = pl.pallas_call(
        kernel,
        out_shape=jax.ShapeDtypeStruct((NB, S * TB, Cp), jnp.float32),
        grid=(NB,),
        in_specs=[
            pl.BlockSpec((None, S * TB, Hp), lambda i: (i, 0, 0)),   # emb tile
            pl.BlockSpec((Hp, 8 * Hp), lambda i: (0, 0)),            # wih  (f|b)
            pl.BlockSpec((Hp, 4 * Hp), lambda i: (0, 0)),            # whh_f
            pl.BlockSpec((Hp, 4 * Hp), lambda i: (0, 0)),            # whh_b
            pl.BlockSpec((1, 8 * Hp), lambda i: (0, 0)),             # bias (f|b)
            pl.BlockSpec((2 * Hp, Cp), lambda i: (0, 0)),            # wcls (f;b)
            pl.BlockSpec((1, Cp), lambda i: (0, 0)),                 # bcls
        ],
        out_specs=pl.BlockSpec((None, S * TB, Cp), lambda i: (i, 0, 0)),
        scratch_shapes=[
            pltpu.VMEM((S * TB, 8 * Hp), jnp.float32),   # input-gate slab (f|b)
            pltpu.VMEM((S * TB, 2 * Hp), jnp.float32),   # hidden states   (f|b)
        ],
        compiler_params=pltpu.CompilerParams(
            dimension_semantics=("parallel",),           # batch tiles across TCs
            vmem_limit_bytes=32 * 1024 * 1024,
        ),
    )(emb, pp["wih"], pp["whh_f"], pp["whh_b"], pp["b"], pp["wcls"], pp["bcls"])

    # (NB, S*TB, Cp) time-major within each tile  ->  (B, S, C)
    logits = jnp.transpose(out.reshape(NB, S, TB, Cp), (0, 2, 1, 3))
    return logits.reshape(Bp, S, Cp)[:B, :, :C]


# ----------------------------------------------------------------------------
# Pure-JAX reference (unpadded) for correctness checking
# ----------------------------------------------------------------------------
def reference_forward(x_tokens, p):
    emb = p["emb_table"][x_tokens]
    B, S, H = emb.shape

    def cell(x_t, h, c, wih, whh, b):
        g = x_t @ wih + h @ whh + b
        i = jax.nn.sigmoid(g[:, :H])
        f = jax.nn.sigmoid(g[:, H:2 * H])
        gg = jnp.tanh(g[:, 2 * H:3 * H])
        o = jax.nn.sigmoid(g[:, 3 * H:])
        c = f * c + i * gg
        return o * jnp.tanh(c), c

    h = jnp.zeros((B, H)); c = jnp.zeros((B, H))
    fwd = []
    for t in range(S):
        h, c = cell(emb[:, t], h, c, p["wih_f"], p["whh_f"], p["b_f"])
        fwd.append(h)
    h = jnp.zeros((B, H)); c = jnp.zeros((B, H))
    bwd = [None] * S
    for t in range(S - 1, -1, -1):
        h, c = cell(emb[:, t], h, c, p["wih_b"], p["whh_b"], p["b_b"])
        bwd[t] = h
    logits = jnp.stack(
        [fwd[t] @ p["wcls_f"] + bwd[t] @ p["wcls_b"] for t in range(S)], axis=1)
    return logits + p["bcls"]


# ----------------------------------------------------------------------------
# Deterministic parameter init (shapes per TorchModel.__init__)
# ----------------------------------------------------------------------------
def init_params(key, vocab_size, hidden_size, class_num):
    H, C = hidden_size, class_num
    ks = jax.random.split(key, 12)
    scale = 0.1

    emb_table = scale * jax.random.normal(ks[0], (vocab_size + 1, H), jnp.float32)
    emb_table = emb_table.at[0].set(0.0)               # padding_idx=0

    def w(k, shape):
        return scale * jax.random.normal(k, shape, jnp.float32)

    return {
        "emb_table": emb_table,
        # LSTM weights stored transposed: (H, 4H), gate columns ordered i|f|g|o
        "wih_f": w(ks[1], (H, 4 * H)),
        "whh_f": w(ks[2], (H, 4 * H)),
        "b_f":   w(ks[3], (1, 4 * H)),                 # bias_ih + bias_hh combined
        "wih_b": w(ks[4], (H, 4 * H)),
        "whh_b": w(ks[5], (H, 4 * H)),
        "b_b":   w(ks[6], (1, 4 * H)),
        # classifier Linear(2H, C): weight.T split into forward/backward halves
        "wcls_f": w(ks[7], (H, C)),
        "wcls_b": w(ks[8], (H, C)),
        "bcls":   w(ks[9], (1, C)),
    }


if __name__ == "__main__":
    # small shapes consistent with the module; B=16 with tile_b=8 exercises a
    # real 2-tile batch grid.
    B, S, H, V, C = 16, 8, 32, 20, 10

    key = jax.random.PRNGKey(0)
    k_param, k_x = jax.random.split(key)
    params = init_params(k_param, vocab_size=V, hidden_size=H, class_num=C)

    # token ids in [0, V]; 0 behaves as padding (zero embedding)
    x = jax.random.randint(k_x, (B, S), 0, V + 1, dtype=jnp.int32)

    logits = jax.block_until_ready(torch_model_forward(x, params, tile_b=8))
    ref = reference_forward(x, params)

    assert logits.shape == (B, S, C), logits.shape
    err = float(jnp.max(jnp.abs(logits - ref)))
    assert err < 1e-3, err
    print("KERNEL_OK")
</pallas_src>

<mosaic_0001>
module attributes {stable_mosaic.version = 11 : i64} {
  func.func @_bilstm_classify_kernel(%arg0: i32, %arg1: memref<1x64x128xf32, #tpu.memory_space<vmem>>, %arg2: memref<128x1024xf32, #tpu.memory_space<vmem>>, %arg3: memref<128x512xf32, #tpu.memory_space<vmem>>, %arg4: memref<128x512xf32, #tpu.memory_space<vmem>>, %arg5: memref<1x1024xf32, #tpu.memory_space<vmem>>, %arg6: memref<256x128xf32, #tpu.memory_space<vmem>>, %arg7: memref<1x128xf32, #tpu.memory_space<vmem>>, %arg8: memref<1x64x128xf32, #tpu.memory_space<vmem>>, %arg9: memref<64x1024xf32, #tpu.memory_space<vmem>>, %arg10: memref<64x256xf32, #tpu.memory_space<vmem>>) attributes {dimension_semantics = [#tpu.dimension_semantics<parallel>], iteration_bounds = array<i64: 2>, scalar_prefetch = 0 : i64, scratch_operands = 2 : i64, tpu.core_type = #tpu.core_type<tc>, window_params = [{transform_indices = @transform_0, window_bounds = array<i64: 1, 64, 128>}, {pipeline_mode = #tpu.pipeline_mode<synchronous>, transform_indices = @transform_1, window_bounds = array<i64: 128, 1024>}, {pipeline_mode = #tpu.pipeline_mode<synchronous>, transform_indices = @transform_2, window_bounds = array<i64: 128, 512>}, {pipeline_mode = #tpu.pipeline_mode<synchronous>, transform_indices = @transform_3, window_bounds = array<i64: 128, 512>}, {pipeline_mode = #tpu.pipeline_mode<synchronous>, transform_indices = @transform_4, window_bounds = array<i64: 1, 1024>}, {pipeline_mode = #tpu.pipeline_mode<synchronous>, transform_indices = @transform_5, window_bounds = array<i64: 256, 128>}, {pipeline_mode = #tpu.pipeline_mode<synchronous>, transform_indices = @transform_6, window_bounds = array<i64: 1, 128>}, {transform_indices = @transform_7, window_bounds = array<i64: 1, 64, 128>}]} {
    %c0 = arith.constant 0 : index
    %c0_0 = arith.constant 0 : index
    %c0_1 = arith.constant 0 : index
    %0 = vector.load %arg1[%c0, %c0_0, %c0_1] : memref<1x64x128xf32, #tpu.memory_space<vmem>>, vector<1x64x128xf32>
    %1 = vector.shape_cast %0 : vector<1x64x128xf32> to vector<64x128xf32>
    %c0_2 = arith.constant 0 : index
    %c0_3 = arith.constant 0 : index
    %2 = vector.load %arg2[%c0_2, %c0_3] : memref<128x1024xf32, #tpu.memory_space<vmem>>, vector<128x1024xf32>
    %cst = arith.constant dense<0.000000e+00> : vector<64x1024xf32>
    %3 = tpu.matmul %1, %2, %cst {dimension_numbers = #tpu.dot_dimension_numbers<[1], [0], [0], [1], [0, 0, 1, 1], [], []>} : vector<64x128xf32>, vector<128x1024xf32>, vector<64x1024xf32> -> vector<64x1024xf32>
    %c0_4 = arith.constant 0 : index
    %c0_5 = arith.constant 0 : index
    %4 = vector.load %arg5[%c0_4, %c0_5] : memref<1x1024xf32, #tpu.memory_space<vmem>>, vector<1x1024xf32>
    %5 = vector.broadcast %4 : vector<1x1024xf32> to vector<64x1024xf32>
    %6 = arith.addf %3, %5 : vector<64x1024xf32>
    %c0_6 = arith.constant 0 : index
    %c0_7 = arith.constant 0 : index
    %7 = vector.load %arg9[%c0_6, %c0_7] : memref<64x1024xf32, #tpu.memory_space<vmem>>, vector<64x1024xf32>
    tpu.vector_store %arg9[%c0_6, %c0_7], %6 {strides = array<i32>} : memref<64x1024xf32, #tpu.memory_space<vmem>>, vector<64x1024xf32>,
    %c0_8 = arith.constant 0 : index
    %c0_9 = arith.constant 0 : index
    %8 = vector.load %arg3[%c0_8, %c0_9] : memref<128x512xf32, #tpu.memory_space<vmem>>, vector<128x512xf32>
    %c0_10 = arith.constant 0 : index
    %c0_11 = arith.constant 0 : index
    %9 = vector.load %arg4[%c0_10, %c0_11] : memref<128x512xf32, #tpu.memory_space<vmem>>, vector<128x512xf32>
    %cst_12 = arith.constant 0.000000e+00 : f32
    %10 = vector.broadcast %cst_12 : f32 to vector<8x128xf32>
    %c0_13 = arith.constant 0 : index
    %c0_14 = arith.constant 0 : index
    %11 = vector.load %arg9[%c0_13, %c0_14] : memref<64x1024xf32, #tpu.memory_space<vmem>>, vector<8x512xf32>
    %cst_15 = arith.constant dense<0.000000e+00> : vector<8x512xf32>
    %12 = tpu.matmul %10, %8, %cst_15 {dimension_numbers = #tpu.dot_dimension_numbers<[1], [0], [0], [1], [0, 0, 1, 1], [], []>} : vector<8x128xf32>, vector<128x512xf32>, vector<8x512xf32> -> vector<8x512xf32>
    %13 = arith.addf %11, %12 : vector<8x512xf32>
    %c56 = arith.constant 56 : index
    %c512 = arith.constant 512 : index
    %14 = vector.load %arg9[%c56, %c512] : memref<64x1024xf32, #tpu.memory_space<vmem>>, vector<8x512xf32>
    %cst_16 = arith.constant dense<0.000000e+00> : vector<8x512xf32>
    %15 = tpu.matmul %10, %9, %cst_16 {dimension_numbers = #tpu.dot_dimension_numbers<[1], [0], [0], [1], [0, 0, 1, 1], [], []>} : vector<8x128xf32>, vector<128x512xf32>, vector<8x512xf32> -> vector<8x512xf32>
    %16 = arith.addf %14, %15 : vector<8x512xf32>
    %17 = vector.extract_strided_slice %13 {offsets = [0, 0], sizes = [8, 128], strides = [1, 1]} : vector<8x512xf32> to vector<8x128xf32>
    %18 = arith.negf %17 : vector<8x128xf32>
    %19 = math.exp %18 : vector<8x128xf32>
    %cst_17 = arith.constant 1.000000e+00 : f32
    %20 = vector.broadcast %cst_17 : f32 to vector<8x128xf32>
    %21 = arith.addf %20, %19 : vector<8x128xf32>
    %22 = arith.divf %20, %21 : vector<8x128xf32>
    %23 = vector.extract_strided_slice %13 {offsets = [0, 128], sizes = [8, 128], strides = [1, 1]} : vector<8x512xf32> to vector<8x128xf32>
    %24 = arith.negf %23 : vector<8x128xf32>
    %25 = math.exp %24 : vector<8x128xf32>
    %cst_18 = arith.constant 1.000000e+00 : f32
    %26 = vector.broadcast %cst_18 : f32 to vector<8x128xf32>
    %27 = arith.addf %26, %25 : vector<8x128xf32>
    %28 = arith.divf %26, %27 : vector<8x128xf32>
    %29 = vector.extract_strided_slice %13 {offsets = [0, 256], sizes = [8, 128], strides = [1, 1]} : vector<8x512xf32> to vector<8x128xf32>
    %30 = math.tanh %29 : vector<8x128xf32>
    %31 = vector.extract_strided_slice %13 {offsets = [0, 384], sizes = [8, 128], strides = [1, 1]} : vector<8x512xf32> to vector<8x128xf32>
    %32 = arith.negf %31 : vector<8x128xf32>
    %33 = math.exp %32 : vector<8x128xf32>
    %cst_19 = arith.constant 1.000000e+00 : f32
    %34 = vector.broadcast %cst_19 : f32 to vector<8x128xf32>
    %35 = arith.addf %34, %33 : vector<8x128xf32>
    %36 = arith.divf %34, %35 : vector<8x128xf32>
    %37 = arith.mulf %28, %10 : vector<8x128xf32>
    %38 = arith.mulf %22, %30 : vector<8x128xf32>
    %39 = arith.addf %37, %38 : vector<8x128xf32>
    %40 = math.tanh %39 : vector<8x128xf32>
    %41 = arith.mulf %36, %40 : vector<8x128xf32>
    %42 = vector.extract_strided_slice %16 {offsets = [0, 0], sizes = [8, 128], strides = [1, 1]} : vector<8x512xf32> to vector<8x128xf32>
    %43 = arith.negf %42 : vector<8x128xf32>
    %44 = math.exp %43 : vector<8x128xf32>
    %cst_20 = arith.constant 1.000000e+00 : f32
    %45 = vector.broadcast %cst_20 : f32 to vector<8x128xf32>
    %46 = arith.addf %45, %44 : vector<8x128xf32>
    %47 = arith.divf %45, %46 : vector<8x128xf32>
    %48 = vector.extract_strided_slice %16 {offsets = [0, 128], sizes = [8, 128], strides = [1, 1]} : vector<8x512xf32> to vector<8x128xf32>
    %49 = arith.negf %48 : vector<8x128xf32>
    %50 = math.exp %49 : vector<8x128xf32>
    %cst_21 = arith.constant 1.000000e+00 : f32
    %51 = vector.broadcast %cst_21 : f32 to vector<8x128xf32>
    %52 = arith.addf %51, %50 : vector<8x128xf32>
    %53 = arith.divf %51, %52 : vector<8x128xf32>
    %54 = vector.extract_strided_slice %16 {offsets = [0, 256], sizes = [8, 128], strides = [1, 1]} : vector<8x512xf32> to vector<8x128xf32>
    %55 = math.tanh %54 : vector<8x128xf32>
    %56 = vector.extract_strided_slice %16 {offsets = [0, 384], sizes = [8, 128], strides = [1, 1]} : vector<8x512xf32> to vector<8x128xf32>
    %57 = arith.negf %56 : vector<8x128xf32>
    %58 = math.exp %57 : vector<8x128xf32>
    %cst_22 = arith.constant 1.000000e+00 : f32
    %59 = vector.broadcast %cst_22 : f32 to vector<8x128xf32>
    %60 = arith.addf %59, %58 : vector<8x128xf32>
    %61 = arith.divf %59, %60 : vector<8x128xf32>
    %62 = arith.mulf %53, %10 : vector<8x128xf32>
    %63 = arith.mulf %47, %55 : vector<8x128xf32>
    %64 = arith.addf %62, %63 : vector<8x128xf32>
    %65 = math.tanh %64 : vector<8x128xf32>
    %66 = arith.mulf %61, %65 : vector<8x128xf32>
    %c0_23 = arith.constant 0 : index
    %c0_24 = arith.constant 0 : index
    %67 = vector.load %arg10[%c0_23, %c0_24] : memref<64x256xf32, #tpu.memory_space<vmem>>, vector<8x128xf32>
    tpu.vector_store %arg10[%c0_23, %c0_24], %41 {strides = array<i32>} : memref<64x256xf32, #tpu.memory_space<vmem>>, vector<8x128xf32>,
    %c56_25 = arith.constant 56 : index
    %c128 = arith.constant 128 : index
    %68 = vector.load %arg10[%c56_25, %c128] : memref<64x256xf32, #tpu.memory_space<vmem>>, vector<8x128xf32>
    tpu.vector_store %arg10[%c56_25, %c128], %66 {strides = array<i32>} : memref<64x256xf32, #tpu.memory_space<vmem>>, vector<8x128xf32>,
    %c8 = arith.constant 8 : index
    %c0_26 = arith.constant 0 : index
    %69 = vector.load %arg9[%c8, %c0_26] : memref<64x1024xf32, #tpu.memory_space<vmem>>, vector<8x512xf32>
    %cst_27 = arith.constant dense<0.000000e+00> : vector<8x512xf32>
    %70 = tpu.matmul %41, %8, %cst_27 {dimension_numbers = #tpu.dot_dimension_numbers<[1], [0], [0], [1], [0, 0, 1, 1], [], []>} : vector<8x128xf32>, vector<128x512xf32>, vector<8x512xf32> -> vector<8x512xf32>
    %71 = arith.addf %69, %70 : vector<8x512xf32>
    %c48 = arith.constant 48 : index
    %c512_28 = arith.constant 512 : index
    %72 = vector.load %arg9[%c48, %c512_28] : memref<64x1024xf32, #tpu.memory_space<vmem>>, vector<8x512xf32>
    %cst_29 = arith.constant dense<0.000000e+00> : vector<8x512xf32>
    %73 = tpu.matmul %66, %9, %cst_29 {dimension_numbers = #tpu.dot_dimension_numbers<[1], [0], [0], [1], [0, 0, 1, 1], [], []>} : vector<8x128xf32>, vector<128x512xf32>, vector<8x512xf32> -> vector<8x512xf32>
    %74 = arith.addf %72, %73 : vector<8x512xf32>
    %75 = vector.extract_strided_slice %71 {offsets = [0, 0], sizes = [8, 128], strides = [1, 1]} : vector<8x512xf32> to vector<8x128xf32>
    %76 = arith.negf %75 : vector<8x128xf32>
    %77 = math.exp %76 : vector<8x128xf32>
    %cst_30 = arith.constant 1.000000e+00 : f32
    %78 = vector.broadcast %cst_30 : f32 to vector<8x128xf32>
    %79 = arith.addf %78, %77 : vector<8x128xf32>
    %80 = arith.divf %78, %79 : vector<8x128xf32>
    %81 = vector.extract_strided_slice %71 {offsets = [0, 128], sizes = [8, 128], strides = [1, 1]} : vector<8x512xf32> to vector<8x128xf32>
    %82 = arith.negf %81 : vector<8x128xf32>
    %83 = math.exp %82 : vector<8x128xf32>
    %cst_31 = arith.constant 1.000000e+00 : f32
    %84 = vector.broadcast %cst_31 : f32 to vector<8x128xf32>
    %85 = arith.addf %84, %83 : vector<8x128xf32>
    %86 = arith.divf %84, %85 : vector<8x128xf32>
    %87 = vector.extract_strided_slice %71 {offsets = [0, 256], sizes = [8, 128], strides = [1, 1]} : vector<8x512xf32> to vector<8x128xf32>
    %88 = math.tanh %87 : vector<8x128xf32>
    %89 = vector.extract_strided_slice %71 {offsets = [0, 384], sizes = [8, 128], strides = [1, 1]} : vector<8x512xf32> to vector<8x128xf32>
    %90 = arith.negf %89 : vector<8x128xf32>
    %91 = math.exp %90 : vector<8x128xf32>
    %cst_32 = arith.constant 1.000000e+00 : f32
    %92 = vector.broadcast %cst_32 : f32 to vector<8x128xf32>
    %93 = arith.addf %92, %91 : vector<8x128xf32>
    %94 = arith.divf %92, %93 : vector<8x128xf32>
    %95 = arith.mulf %86, %39 : vector<8x128xf32>
    %96 = arith.mulf %80, %88 : vector<8x128xf32>
    %97 = arith.addf %95, %96 : vector<8x128xf32>
    %98 = math.tanh %97 : vector<8x128xf32>
    %99 = arith.mulf %94, %98 : vector<8x128xf32>
    %100 = vector.extract_strided_slice %74 {offsets = [0, 0], sizes = [8, 128], strides = [1, 1]} : vector<8x512xf32> to vector<8x128xf32>
    %101 = arith.negf %100 : vector<8x128xf32>
    %102 = math.exp %101 : vector<8x128xf32>
    %cst_33 = arith.constant 1.000000e+00 : f32
    %103 = vector.broadcast %cst_33 : f32 to vector<8x128xf32>
    %104 = arith.addf %103, %102 : vector<8x128xf32>
    %105 = arith.divf %103, %104 : vector<8x128xf32>
    %106 = vector.extract_strided_slice %74 {offsets = [0, 128], sizes = [8, 128], strides = [1, 1]} : vector<8x512xf32> to vector<8x128xf32>
    %107 = arith.negf %106 : vector<8x128xf32>
    %108 = math.exp %107 : vector<8x128xf32>
    %cst_34 = arith.constant 1.000000e+00 : f32
    %109 = vector.broadcast %cst_34 : f32 to vector<8x128xf32>
    %110 = arith.addf %109, %108 : vector<8x128xf32>
    %111 = arith.divf %109, %110 : vector<8x128xf32>
    %112 = vector.extract_strided_slice %74 {offsets = [0, 256], sizes = [8, 128], strides = [1, 1]} : vector<8x512xf32> to vector<8x128xf32>
    %113 = math.tanh %112 : vector<8x128xf32>
    %114 = vector.extract_strided_slice %74 {offsets = [0, 384], sizes = [8, 128], strides = [1, 1]} : vector<8x512xf32> to vector<8x128xf32>
    %115 = arith.negf %114 : vector<8x128xf32>
    %116 = math.exp %115 : vector<8x128xf32>
    %cst_35 = arith.constant 1.000000e+00 : f32
    %117 = vector.broadcast %cst_35 : f32 to vector<8x128xf32>
    %118 = arith.addf %117, %116 : vector<8x128xf32>
    %119 = arith.divf %117, %118 : vector<8x128xf32>
    %120 = arith.mulf %111, %64 : vector<8x128xf32>
    %121 = arith.mulf %105, %113 : vector<8x128xf32>
    %122 = arith.addf %120, %121 : vector<8x128xf32>
    %123 = math.tanh %122 : vector<8x128xf32>
    %124 = arith.mulf %119, %123 : vector<8x128xf32>
    %c8_36 = arith.constant 8 : index
    %c0_37 = arith.constant 0 : index
    %125 = vector.load %arg10[%c8_36, %c0_37] : memref<64x256xf32, #tpu.memory_space<vmem>>, vector<8x128xf32>
    tpu.vector_store %arg10[%c8_36, %c0_37], %99 {strides = array<i32>} : memref<64x256xf32, #tpu.memory_space<vmem>>, vector<8x128xf32>,
    %c48_38 = arith.constant 48 : index
    %c128_39 = arith.constant 128 : index
    %126 = vector.load %arg10[%c48_38, %c128_39] : memref<64x256xf32, #tpu.memory_space<vmem>>, vector<8x128xf32>
    tpu.vector_store %arg10[%c48_38, %c128_39], %124 {strides = array<i32>} : memref<64x256xf32, #tpu.memory_space<vmem>>, vector<8x128xf32>,
    %c16 = arith.constant 16 : index
    %c0_40 = arith.constant 0 : index
    %127 = vector.load %arg9[%c16, %c0_40] : memref<64x1024xf32, #tpu.memory_space<vmem>>, vector<8x512xf32>
    %cst_41 = arith.constant dense<0.000000e+00> : vector<8x512xf32>
    %128 = tpu.matmul %99, %8, %cst_41 {dimension_numbers = #tpu.dot_dimension_numbers<[1], [0], [0], [1], [0, 0, 1, 1], [], []>} : vector<8x128xf32>, vector<128x512xf32>, vector<8x512xf32> -> vector<8x512xf32>
    %129 = arith.addf %127, %128 : vector<8x512xf32>
    %c40 = arith.constant 40 : index
    %c512_42 = arith.constant 512 : index
    %130 = vector.load %arg9[%c40, %c512_42] : memref<64x1024xf32, #tpu.memory_space<vmem>>, vector<8x512xf32>
    %cst_43 = arith.constant dense<0.000000e+00> : vector<8x512xf32>
    %131 = tpu.matmul %124, %9, %cst_43 {dimension_numbers = #tpu.dot_dimension_numbers<[1], [0], [0], [1], [0, 0, 1, 1], [], []>} : vector<8x128xf32>, vector<128x512xf32>, vector<8x512xf32> -> vector<8x512xf32>
    %132 = arith.addf %130, %131 : vector<8x512xf32>
    %133 = vector.extract_strided_slice %129 {offsets = [0, 0], sizes = [8, 128], strides = [1, 1]} : vector<8x512xf32> to vector<8x128xf32>
    %134 = arith.negf %133 : vector<8x128xf32>
    %135 = math.exp %134 : vector<8x128xf32>
    %cst_44 = arith.constant 1.000000e+00 : f32
    %136 = vector.broadcast %cst_44 : f32 to vector<8x128xf32>
    %137 = arith.addf %136, %135 : vector<8x128xf32>
    %138 = arith.divf %136, %137 : vector<8x128xf32>
    %139 = vector.extract_strided_slice %129 {offsets = [0, 128], sizes = [8, 128], strides = [1, 1]} : vector<8x512xf32> to vector<8x128xf32>
    %140 = arith.negf %139 : vector<8x128xf32>
    %141 = math.exp %140 : vector<8x128xf32>
    %cst_45 = arith.constant 1.000000e+00 : f32
    %142 = vector.broadcast %cst_45 : f32 to vector<8x128xf32>
    %143 = arith.addf %142, %141 : vector<8x128xf32>
    %144 = arith.divf %142, %143 : vector<8x128xf32>
    %145 = vector.extract_strided_slice %129 {offsets = [0, 256], sizes = [8, 128], strides = [1, 1]} : vector<8x512xf32> to vector<8x128xf32>
    %146 = math.tanh %145 : vector<8x128xf32>
    %147 = vector.extract_strided_slice %129 {offsets = [0, 384], sizes = [8, 128], strides = [1, 1]} : vector<8x512xf32> to vector<8x128xf32>
    %148 = arith.negf %147 : vector<8x128xf32>
    %149 = math.exp %148 : vector<8x128xf32>
    %cst_46 = arith.constant 1.000000e+00 : f32
    %150 = vector.broadcast %cst_46 : f32 to vector<8x128xf32>
    %151 = arith.addf %150, %149 : vector<8x128xf32>
    %152 = arith.divf %150, %151 : vector<8x128xf32>
    %153 = arith.mulf %144, %97 : vector<8x128xf32>
    %154 = arith.mulf %138, %146 : vector<8x128xf32>
    %155 = arith.addf %153, %154 : vector<8x128xf32>
    %156 = math.tanh %155 : vector<8x128xf32>
    %157 = arith.mulf %152, %156 : vector<8x128xf32>
    %158 = vector.extract_strided_slice %132 {offsets = [0, 0], sizes = [8, 128], strides = [1, 1]} : vector<8x512xf32> to vector<8x128xf32>
    %159 = arith.negf %158 : vector<8x128xf32>
    %160 = math.exp %159 : vector<8x128xf32>
    %cst_47 = arith.constant 1.000000e+00 : f32
    %161 = vector.broadcast %cst_47 : f32 to vector<8x128xf32>
    %162 = arith.addf %161, %160 : vector<8x128xf32>
    %163 = arith.divf %161, %162 : vector<8x128xf32>
    %164 = vector.extract_strided_slice %132 {offsets = [0, 128], sizes = [8, 128], strides = [1, 1]} : vector<8x512xf32> to vector<8x128xf32>
    %165 = arith.negf %164 : vector<8x128xf32>
    %166 = math.exp %165 : vector<8x128xf32>
    %cst_48 = arith.constant 1.000000e+00 : f32
    %167 = vector.broadcast %cst_48 : f32 to vector<8x128xf32>
    %168 = arith.addf %167, %166 : vector<8x128xf32>
    %169 = arith.divf %167, %168 : vector<8x128xf32>
    %170 = vector.extract_strided_slice %132 {offsets = [0, 256], sizes = [8, 128], strides = [1, 1]} : vector<8x512xf32> to vector<8x128xf32>
    %171 = math.tanh %170 : vector<8x128xf32>
    %172 = vector.extract_strided_slice %132 {offsets = [0, 384], sizes = [8, 128], strides = [1, 1]} : vector<8x512xf32> to vector<8x128xf32>
    %173 = arith.negf %172 : vector<8x128xf32>
    %174 = math.exp %173 : vector<8x128xf32>
    %cst_49 = arith.constant 1.000000e+00 : f32
    %175 = vector.broadcast %cst_49 : f32 to vector<8x128xf32>
    %176 = arith.addf %175, %174 : vector<8x128xf32>
    %177 = arith.divf %175, %176 : vector<8x128xf32>
    %178 = arith.mulf %169, %122 : vector<8x128xf32>
    %179 = arith.mulf %163, %171 : vector<8x128xf32>
    %180 = arith.addf %178, %179 : vector<8x128xf32>
    %181 = math.tanh %180 : vector<8x128xf32>
    %182 = arith.mulf %177, %181 : vector<8x128xf32>
    %c16_50 = arith.constant 16 : index
    %c0_51 = arith.constant 0 : index
    %183 = vector.load %arg10[%c16_50, %c0_51] : memref<64x256xf32, #tpu.memory_space<vmem>>, vector<8x128xf32>
    tpu.vector_store %arg10[%c16_50, %c0_51], %157 {strides = array<i32>} : memref<64x256xf32, #tpu.memory_space<vmem>>, vector<8x128xf32>,
    %c40_52 = arith.constant 40 : index
    %c128_53 = arith.constant 128 : index
    %184 = vector.load %arg10[%c40_52, %c128_53] : memref<64x256xf32, #tpu.memory_space<vmem>>, vector<8x128xf32>
    tpu.vector_store %arg10[%c40_52, %c128_53], %182 {strides = array<i32>} : memref<64x256xf32, #tpu.memory_space<vmem>>, vector<8x128xf32>,
    %c24 = arith.constant 24 : index
    %c0_54 = arith.constant 0 : index
    %185 = vector.load %arg9[%c24, %c0_54] : memref<64x1024xf32, #tpu.memory_space<vmem>>, vector<8x512xf32>
    %cst_55 = arith.constant dense<0.000000e+00> : vector<8x512xf32>
    %186 = tpu.matmul %157, %8, %cst_55 {dimension_numbers = #tpu.dot_dimension_numbers<[1], [0], [0], [1], [0, 0, 1, 1], [], []>} : vector<8x128xf32>, vector<128x512xf32>, vector<8x512xf32> -> vector<8x512xf32>
    %187 = arith.addf %185, %186 : vector<8x512xf32>
    %c32 = arith.constant 32 : index
    %c512_56 = arith.constant 512 : index
    %188 = vector.load %arg9[%c32, %c512_56] : memref<64x1024xf32, #tpu.memory_space<vmem>>, vector<8x512xf32>
    %cst_57 = arith.constant dense<0.000000e+00> : vector<8x512xf32>
    %189 = tpu.matmul %182, %9, %cst_57 {dimension_numbers = #tpu.dot_dimension_numbers<[1], [0], [0], [1], [0, 0, 1, 1], [], []>} : vector<8x128xf32>, vector<128x512xf32>, vector<8x512xf32> -> vector<8x512xf32>
    %190 = arith.addf %188, %189 : vector<8x512xf32>
    %191 = vector.extract_strided_slice %187 {offsets = [0, 0], sizes = [8, 128], strides = [1, 1]} : vector<8x512xf32> to vector<8x128xf32>
    %192 = arith.negf %191 : vector<8x128xf32>
    %193 = math.exp %192 : vector<8x128xf32>
    %cst_58 = arith.constant 1.000000e+00 : f32
    %194 = vector.broadcast %cst_58 : f32 to vector<8x128xf32>
    %195 = arith.addf %194, %193 : vector<8x128xf32>
    %196 = arith.divf %194, %195 : vector<8x128xf32>
    %197 = vector.extract_strided_slice %187 {offsets = [0, 128], sizes = [8, 128], strides = [1, 1]} : vector<8x512xf32> to vector<8x128xf32>
    %198 = arith.negf %197 : vector<8x128xf32>
    %199 = math.exp %198 : vector<8x128xf32>
    %cst_59 = arith.constant 1.000000e+00 : f32
    %200 = vector.broadcast %cst_59 : f32 to vector<8x128xf32>
    %201 = arith.addf %200, %199 : vector<8x128xf32>
    %202 = arith.divf %200, %201 : vector<8x128xf32>
    %203 = vector.extract_strided_slice %187 {offsets = [0, 256], sizes = [8, 128], strides = [1, 1]} : vector<8x512xf32> to vector<8x128xf32>
    %204 = math.tanh %203 : vector<8x128xf32>
    %205 = vector.extract_strided_slice %187 {offsets = [0, 384], sizes = [8, 128], strides = [1, 1]} : vector<8x512xf32> to vector<8x128xf32>
    %206 = arith.negf %205 : vector<8x128xf32>
    %207 = math.exp %206 : vector<8x128xf32>
    %cst_60 = arith.constant 1.000000e+00 : f32
    %208 = vector.broadcast %cst_60 : f32 to vector<8x128xf32>
    %209 = arith.addf %208, %207 : vector<8x128xf32>
    %210 = arith.divf %208, %209 : vector<8x128xf32>
    %211 = arith.mulf %202, %155 : vector<8x128xf32>
    %212 = arith.mulf %196, %204 : vector<8x128xf32>
    %213 = arith.addf %211, %212 : vector<8x128xf32>
    %214 = math.tanh %213 : vector<8x128xf32>
    %215 = arith.mulf %210, %214 : vector<8x128xf32>
    %216 = vector.extract_strided_slice %190 {offsets = [0, 0], sizes = [8, 128], strides = [1, 1]} : vector<8x512xf32> to vector<8x128xf32>
    %217 = arith.negf %216 : vector<8x128xf32>
    %218 = math.exp %217 : vector<8x128xf32>
    %cst_61 = arith.constant 1.000000e+00 : f32
    %219 = vector.broadcast %cst_61 : f32 to vector<8x128xf32>
    %220 = arith.addf %219, %218 : vector<8x128xf32>
    %221 = arith.divf %219, %220 : vector<8x128xf32>
    %222 = vector.extract_strided_slice %190 {offsets = [0, 128], sizes = [8, 128], strides = [1, 1]} : vector<8x512xf32> to vector<8x128xf32>
    %223 = arith.negf %222 : vector<8x128xf32>
    %224 = math.exp %223 : vector<8x128xf32>
    %cst_62 = arith.constant 1.000000e+00 : f32
    %225 = vector.broadcast %cst_62 : f32 to vector<8x128xf32>
    %226 = arith.addf %225, %224 : vector<8x128xf32>
    %227 = arith.divf %225, %226 : vector<8x128xf32>
    %228 = vector.extract_strided_slice %190 {offsets = [0, 256], sizes = [8, 128], strides = [1, 1]} : vector<8x512xf32> to vector<8x128xf32>
    %229 = math.tanh %228 : vector<8x128xf32>
    %230 = vector.extract_strided_slice %190 {offsets = [0, 384], sizes = [8, 128], strides = [1, 1]} : vector<8x512xf32> to vector<8x128xf32>
    %231 = arith.negf %230 : vector<8x128xf32>
    %232 = math.exp %231 : vector<8x128xf32>
    %cst_63 = arith.constant 1.000000e+00 : f32
    %233 = vector.broadcast %cst_63 : f32 to vector<8x128xf32>
    %234 = arith.addf %233, %232 : vector<8x128xf32>
    %235 = arith.divf %233, %234 : vector<8x128xf32>
    %236 = arith.mulf %227, %180 : vector<8x128xf32>
    %237 = arith.mulf %221, %229 : vector<8x128xf32>
    %238 = arith.addf %236, %237 : vector<8x128xf32>
    %239 = math.tanh %238 : vector<8x128xf32>
    %240 = arith.mulf %235, %239 : vector<8x128xf32>
    %c24_64 = arith.constant 24 : index
    %c0_65 = arith.constant 0 : index
    %241 = vector.load %arg10[%c24_64, %c0_65] : memref<64x256xf32, #tpu.memory_space<vmem>>, vector<8x128xf32>
    tpu.vector_store %arg10[%c24_64, %c0_65], %215 {strides = array<i32>} : memref<64x256xf32, #tpu.memory_space<vmem>>, vector<8x128xf32>,
    %c32_66 = arith.constant 32 : index
    %c128_67 = arith.constant 128 : index
    %242 = vector.load %arg10[%c32_66, %c128_67] : memref<64x256xf32, #tpu.memory_space<vmem>>, vector<8x128xf32>
    tpu.vector_store %arg10[%c32_66, %c128_67], %240 {strides = array<i32>} : memref<64x256xf32, #tpu.memory_space<vmem>>, vector<8x128xf32>,
    %c32_68 = arith.constant 32 : index
    %c0_69 = arith.constant 0 : index
    %243 = vector.load %arg9[%c32_68, %c0_69] : memref<64x1024xf32, #tpu.memory_space<vmem>>, vector<8x512xf32>
    %cst_70 = arith.constant dense<0.000000e+00> : vector<8x512xf32>
    %244 = tpu.matmul %215, %8, %cst_70 {dimension_numbers = #tpu.dot_dimension_numbers<[1], [0], [0], [1], [0, 0, 1, 1], [], []>} : vector<8x128xf32>, vector<128x512xf32>, vector<8x512xf32> -> vector<8x512xf32>
    %245 = arith.addf %243, %244 : vector<8x512xf32>
    %c24_71 = arith.constant 24 : index
    %c512_72 = arith.constant 512 : index
    %246 = vector.load %arg9[%c24_71, %c512_72] : memref<64x1024xf32, #tpu.memory_space<vmem>>, vector<8x512xf32>
    %cst_73 = arith.constant dense<0.000000e+00> : vector<8x512xf32>
    %247 = tpu.matmul %240, %9, %cst_73 {dimension_numbers = #tpu.dot_dimension_numbers<[1], [0], [0], [1], [0, 0, 1, 1], [], []>} : vector<8x128xf32>, vector<128x512xf32>, vector<8x512xf32> -> vector<8x512xf32>
    %248 = arith.addf %246, %247 : vector<8x512xf32>
    %249 = vector.extract_strided_slice %245 {offsets = [0, 0], sizes = [8, 128], strides = [1, 1]} : vector<8x512xf32> to vector<8x128xf32>
    %250 = arith.negf %249 : vector<8x128xf32>
    %251 = math.exp %250 : vector<8x128xf32>
    %cst_74 = arith.constant 1.000000e+00 : f32
    %252 = vector.broadcast %cst_74 : f32 to vector<8x128xf32>
    %253 = arith.addf %252, %251 : vector<8x128xf32>
    %254 = arith.divf %252, %253 : vector<8x128xf32>
    %255 = vector.extract_strided_slice %245 {offsets = [0, 128], sizes = [8, 128], strides = [1, 1]} : vector<8x512xf32> to vector<8x128xf32>
    %256 = arith.negf %255 : vector<8x128xf32>
    %257 = math.exp %256 : vector<8x128xf32>
    %cst_75 = arith.constant 1.000000e+00 : f32
    %258 = vector.broadcast %cst_75 : f32 to vector<8x128xf32>
    %259 = arith.addf %258, %257 : vector<8x128xf32>
    %260 = arith.divf %258, %259 : vector<8x128xf32>
    %261 = vector.extract_strided_slice %245 {offsets = [0, 256], sizes = [8, 128], strides = [1, 1]} : vector<8x512xf32> to vector<8x128xf32>
    %262 = math.tanh %261 : vector<8x128xf32>
    %263 = vector.extract_strided_slice %245 {offsets = [0, 384], sizes = [8, 128], strides = [1, 1]} : vector<8x512xf32> to vector<8x128xf32>
    %264 = arith.negf %263 : vector<8x128xf32>
    %265 = math.exp %264 : vector<8x128xf32>
    %cst_76 = arith.constant 1.000000e+00 : f32
    %266 = vector.broadcast %cst_76 : f32 to vector<8x128xf32>
    %267 = arith.addf %266, %265 : vector<8x128xf32>
    %268 = arith.divf %266, %267 : vector<8x128xf32>
    %269 = arith.mulf %260, %213 : vector<8x128xf32>
    %270 = arith.mulf %254, %262 : vector<8x128xf32>
    %271 = arith.addf %269, %270 : vector<8x128xf32>
    %272 = math.tanh %271 : vector<8x128xf32>
    %273 = arith.mulf %268, %272 : vector<8x128xf32>
    %274 = vector.extract_strided_slice %248 {offsets = [0, 0], sizes = [8, 128], strides = [1, 1]} : vector<8x512xf32> to vector<8x128xf32>
    %275 = arith.negf %274 : vector<8x128xf32>
    %276 = math.exp %275 : vector<8x128xf32>
    %cst_77 = arith.constant 1.000000e+00 : f32
    %277 = vector.broadcast %cst_77 : f32 to vector<8x128xf32>
    %278 = arith.addf %277, %276 : vector<8x128xf32>
    %279 = arith.divf %277, %278 : vector<8x128xf32>
    %280 = vector.extract_strided_slice %248 {offsets = [0, 128], sizes = [8, 128], strides = [1, 1]} : vector<8x512xf32> to vector<8x128xf32>
    %281 = arith.negf %280 : vector<8x128xf32>
    %282 = math.exp %281 : vector<8x128xf32>
    %cst_78 = arith.constant 1.000000e+00 : f32
    %283 = vector.broadcast %cst_78 : f32 to vector<8x128xf32>
    %284 = arith.addf %283, %282 : vector<8x128xf32>
    %285 = arith.divf %283, %284 : vector<8x128xf32>
    %286 = vector.extract_strided_slice %248 {offsets = [0, 256], sizes = [8, 128], strides = [1, 1]} : vector<8x512xf32> to vector<8x128xf32>
    %287 = math.tanh %286 : vector<8x128xf32>
    %288 = vector.extract_strided_slice %248 {offsets = [0, 384], sizes = [8, 128], strides = [1, 1]} : vector<8x512xf32> to vector<8x128xf32>
    %289 = arith.negf %288 : vector<8x128xf32>
    %290 = math.exp %289 : vector<8x128xf32>
    %cst_79 = arith.constant 1.000000e+00 : f32
    %291 = vector.broadcast %cst_79 : f32 to vector<8x128xf32>
    %292 = arith.addf %291, %290 : vector<8x128xf32>
    %293 = arith.divf %291, %292 : vector<8x128xf32>
    %294 = arith.mulf %285, %238 : vector<8x128xf32>
    %295 = arith.mulf %279, %287 : vector<8x128xf32>
    %296 = arith.addf %294, %295 : vector<8x128xf32>
    %297 = math.tanh %296 : vector<8x128xf32>
    %298 = arith.mulf %293, %297 : vector<8x128xf32>
    %c32_80 = arith.constant 32 : index
    %c0_81 = arith.constant 0 : index
    %299 = vector.load %arg10[%c32_80, %c0_81] : memref<64x256xf32, #tpu.memory_space<vmem>>, vector<8x128xf32>
    tpu.vector_store %arg10[%c32_80, %c0_81], %273 {strides = array<i32>} : memref<64x256xf32, #tpu.memory_space<vmem>>, vector<8x128xf32>,
    %c24_82 = arith.constant 24 : index
    %c128_83 = arith.constant 128 : index
    %300 = vector.load %arg10[%c24_82, %c128_83] : memref<64x256xf32, #tpu.memory_space<vmem>>, vector<8x128xf32>
    tpu.vector_store %arg10[%c24_82, %c128_83], %298 {strides = array<i32>} : memref<64x256xf32, #tpu.memory_space<vmem>>, vector<8x128xf32>,
    %c40_84 = arith.constant 40 : index
    %c0_85 = arith.constant 0 : index
    %301 = vector.load %arg9[%c40_84, %c0_85] : memref<64x1024xf32, #tpu.memory_space<vmem>>, vector<8x512xf32>
    %cst_86 = arith.constant dense<0.000000e+00> : vector<8x512xf32>
    %302 = tpu.matmul %273, %8, %cst_86 {dimension_numbers = #tpu.dot_dimension_numbers<[1], [0], [0], [1], [0, 0, 1, 1], [], []>} : vector<8x128xf32>, vector<128x512xf32>, vector<8x512xf32> -> vector<8x512xf32>
    %303 = arith.addf %301, %302 : vector<8x512xf32>
    %c16_87 = arith.constant 16 : index
    %c512_88 = arith.constant 512 : index
    %304 = vector.load %arg9[%c16_87, %c512_88] : memref<64x1024xf32, #tpu.memory_space<vmem>>, vector<8x512xf32>
    %cst_89 = arith.constant dense<0.000000e+00> : vector<8x512xf32>
    %305 = tpu.matmul %298, %9, %cst_89 {dimension_numbers = #tpu.dot_dimension_numbers<[1], [0], [0], [1], [0, 0, 1, 1], [], []>} : vector<8x128xf32>, vector<128x512xf32>, vector<8x512xf32> -> vector<8x512xf32>
    %306 = arith.addf %304, %305 : vector<8x512xf32>
    %307 = vector.extract_strided_slice %303 {offsets = [0, 0], sizes = [8, 128], strides = [1, 1]} : vector<8x512xf32> to vector<8x128xf32>
    %308 = arith.negf %307 : vector<8x128xf32>
    %309 = math.exp %308 : vector<8x128xf32>
    %cst_90 = arith.constant 1.000000e+00 : f32
    %310 = vector.broadcast %cst_90 : f32 to vector<8x128xf32>
    %311 = arith.addf %310, %309 : vector<8x128xf32>
    %312 = arith.divf %310, %311 : vector<8x128xf32>
    %313 = vector.extract_strided_slice %303 {offsets = [0, 128], sizes = [8, 128], strides = [1, 1]} : vector<8x512xf32> to vector<8x128xf32>
    %314 = arith.negf %313 : vector<8x128xf32>
    %315 = math.exp %314 : vector<8x128xf32>
    %cst_91 = arith.constant 1.000000e+00 : f32
    %316 = vector.broadcast %cst_91 : f32 to vector<8x128xf32>
    %317 = arith.addf %316, %315 : vector<8x128xf32>
    %318 = arith.divf %316, %317 : vector<8x128xf32>
    %319 = vector.extract_strided_slice %303 {offsets = [0, 256], sizes = [8, 128], strides = [1, 1]} : vector<8x512xf32> to vector<8x128xf32>
    %320 = math.tanh %319 : vector<8x128xf32>
    %321 = vector.extract_strided_slice %303 {offsets = [0, 384], sizes = [8, 128], strides = [1, 1]} : vector<8x512xf32> to vector<8x128xf32>
    %322 = arith.negf %321 : vector<8x128xf32>
    %323 = math.exp %322 : vector<8x128xf32>
    %cst_92 = arith.constant 1.000000e+00 : f32
    %324 = vector.broadcast %cst_92 : f32 to vector<8x128xf32>
    %325 = arith.addf %324, %323 : vector<8x128xf32>
    %326 = arith.divf %324, %325 : vector<8x128xf32>
    %327 = arith.mulf %318, %271 : vector<8x128xf32>
    %328 = arith.mulf %312, %320 : vector<8x128xf32>
    %329 = arith.addf %327, %328 : vector<8x128xf32>
    %330 = math.tanh %329 : vector<8x128xf32>
    %331 = arith.mulf %326, %330 : vector<8x128xf32>
    %332 = vector.extract_strided_slice %306 {offsets = [0, 0], sizes = [8, 128], strides = [1, 1]} : vector<8x512xf32> to vector<8x128xf32>
    %333 = arith.negf %332 : vector<8x128xf32>
    %334 = math.exp %333 : vector<8x128xf32>
    %cst_93 = arith.constant 1.000000e+00 : f32
    %335 = vector.broadcast %cst_93 : f32 to vector<8x128xf32>
    %336 = arith.addf %335, %334 : vector<8x128xf32>
    %337 = arith.divf %335, %336 : vector<8x128xf32>
    %338 = vector.extract_strided_slice %306 {offsets = [0, 128], sizes = [8, 128], strides = [1, 1]} : vector<8x512xf32> to vector<8x128xf32>
    %339 = arith.negf %338 : vector<8x128xf32>
    %340 = math.exp %339 : vector<8x128xf32>
    %cst_94 = arith.constant 1.000000e+00 : f32
    %341 = vector.broadcast %cst_94 : f32 to vector<8x128xf32>
    %342 = arith.addf %341, %340 : vector<8x128xf32>
    %343 = arith.divf %341, %342 : vector<8x128xf32>
    %344 = vector.extract_strided_slice %306 {offsets = [0, 256], sizes = [8, 128], strides = [1, 1]} : vector<8x512xf32> to vector<8x128xf32>
    %345 = math.tanh %344 : vector<8x128xf32>
    %346 = vector.extract_strided_slice %306 {offsets = [0, 384], sizes = [8, 128], strides = [1, 1]} : vector<8x512xf32> to vector<8x128xf32>
    %347 = arith.negf %346 : vector<8x128xf32>
    %348 = math.exp %347 : vector<8x128xf32>
    %cst_95 = arith.constant 1.000000e+00 : f32
    %349 = vector.broadcast %cst_95 : f32 to vector<8x128xf32>
    %350 = arith.addf %349, %348 : vector<8x128xf32>
    %351 = arith.divf %349, %350 : vector<8x128xf32>
    %352 = arith.mulf %343, %296 : vector<8x128xf32>
    %353 = arith.mulf %337, %345 : vector<8x128xf32>
    %354 = arith.addf %352, %353 : vector<8x128xf32>
    %355 = math.tanh %354 : vector<8x128xf32>
    %356 = arith.mulf %351, %355 : vector<8x128xf32>
    %c40_96 = arith.constant 40 : index
    %c0_97 = arith.constant 0 : index
    %357 = vector.load %arg10[%c40_96, %c0_97] : memref<64x256xf32, #tpu.memory_space<vmem>>, vector<8x128xf32>
    tpu.vector_store %arg10[%c40_96, %c0_97], %331 {strides = array<i32>} : memref<64x256xf32, #tpu.memory_space<vmem>>, vector<8x128xf32>,
    %c16_98 = arith.constant 16 : index
    %c128_99 = arith.constant 128 : index
    %358 = vector.load %arg10[%c16_98, %c128_99] : memref<64x256xf32, #tpu.memory_space<vmem>>, vector<8x128xf32>
    tpu.vector_store %arg10[%c16_98, %c128_99], %356 {strides = array<i32>} : memref<64x256xf32, #tpu.memory_space<vmem>>, vector<8x128xf32>,
    %c48_100 = arith.constant 48 : index
    %c0_101 = arith.constant 0 : index
    %359 = vector.load %arg9[%c48_100, %c0_101] : memref<64x1024xf32, #tpu.memory_space<vmem>>, vector<8x512xf32>
    %cst_102 = arith.constant dense<0.000000e+00> : vector<8x512xf32>
    %360 = tpu.matmul %331, %8, %cst_102 {dimension_numbers = #tpu.dot_dimension_numbers<[1], [0], [0], [1], [0, 0, 1, 1], [], []>} : vector<8x128xf32>, vector<128x512xf32>, vector<8x512xf32> -> vector<8x512xf32>
    %361 = arith.addf %359, %360 : vector<8x512xf32>
    %c8_103 = arith.constant 8 : index
    %c512_104 = arith.constant 512 : index
    %362 = vector.load %arg9[%c8_103, %c512_104] : memref<64x1024xf32, #tpu.memory_space<vmem>>, vector<8x512xf32>
    %cst_105 = arith.constant dense<0.000000e+00> : vector<8x512xf32>
    %363 = tpu.matmul %356, %9, %cst_105 {dimension_numbers = #tpu.dot_dimension_numbers<[1], [0], [0], [1], [0, 0, 1, 1], [], []>} : vector<8x128xf32>, vector<128x512xf32>, vector<8x512xf32> -> vector<8x512xf32>
    %364 = arith.addf %362, %363 : vector<8x512xf32>
    %365 = vector.extract_strided_slice %361 {offsets = [0, 0], sizes = [8, 128], strides = [1, 1]} : vector<8x512xf32> to vector<8x128xf32>
    %366 = arith.negf %365 : vector<8x128xf32>
    %367 = math.exp %366 : vector<8x128xf32>
    %cst_106 = arith.constant 1.000000e+00 : f32
    %368 = vector.broadcast %cst_106 : f32 to vector<8x128xf32>
    %369 = arith.addf %368, %367 : vector<8x128xf32>
    %370 = arith.divf %368, %369 : vector<8x128xf32>
    %371 = vector.extract_strided_slice %361 {offsets = [0, 128], sizes = [8, 128], strides = [1, 1]} : vector<8x512xf32> to vector<8x128xf32>
    %372 = arith.negf %371 : vector<8x128xf32>
    %373 = math.exp %372 : vector<8x128xf32>
    %cst_107 = arith.constant 1.000000e+00 : f32
    %374 = vector.broadcast %cst_107 : f32 to vector<8x128xf32>
    %375 = arith.addf %374, %373 : vector<8x128xf32>
    %376 = arith.divf %374, %375 : vector<8x128xf32>
    %377 = vector.extract_strided_slice %361 {offsets = [0, 256], sizes = [8, 128], strides = [1, 1]} : vector<8x512xf32> to vector<8x128xf32>
    %378 = math.tanh %377 : vector<8x128xf32>
    %379 = vector.extract_strided_slice %361 {offsets = [0, 384], sizes = [8, 128], strides = [1, 1]} : vector<8x512xf32> to vector<8x128xf32>
    %380 = arith.negf %379 : vector<8x128xf32>
    %381 = math.exp %380 : vector<8x128xf32>
    %cst_108 = arith.constant 1.000000e+00 : f32
    %382 = vector.broadcast %cst_108 : f32 to vector<8x128xf32>
    %383 = arith.addf %382, %381 : vector<8x128xf32>
    %384 = arith.divf %382, %383 : vector<8x128xf32>
    %385 = arith.mulf %376, %329 : vector<8x128xf32>
    %386 = arith.mulf %370, %378 : vector<8x128xf32>
    %387 = arith.addf %385, %386 : vector<8x128xf32>
    %388 = math.tanh %387 : vector<8x128xf32>
    %389 = arith.mulf %384, %388 : vector<8x128xf32>
    %390 = vector.extract_strided_slice %364 {offsets = [0, 0], sizes = [8, 128], strides = [1, 1]} : vector<8x512xf32> to vector<8x128xf32>
    %391 = arith.negf %390 : vector<8x128xf32>
    %392 = math.exp %391 : vector<8x128xf32>
    %cst_109 = arith.constant 1.000000e+00 : f32
    %393 = vector.broadcast %cst_109 : f32 to vector<8x128xf32>
    %394 = arith.addf %393, %392 : vector<8x128xf32>
    %395 = arith.divf %393, %394 : vector<8x128xf32>
    %396 = vector.extract_strided_slice %364 {offsets = [0, 128], sizes = [8, 128], strides = [1, 1]} : vector<8x512xf32> to vector<8x128xf32>
    %397 = arith.negf %396 : vector<8x128xf32>
    %398 = math.exp %397 : vector<8x128xf32>
    %cst_110 = arith.constant 1.000000e+00 : f32
    %399 = vector.broadcast %cst_110 : f32 to vector<8x128xf32>
    %400 = arith.addf %399, %398 : vector<8x128xf32>
    %401 = arith.divf %399, %400 : vector<8x128xf32>
    %402 = vector.extract_strided_slice %364 {offsets = [0, 256], sizes = [8, 128], strides = [1, 1]} : vector<8x512xf32> to vector<8x128xf32>
    %403 = math.tanh %402 : vector<8x128xf32>
    %404 = vector.extract_strided_slice %364 {offsets = [0, 384], sizes = [8, 128], strides = [1, 1]} : vector<8x512xf32> to vector<8x128xf32>
    %405 = arith.negf %404 : vector<8x128xf32>
    %406 = math.exp %405 : vector<8x128xf32>
    %cst_111 = arith.constant 1.000000e+00 : f32
    %407 = vector.broadcast %cst_111 : f32 to vector<8x128xf32>
    %408 = arith.addf %407, %406 : vector<8x128xf32>
    %409 = arith.divf %407, %408 : vector<8x128xf32>
    %410 = arith.mulf %401, %354 : vector<8x128xf32>
    %411 = arith.mulf %395, %403 : vector<8x128xf32>
    %412 = arith.addf %410, %411 : vector<8x128xf32>
    %413 = math.tanh %412 : vector<8x128xf32>
    %414 = arith.mulf %409, %413 : vector<8x128xf32>
    %c48_112 = arith.constant 48 : index
    %c0_113 = arith.constant 0 : index
    %415 = vector.load %arg10[%c48_112, %c0_113] : memref<64x256xf32, #tpu.memory_space<vmem>>, vector<8x128xf32>
    tpu.vector_store %arg10[%c48_112, %c0_113], %389 {strides = array<i32>} : memref<64x256xf32, #tpu.memory_space<vmem>>, vector<8x128xf32>,
    %c8_114 = arith.constant 8 : index
    %c128_115 = arith.constant 128 : index
    %416 = vector.load %arg10[%c8_114, %c128_115] : memref<64x256xf32, #tpu.memory_space<vmem>>, vector<8x128xf32>
    tpu.vector_store %arg10[%c8_114, %c128_115], %414 {strides = array<i32>} : memref<64x256xf32, #tpu.memory_space<vmem>>, vector<8x128xf32>,
    %c56_116 = arith.constant 56 : index
    %c0_117 = arith.constant 0 : index
    %417 = vector.load %arg9[%c56_116, %c0_117] : memref<64x1024xf32, #tpu.memory_space<vmem>>, vector<8x512xf32>
    %cst_118 = arith.constant dense<0.000000e+00> : vector<8x512xf32>
    %418 = tpu.matmul %389, %8, %cst_118 {dimension_numbers = #tpu.dot_dimension_numbers<[1], [0], [0], [1], [0, 0, 1, 1], [], []>} : vector<8x128xf32>, vector<128x512xf32>, vector<8x512xf32> -> vector<8x512xf32>
    %419 = arith.addf %417, %418 : vector<8x512xf32>
    %c0_119 = arith.constant 0 : index
    %c512_120 = arith.constant 512 : index
    %420 = vector.load %arg9[%c0_119, %c512_120] : memref<64x1024xf32, #tpu.memory_space<vmem>>, vector<8x512xf32>
    %cst_121 = arith.constant dense<0.000000e+00> : vector<8x512xf32>
    %421 = tpu.matmul %414, %9, %cst_121 {dimension_numbers = #tpu.dot_dimension_numbers<[1], [0], [0], [1], [0, 0, 1, 1], [], []>} : vector<8x128xf32>, vector<128x512xf32>, vector<8x512xf32> -> vector<8x512xf32>
    %422 = arith.addf %420, %421 : vector<8x512xf32>
    %423 = vector.extract_strided_slice %419 {offsets = [0, 0], sizes = [8, 128], strides = [1, 1]} : vector<8x512xf32> to vector<8x128xf32>
    %424 = arith.negf %423 : vector<8x128xf32>
    %425 = math.exp %424 : vector<8x128xf32>
    %cst_122 = arith.constant 1.000000e+00 : f32
    %426 = vector.broadcast %cst_122 : f32 to vector<8x128xf32>
    %427 = arith.addf %426, %425 : vector<8x128xf32>
    %428 = arith.divf %426, %427 : vector<8x128xf32>
    %429 = vector.extract_strided_slice %419 {offsets = [0, 128], sizes = [8, 128], strides = [1, 1]} : vector<8x512xf32> to vector<8x128xf32>
    %430 = arith.negf %429 : vector<8x128xf32>
    %431 = math.exp %430 : vector<8x128xf32>
    %cst_123 = arith.constant 1.000000e+00 : f32
    %432 = vector.broadcast %cst_123 : f32 to vector<8x128xf32>
    %433 = arith.addf %432, %431 : vector<8x128xf32>
    %434 = arith.divf %432, %433 : vector<8x128xf32>
    %435 = vector.extract_strided_slice %419 {offsets = [0, 256], sizes = [8, 128], strides = [1, 1]} : vector<8x512xf32> to vector<8x128xf32>
    %436 = math.tanh %435 : vector<8x128xf32>
    %437 = vector.extract_strided_slice %419 {offsets = [0, 384], sizes = [8, 128], strides = [1, 1]} : vector<8x512xf32> to vector<8x128xf32>
    %438 = arith.negf %437 : vector<8x128xf32>
    %439 = math.exp %438 : vector<8x128xf32>
    %cst_124 = arith.constant 1.000000e+00 : f32
    %440 = vector.broadcast %cst_124 : f32 to vector<8x128xf32>
    %441 = arith.addf %440, %439 : vector<8x128xf32>
    %442 = arith.divf %440, %441 : vector<8x128xf32>
    %443 = arith.mulf %434, %387 : vector<8x128xf32>
    %444 = arith.mulf %428, %436 : vector<8x128xf32>
    %445 = arith.addf %443, %444 : vector<8x128xf32>
    %446 = math.tanh %445 : vector<8x128xf32>
    %447 = arith.mulf %442, %446 : vector<8x128xf32>
    %448 = vector.extract_strided_slice %422 {offsets = [0, 0], sizes = [8, 128], strides = [1, 1]} : vector<8x512xf32> to vector<8x128xf32>
    %449 = arith.negf %448 : vector<8x128xf32>
    %450 = math.exp %449 : vector<8x128xf32>
    %cst_125 = arith.constant 1.000000e+00 : f32
    %451 = vector.broadcast %cst_125 : f32 to vector<8x128xf32>
    %452 = arith.addf %451, %450 : vector<8x128xf32>
    %453 = arith.divf %451, %452 : vector<8x128xf32>
    %454 = vector.extract_strided_slice %422 {offsets = [0, 128], sizes = [8, 128], strides = [1, 1]} : vector<8x512xf32> to vector<8x128xf32>
    %455 = arith.negf %454 : vector<8x128xf32>
    %456 = math.exp %455 : vector<8x128xf32>
    %cst_126 = arith.constant 1.000000e+00 : f32
    %457 = vector.broadcast %cst_126 : f32 to vector<8x128xf32>
    %458 = arith.addf %457, %456 : vector<8x128xf32>
    %459 = arith.divf %457, %458 : vector<8x128xf32>
    %460 = vector.extract_strided_slice %422 {offsets = [0, 256], sizes = [8, 128], strides = [1, 1]} : vector<8x512xf32> to vector<8x128xf32>
    %461 = math.tanh %460 : vector<8x128xf32>
    %462 = vector.extract_strided_slice %422 {offsets = [0, 384], sizes = [8, 128], strides = [1, 1]} : vector<8x512xf32> to vector<8x128xf32>
    %463 = arith.negf %462 : vector<8x128xf32>
    %464 = math.exp %463 : vector<8x128xf32>
    %cst_127 = arith.constant 1.000000e+00 : f32
    %465 = vector.broadcast %cst_127 : f32 to vector<8x128xf32>
    %466 = arith.addf %465, %464 : vector<8x128xf32>
    %467 = arith.divf %465, %466 : vector<8x128xf32>
    %468 = arith.mulf %459, %412 : vector<8x128xf32>
    %469 = arith.mulf %453, %461 : vector<8x128xf32>
    %470 = arith.addf %468, %469 : vector<8x128xf32>
    %471 = math.tanh %470 : vector<8x128xf32>
    %472 = arith.mulf %467, %471 : vector<8x128xf32>
    %c56_128 = arith.constant 56 : index
    %c0_129 = arith.constant 0 : index
    %473 = vector.load %arg10[%c56_128, %c0_129] : memref<64x256xf32, #tpu.memory_space<vmem>>, vector<8x128xf32>
    tpu.vector_store %arg10[%c56_128, %c0_129], %447 {strides = array<i32>} : memref<64x256xf32, #tpu.memory_space<vmem>>, vector<8x128xf32>,
    %c0_130 = arith.constant 0 : index
    %c128_131 = arith.constant 128 : index
    %474 = vector.load %arg10[%c0_130, %c128_131] : memref<64x256xf32, #tpu.memory_space<vmem>>, vector<8x128xf32>
    tpu.vector_store %arg10[%c0_130, %c128_131], %472 {strides = array<i32>} : memref<64x256xf32, #tpu.memory_space<vmem>>, vector<8x128xf32>,
    %c0_132 = arith.constant 0 : index
    %c0_133 = arith.constant 0 : index
    %475 = vector.load %arg10[%c0_132, %c0_133] : memref<64x256xf32, #tpu.memory_space<vmem>>, vector<64x256xf32>
    %c0_134 = arith.constant 0 : index
    %c0_135 = arith.constant 0 : index
    %476 = vector.load %arg6[%c0_134, %c0_135] : memref<256x128xf32, #tpu.memory_space<vmem>>, vector<256x128xf32>
    %cst_136 = arith.constant dense<0.000000e+00> : vector<64x128xf32>
    %477 = tpu.matmul %475, %476, %cst_136 {dimension_numbers = #tpu.dot_dimension_numbers<[1], [0], [0], [1], [0, 0, 1, 1], [], []>} : vector<64x256xf32>, vector<256x128xf32>, vector<64x128xf32> -> vector<64x128xf32>
    %c0_137 = arith.constant 0 : index
    %c0_138 = arith.constant 0 : index
    %478 = vector.load %arg7[%c0_137, %c0_138] : memref<1x128xf32, #tpu.memory_space<vmem>>, vector<1x128xf32>
    %479 = vector.broadcast %478 : vector<1x128xf32> to vector<64x128xf32>
    %480 = arith.addf %477, %479 : vector<64x128xf32>
    %c0_139 = arith.constant 0 : index
    %c0_140 = arith.constant 0 : index
    %c0_141 = arith.constant 0 : index
    %481 = vector.load %arg8[%c0_139, %c0_140, %c0_141] : memref<1x64x128xf32, #tpu.memory_space<vmem>>, vector<1x64x128xf32>
    %482 = vector.shape_cast %481 : vector<1x64x128xf32> to vector<64x128xf32>
    %483 = vector.shape_cast %480 : vector<64x128xf32> to vector<1x64x128xf32>
    tpu.vector_store %arg8[%c0_139, %c0_140, %c0_141], %483 {strides = array<i32>} : memref<1x64x128xf32, #tpu.memory_space<vmem>>, vector<1x64x128xf32>,
    return
  }
  func.func @transform_0(%arg0: i32) -> (i32, i32, i32) {
    %c0_i32 = arith.constant 0 : i32
    %c0_i32_0 = arith.constant 0 : i32
    %c0_i32_1 = arith.constant 0 : i32
    return %arg0, %c0_i32, %c0_i32_0 : i32, i32, i32
  }
  func.func @transform_1(%arg0: i32) -> (i32, i32) {
    %c0_i32 = arith.constant 0 : i32
    %c0_i32_0 = arith.constant 0 : i32
    %c0_i32_1 = arith.constant 0 : i32
    return %c0_i32, %c0_i32_0 : i32, i32
  }
  func.func @transform_2(%arg0: i32) -> (i32, i32) {
    %c0_i32 = arith.constant 0 : i32
    %c0_i32_0 = arith.constant 0 : i32
    %c0_i32_1 = arith.constant 0 : i32
    return %c0_i32, %c0_i32_0 : i32, i32
  }
  func.func @transform_3(%arg0: i32) -> (i32, i32) {
    %c0_i32 = arith.constant 0 : i32
    %c0_i32_0 = arith.constant 0 : i32
    %c0_i32_1 = arith.constant 0 : i32
    return %c0_i32, %c0_i32_0 : i32, i32
  }
  func.func @transform_4(%arg0: i32) -> (i32, i32) {
    %c0_i32 = arith.constant 0 : i32
    %c0_i32_0 = arith.constant 0 : i32
    %c0_i32_1 = arith.constant 0 : i32
    return %c0_i32, %c0_i32_0 : i32, i32
  }
  func.func @transform_5(%arg0: i32) -> (i32, i32) {
    %c0_i32 = arith.constant 0 : i32
    %c0_i32_0 = arith.constant 0 : i32
    %c0_i32_1 = arith.constant 0 : i32
    return %c0_i32, %c0_i32_0 : i32, i32
  }
  func.func @transform_6(%arg0: i32) -> (i32, i32) {
    %c0_i32 = arith.constant 0 : i32
    %c0_i32_0 = arith.constant 0 : i32
    %c0_i32_1 = arith.constant 0 : i32
    return %c0_i32, %c0_i32_0 : i32, i32
  }
  func.func @transform_7(%arg0: i32) -> (i32, i32, i32) {
    %c0_i32 = arith.constant 0 : i32
    %c0_i32_0 = arith.constant 0 : i32
    %c0_i32_1 = arith.constant 0 : i32
    return %arg0, %c0_i32, %c0_i32_0 : i32, i32, i32
  }
}

</mosaic_0001>

<bundles_post_ra>
// kernel: torch_model_forward.1
= control target key start
LH: loop header
LB: loop body
LE: loop exit
PB: predicated region body
PF: predicated region fallthrough
CT: control target
= control target key end

     0   :  { %s5868_s24 = smov 0   ;;  %s7796_s0 = inlined_call_operand.vmem [shape: f32[2,64,128], index: 0, kind: input, shape index: {}]   ;;  %s7797_s1 = inlined_call_operand.vmem [shape: f32[128,1024], index: 1, kind: input, shape index: {}]   ;;  %s7798_s2 = inlined_call_operand.vmem [shape: f32[128,512], index: 2, kind: input, shape index: {}]   ;;  %s7799_s3 = inlined_call_operand.vmem [shape: f32[128,512], index: 3, kind: input, shape index: {}]   ;;  %s7800_s4 = inlined_call_operand.vmem [shape: f32[1,1024], index: 4, kind: input, shape index: {}]   ;;  %s7801_s5 = inlined_call_operand.vmem [shape: f32[256,128], index: 5, kind: input, shape index: {}]   ;;  %s7802_s6 = inlined_call_operand.vmem [shape: f32[1,128], index: 6, kind: input, shape index: {}]   ;;  %s7803_s7 = inlined_call_operand.vmem [shape: f32[2,64,128], index: 7, kind: output, shape index: {}]  }
   0x1 LB: > { %s4124_s25 = sadd.s32 4294967295, %s5825_s24   ;;  %p4128_p0 = scmp.ge.s32.totalorder %s5825_s24, 1  ;;  %s5825_s24 = sphi %s5868_s24, %s17_s24  }
   0x2   : > { %p237_p1 = scmp.lt.s32.totalorder %s5825_s24, 3 }
   0x4   : > { %p238_p2 = pnand %p4128_p0, %p237_p1 }
   0x6   : > { %241 = sbr.rel (%p238_p2) target bundleno = 2473 (0x9a9), region = 48 }
   0xd   : > { %v288_v0 = vld [vmem:[%s7797_s1 + $0x8] sm:$0xff]  ;;  %v287_v5 = vld [vmem:[%s7797_s1] sm:$0xff]  ;;  %v7804_v7 = vmov 0.0   ;;  %p6030_p3 = scmp.lt.s32.totalorder %s4124_s25, 1 }
   0xe   : > { %v296_v1 = vld [vmem:[%s7797_s1 + $0x48] sm:$0xff]  ;;  %v295_v6 = vld [vmem:[%s7797_s1 + $0x40] sm:$0xff]  ;;  %521 = vmatprep.mubr.f32.mxu1 %v7804_v7  ;;  %747 = vmatprep.mubr.f32.mxu0 %v7804_v7 }
   0xf   : > { %v292_v2 = vld [vmem:[%s7797_s1 + $0x28] sm:$0xff]  ;;  %v4242_v3 = vpack.c.bf16 %v296_v1, %v288_v0  ;;  %v4244_v9 = vpack.c.bf16 %v295_v6, %v287_v5  ;;  %v291_v10 = vld [vmem:[%s7797_s1 + $0x20] sm:$0xff]  ;;  %s8099_s25 = smov (!%p6030_p3, %s4124_s25), 1 }
  0x10   : > { %v300_v4 = vld [vmem:[%s7797_s1 + $0x68] sm:$0xff]  ;;  %v299_v11 = vld [vmem:[%s7797_s1 + $0x60] sm:$0xff]  ;;  %s4184_s29 = sshll.u32 %s8099_s25, 6 }
  0x11   : > { %v4306_v8 = vpack.c.bf16 %v300_v4, %v292_v2  ;;  %v304_v12 = vld [vmem:[%s7797_s1 + $0x88] sm:$0xff]  ;;  %4243 = vmatprep.subr.bf16.mxu1 %v4242_v3  ;;  %v4308_v13 = vpack.c.bf16 %v299_v11, %v291_v10  ;;  %v303_v19 = vld [vmem:[%s7797_s1 + $0x80] sm:$0xff]  ;;  %s6100_s17 = scalar_lea.vmem %s7796_s0, %s4184_s29  ;;  %s7783_s10 = scalar_lea.vmem %s7803_s7, %s4184_s29 }
  0x12   : > { %v312_v14 = vld [vmem:[%s7797_s1 + $0xc8] sm:$0xff]  ;;  %4245 = vmatpush1.bf16.msra.mxu1 %v4244_v9  ;;  %v311_v20 = vld [vmem:[%s7797_s1 + $0xc0] sm:$0xff] }
  0x13   : > { %v308_v15 = vld [vmem:[%s7797_s1 + $0xa8] sm:$0xff]  ;;  %4307 = vmatprep.subr.bf16.mxu0 %v4306_v8  ;;  %v4246_v17 = vpack.c.bf16 %v312_v14, %v304_v12  ;;  %v307_v21 = vld [vmem:[%s7797_s1 + $0xa0] sm:$0xff]  ;;  %v4248_v22 = vpack.c.bf16 %v311_v20, %v303_v19 }
  0x14   : > { %v316_v16 = vld [vmem:[%s7797_s1 + $0xe8] sm:$0xff]  ;;  %4309 = vmatpush1.bf16.msra.mxu0 %v4308_v13  ;;  %v315_v23 = vld [vmem:[%s7797_s1 + $0xe0] sm:$0xff] }
  0x15   : > { %v4310_v18 = vpack.c.bf16 %v316_v16, %v308_v15  ;;  %v320_v24 = vld [vmem:[%s7797_s1 + $0x108] sm:$0xff]  ;;  %4247 = vmatprep.subr.bf16.mxu1 %v4246_v17  ;;  %v4312_v26 = vpack.c.bf16 %v315_v23, %v307_v21  ;;  %v319_v30 = vld [vmem:[%s7797_s1 + $0x100] sm:$0xff] }
  0x16   : > { %v328_v25 = vld [vmem:[%s7797_s1 + $0x148] sm:$0xff]  ;;  %v327_v32 = vld [vmem:[%s7797_s1 + $0x140] sm:$0xff]  ;;  %4249 = vmatpush1.bf16.msra.mxu1 %v4248_v22 }
  0x17   : > { %4311 = vmatprep.subr.bf16.mxu0 %v4310_v18  ;;  %v4250_v27 = vpack.c.bf16 %v328_v25, %v320_v24  ;;  %v324_v28 = vld [vmem:[%s7797_s1 + $0x128] sm:$0xff]  ;;  %v323_v33 = vld [vmem:[%s7797_s1 + $0x120] sm:$0xff]  ;;  %v4252_v35 = vpack.c.bf16 %v327_v32, %v319_v30  ;;  %v290_v32 = vld [vmem:[%s7797_s1 + $0x18] sm:$0xff] }
  0x18   : > { %v332_v29 = vld [vmem:[%s7797_s1 + $0x168] sm:$0xff]  ;;  %v331_v34 = vld [vmem:[%s7797_s1 + $0x160] sm:$0xff]  ;;  %4313 = vmatpush1.bf16.msra.mxu0 %v4312_v26 }
  0x19   : > { %v4314_v31 = vpack.c.bf16 %v332_v29, %v324_v28  ;;  %v336_v36 = vld [vmem:[%s7797_s1 + $0x188] sm:$0xff]  ;;  %4251 = vmatprep.subr.bf16.mxu1 %v4250_v27  ;;  %v4316_v39 = vpack.c.bf16 %v331_v34, %v323_v33  ;;  %v335_v42 = vld [vmem:[%s7797_s1 + $0x180] sm:$0xff]  ;;  %v298_v33 = vld [vmem:[%s7797_s1 + $0x58] sm:$0xff] }
  0x1a   : > { %v344_v37 = vld [vmem:[%s7797_s1 + $0x1c8] sm:$0xff]  ;;  %v343_v43 = vld [vmem:[%s7797_s1 + $0x1c0] sm:$0xff]  ;;  %4253 = vmatpush1.bf16.msra.mxu1 %v4252_v35 }
  0x1b   : > { %v340_v38 = vld [vmem:[%s7797_s1 + $0x1a8] sm:$0xff]  ;;  %v4254_v40 = vpack.c.bf16 %v344_v37, %v336_v36  ;;  %4315 = vmatprep.subr.bf16.mxu0 %v4314_v31  ;;  %v339_v45 = vld [vmem:[%s7797_s1 + $0x1a0] sm:$0xff]  ;;  %v4256_v51 = vpack.c.bf16 %v343_v43, %v335_v42 }
  0x1c   : > { %v348_v41 = vld [vmem:[%s7797_s1 + $0x1e8] sm:$0xff]  ;;  %v347_v46 = vld [vmem:[%s7797_s1 + $0x1e0] sm:$0xff]  ;;  %4317 = vmatpush1.bf16.msra.mxu0 %v4316_v39  ;;  %v289_v39 = vld [vmem:[%s7797_s1 + $0x10] sm:$0xff] }
  0x1d   : > { %v4318_v44 = vpack.c.bf16 %v348_v41, %v340_v38  ;;  %v352_v47 = vld [vmem:[%s7797_s1 + $0x208] sm:$0xff]  ;;  %4255 = vmatprep.subr.bf16.mxu1 %v4254_v40  ;;  %v4320_v52 = vpack.c.bf16 %v347_v46, %v339_v45  ;;  %v351_v54 = vld [vmem:[%s7797_s1 + $0x200] sm:$0xff]  ;;  %v4274_v38 = vpack.c.bf16 %v298_v33, %v290_v32  ;;  %v297_v40 = vld [vmem:[%s7797_s1 + $0x50] sm:$0xff] }
  0x1e   : > { %v360_v48 = vld [vmem:[%s7797_s1 + $0x248] sm:$0xff]  ;;  %v359_v55 = vld [vmem:[%s7797_s1 + $0x240] sm:$0xff]  ;;  %4257 = vmatpush1.bf16.msra.mxu1 %v4256_v51  ;;  %v314_v45 = vld [vmem:[%s7797_s1 + $0xd8] sm:$0xff] }
  0x1f   : > { %v356_v49 = vld [vmem:[%s7797_s1 + $0x228] sm:$0xff]  ;;  %v4258_v53 = vpack.c.bf16 %v360_v48, %v352_v47  ;;  %v355_v56 = vld [vmem:[%s7797_s1 + $0x220] sm:$0xff]  ;;  %4319 = vmatprep.subr.bf16.mxu0 %v4318_v44  ;;  %v4260_v63 = vpack.c.bf16 %v359_v55, %v351_v54  ;;  %v306_v44 = vld [vmem:[%s7797_s1 + $0x98] sm:$0xff]  ;;  %v4276_v47 = vpack.c.bf16 %v297_v40, %v289_v39 }
  0x20   : > { %v364_v50 = vld [vmem:[%s7797_s1 + $0x268] sm:$0xff]  ;;  %v363_v58 = vld [vmem:[%s7797_s1 + $0x260] sm:$0xff]  ;;  %4321 = vmatpush1.bf16.msra.mxu0 %v4320_v52  ;;  %v305_v51 = vld [vmem:[%s7797_s1 + $0x90] sm:$0xff] }
  0x21   : > { %v4322_v57 = vpack.c.bf16 %v364_v50, %v356_v49  ;;  %v368_v59 = vld [vmem:[%s7797_s1 + $0x288] sm:$0xff]  ;;  %4259 = vmatprep.subr.bf16.mxu1 %v4258_v53  ;;  %v4324_v0 = vpack.c.bf16 %v363_v58, %v355_v56  ;;  %v367_v2 = vld [vmem:[%s7797_s1 + $0x280] sm:$0xff]  ;;  %v313_v52 = vld [vmem:[%s7797_s1 + $0xd0] sm:$0xff]  ;;  %v4278_v53 = vpack.c.bf16 %v314_v45, %v306_v44 }
  0x22   : > { %v376_v60 = vld [vmem:[%s7797_s1 + $0x2c8] sm:$0xff]  ;;  %v375_v3 = vld [vmem:[%s7797_s1 + $0x2c0] sm:$0xff]  ;;  %4261 = vmatpush1.bf16.msra.mxu1 %v4260_v63  ;;  %v330_v58 = vld [vmem:[%s7797_s1 + $0x158] sm:$0xff] }
  0x23   : > { %v372_v61 = vld [vmem:[%s7797_s1 + $0x2a8] sm:$0xff]  ;;  %v4262_v1 = vpack.c.bf16 %v376_v60, %v368_v59  ;;  %v371_v4 = vld [vmem:[%s7797_s1 + $0x2a0] sm:$0xff]  ;;  %4323 = vmatprep.subr.bf16.mxu0 %v4322_v57  ;;  %v4264_v12 = vpack.c.bf16 %v375_v3, %v367_v2  ;;  %v322_v57 = vld [vmem:[%s7797_s1 + $0x118] sm:$0xff]  ;;  %v4280_v60 = vpack.c.bf16 %v313_v52, %v305_v51 }
  0x24   : > { %v380_v62 = vld [vmem:[%s7797_s1 + $0x2e8] sm:$0xff]  ;;  %v379_v6 = vld [vmem:[%s7797_s1 + $0x2e0] sm:$0xff]  ;;  %4325 = vmatpush1.bf16.msra.mxu0 %v4324_v0  ;;  %v321_v0 = vld [vmem:[%s7797_s1 + $0x110] sm:$0xff]  ;;  %v4282_v2 = vpack.c.bf16 %v330_v58, %v322_v57 }
  0x25   : > { %v4326_v5 = vpack.c.bf16 %v380_v62, %v372_v61  ;;  %v384_v8 = vld [vmem:[%s7797_s1 + $0x308] sm:$0xff]  ;;  %4263 = vmatprep.subr.bf16.mxu1 %v4262_v1  ;;  %v4328_v13 = vpack.c.bf16 %v379_v6, %v371_v4  ;;  %v383_v15 = vld [vmem:[%s7797_s1 + $0x300] sm:$0xff]  ;;  %v329_v1 = vld [vmem:[%s7797_s1 + $0x150] sm:$0xff] }
  0x26   : > { %v392_v9 = vld [vmem:[%s7797_s1 + $0x348] sm:$0xff]  ;;  %v391_v16 = vld [vmem:[%s7797_s1 + $0x340] sm:$0xff]  ;;  %4265 = vmatpush1.bf16.msra.mxu1 %v4264_v12  ;;  %v338_v6 = vld [vmem:[%s7797_s1 + $0x198] sm:$0xff] }
  0x27   : > { %v388_v10 = vld [vmem:[%s7797_s1 + $0x328] sm:$0xff]  ;;  %v4266_v14 = vpack.c.bf16 %v392_v9, %v384_v8  ;;  %v387_v17 = vld [vmem:[%s7797_s1 + $0x320] sm:$0xff]  ;;  %4327 = vmatprep.subr.bf16.mxu0 %v4326_v5  ;;  %v4268_v24 = vpack.c.bf16 %v391_v16, %v383_v15  ;;  %v346_v8 = vld [vmem:[%s7797_s1 + $0x1d8] sm:$0xff] }
  0x28   : > { %v396_v11 = vld [vmem:[%s7797_s1 + $0x368] sm:$0xff]  ;;  %v395_v19 = vld [vmem:[%s7797_s1 + $0x360] sm:$0xff]  ;;  %4329 = vmatpush1.bf16.msra.mxu0 %v4328_v13  ;;  %v6194_v9 = vld [vmem:[%s6100_s17 + $0x10] sm:$0xff]  ;;  %v4286_v16 = vpack.c.bf16 %v346_v8, %v338_v6 }
  0x29   : > { %v4330_v18 = vpack.c.bf16 %v396_v11, %v388_v10  ;;  %v400_v20 = vld [vmem:[%s7797_s1 + $0x388] sm:$0xff]  ;;  %4267 = vmatprep.subr.bf16.mxu1 %v4266_v14  ;;  %v4332_v25 = vpack.c.bf16 %v395_v19, %v387_v17  ;;  %v399_v27 = vld [vmem:[%s7797_s1 + $0x380] sm:$0xff]  ;;  %v4284_v10 = vpack.c.bf16 %v329_v1, %v321_v0  ;;  %v337_v14 = vld [vmem:[%s7797_s1 + $0x190] sm:$0xff] }
  0x2a   : > { %v408_v21 = vld [vmem:[%s7797_s1 + $0x3c8] sm:$0xff]  ;;  %v407_v28 = vld [vmem:[%s7797_s1 + $0x3c0] sm:$0xff]  ;;  %4269 = vmatpush1.bf16.msra.mxu1 %v4268_v24  ;;  %v345_v15 = vld [vmem:[%s7797_s1 + $0x1d0] sm:$0xff] }
  0x2b   : > { %v404_v22 = vld [vmem:[%s7797_s1 + $0x3a8] sm:$0xff]  ;;  %v4270_v26 = vpack.c.bf16 %v408_v21, %v400_v20  ;;  %v403_v29 = vld [vmem:[%s7797_s1 + $0x3a0] sm:$0xff]  ;;  %4331 = vmatprep.subr.bf16.mxu0 %v4330_v18  ;;  %v4272_v36 = vpack.c.bf16 %v407_v28, %v399_v27  ;;  %v354_v20 = vld [vmem:[%s7797_s1 + $0x218] sm:$0xff] }
  0x2c   : > { %v412_v23 = vld [vmem:[%s7797_s1 + $0x3e8] sm:$0xff]  ;;  %v411_v31 = vld [vmem:[%s7797_s1 + $0x3e0] sm:$0xff]  ;;  %4333 = vmatpush1.bf16.msra.mxu0 %v4332_v25  ;;  %v362_v21 = vld [vmem:[%s7797_s1 + $0x258] sm:$0xff] }
  0x2d   : > { %v4334_v30 = vpack.c.bf16 %v412_v23, %v404_v22  ;;  %v974_v34 = vld [vmem:[%s7798_s2 + $0x8] sm:$0xff]  ;;  %4271 = vmatprep.subr.bf16.mxu1 %v4270_v26  ;;  %v4336_v37 = vpack.c.bf16 %v411_v31, %v403_v29  ;;  %v973_v42 = vld [vmem:[%s7798_s2] sm:$0xff]  ;;  %v6231_v22 = vld [vmem:[%s6100_s17 + $0x18] sm:$0xff]  ;;  %v4288_v23 = vpack.c.bf16 %v345_v15, %v337_v14  ;;  %v4290_v29 = vpack.c.bf16 %v362_v21, %v354_v20 }
  0x2e   : > { %v978_v35 = vld [vmem:[%s7798_s2 + $0x28] sm:$0xff]  ;;  %v977_v43 = vld [vmem:[%s7798_s2 + $0x20] sm:$0xff]  ;;  %4273 = vmatpush1.bf16.msra.mxu1 %v4272_v36  ;;  %v353_v27 = vld [vmem:[%s7797_s1 + $0x210] sm:$0xff] }
  0x2f   : > { %4335 = vmatprep.subr.bf16.mxu0 %v4334_v30  ;;  %v6108_v41 = vpack.c.bf16 %v978_v35, %v974_v34  ;;  %v6123_v46 = vld [vmem:[%s6100_s17] sm:$0xff]  ;;  %v982_v48 = vld [vmem:[%s7798_s2 + $0x48] sm:$0xff]  ;;  %4275 = vmatprep.subr.bf16.mxu1 %v4274_v38  ;;  %v6131_v50 = vpack.c.bf16 %v977_v43, %v973_v42  ;;  %v361_v28 = vld [vmem:[%s7797_s1 + $0x250] sm:$0xff] }
  0x30   : > { %v986_v49 = vld [vmem:[%s7798_s2 + $0x68] sm:$0xff]  ;;  %4337 = vmatpush1.bf16.msra.mxu0 %v4336_v37  ;;  %v981_v54 = vld [vmem:[%s7798_s2 + $0x40] sm:$0xff]  ;;  %v370_v33 = vld [vmem:[%s7797_s1 + $0x298] sm:$0xff]  ;;  %v4292_v36 = vpack.c.bf16 %v361_v28, %v353_v27 }
  0x31   : > { %4371 = vmatprep.subr.bf16.mxu0 %v6108_v41  ;;  %v985_v55 = vld [vmem:[%s7798_s2 + $0x60] sm:$0xff]  ;;  %522 = vmatmul.mubr.f32.vlgmr.msra.gmra.mrb[0].mxu1 %v6123_v46  ;;  %v6147_v56 = vpack.c.bf16 %v986_v49, %v982_v48  ;;  %v6157_v59 = vld [vmem:[%s6100_s17 + $0x8] sm:$0xff]  ;;  %v378_v34 = vld [vmem:[%s7797_s1 + $0x2d8] sm:$0xff] }
  0x32   : > { %4277 = vmatpush1.bf16.msra.mxu1 %v4276_v47  ;;  %v990_v61 = vld [vmem:[%s7798_s2 + $0x88] sm:$0xff]  ;;  %527 = vmatprep.mubr.f32.mxu1 %v7804_v7  ;;  %v6167_v63 = vpack.c.bf16 %v985_v55, %v981_v54  ;;  %v989_v3 = vld [vmem:[%s7798_s2 + $0x80] sm:$0xff]  ;;  %v369_v40 = vld [vmem:[%s7797_s1 + $0x290] sm:$0xff]  ;;  %v4294_v43 = vpack.c.bf16 %v378_v34, %v370_v33 }
  0x33   : > { %748 = vmatmul.mubr.f32.vlgmr.msra.gmra.mrb[0].mxu0 %v6123_v46  ;;  %v994_v62 = vld [vmem:[%s7798_s2 + $0xa8] sm:$0xff]  ;;  %4279 = vmatprep.subr.bf16.mxu1 %v4278_v53  ;;  %v993_v4 = vld [vmem:[%s7798_s2 + $0xa0] sm:$0xff]  ;;  %v377_v42 = vld [vmem:[%s7797_s1 + $0x2d0] sm:$0xff] }
  0x34   : > { %4373 = vmatpush1.bf16.msra.mxu0 %v6131_v50  ;;  %753 = vmatprep.mubr.f32.mxu0 %v7804_v7  ;;  %v6184_v5 = vpack.c.bf16 %v994_v62, %v990_v61  ;;  %v998_v11 = vld [vmem:[%s7798_s2 + $0xc8] sm:$0xff]  ;;  %v6204_v13 = vpack.c.bf16 %v993_v4, %v989_v3  ;;  %v997_v17 = vld [vmem:[%s7798_s2 + $0xc0] sm:$0xff]  ;;  %v386_v48 = vld [vmem:[%s7797_s1 + $0x318] sm:$0xff]  ;;  %v4296_v52 = vpack.c.bf16 %v377_v42, %v369_v40 }
  0x35   : > { %528 = vmatmul.mubr.f32.gmra.mrb[2].mxu1 %v6157_v59  ;;  %4375 = vmatprep.subr.bf16.mxu0 %v6147_v56  ;;  %v1002_v12 = vld [vmem:[%s7798_s2 + $0xe8] sm:$0xff]  ;;  %v1001_v18 = vld [vmem:[%s7798_s2 + $0xe0] sm:$0xff]  ;;  %v394_v49 = vld [vmem:[%s7797_s1 + $0x358] sm:$0xff] }
  0x36   : > { %7869 = vst [vmem:[#allocation4_spill] sm:$0xff] %v6184_v5  ;;  %4281 = vmatpush1.bf16.msra.mxu1 %v4280_v60  ;;  %533 = vmatprep.mubr.f32.mxu1 %v7804_v7  ;;  %7870 = vst [vmem:[#allocation5_spill] sm:$0xff] %v6204_v13  ;;  %v6221_v19 = vpack.c.bf16 %v1002_v12, %v998_v11  ;;  %v1006_v24 = vld [vmem:[%s7798_s2 + $0x108] sm:$0xff]  ;;  %v6241_v26 = vpack.c.bf16 %v1001_v18, %v997_v17  ;;  %v1005_v30 = vld [vmem:[%s7798_s2 + $0x100] sm:$0xff] }
  0x37   : > { %754 = vmatmul.mubr.f32.gmra.mrb[2].mxu0 %v6157_v59  ;;  %4283 = vmatprep.subr.bf16.mxu1 %v4282_v2  ;;  %v1010_v25 = vld [vmem:[%s7798_s2 + $0x128] sm:$0xff]  ;;  %v1009_v31 = vld [vmem:[%s7798_s2 + $0x120] sm:$0xff]  ;;  %v385_v57 = vld [vmem:[%s7797_s1 + $0x310] sm:$0xff]  ;;  %v4298_v60 = vpack.c.bf16 %v394_v49, %v386_v48 }
  0x38   : > { %4377 = vmatpush1.bf16.msra.mxu0 %v6167_v63  ;;  %759 = vmatprep.mubr.f32.mxu0 %v7804_v7  ;;  %7871 = vst [vmem:[#allocation6_spill] sm:$0xff] %v6221_v19  ;;  %7872 = vst [vmem:[#allocation7_spill] sm:$0xff] %v6241_v26  ;;  %v6258_v32 = vpack.c.bf16 %v1010_v25, %v1006_v24  ;;  %v6268_v35 = vld [vmem:[%s6100_s17 + $0x20] sm:$0xff]  ;;  %v1014_v37 = vld [vmem:[%s7798_s2 + $0x148] sm:$0xff]  ;;  %v6278_v39 = vpack.c.bf16 %v1009_v31, %v1005_v30 }
  0x39   : > { %534 = vmatmul.mubr.f32.gmra.mrb[4].mxu1 %v6194_v9  ;;  %4379 = vmatprep.subr.bf16.mxu0 %v6184_v5  ;;  %v1018_v38 = vld [vmem:[%s7798_s2 + $0x168] sm:$0xff]  ;;  %v1013_v44 = vld [vmem:[%s7798_s2 + $0x140] sm:$0xff]  ;;  %v393_v58 = vld [vmem:[%s7797_s1 + $0x350] sm:$0xff] }
  0x3a   : > { %4285 = vmatpush1.bf16.msra.mxu1 %v4284_v10  ;;  %539 = vmatprep.mubr.f32.mxu1 %v7804_v7  ;;  %7873 = vst [vmem:[#allocation8_spill] sm:$0xff] %v6258_v32  ;;  %7874 = vst [vmem:[#allocation9_spill] sm:$0xff] %v6278_v39  ;;  %v1017_v45 = vld [vmem:[%s7798_s2 + $0x160] sm:$0xff]  ;;  %v6295_v47 = vpack.c.bf16 %v1018_v38, %v1014_v37  ;;  %v6305_v51 = vld [vmem:[%s6100_s17 + $0x28] sm:$0xff]  ;;  %v4300_v4 = vpack.c.bf16 %v393_v58, %v385_v57 }
  0x3b   : > { %760 = vmatmul.mubr.f32.gmra.mrb[4].mxu0 %v6194_v9  ;;  %4287 = vmatprep.subr.bf16.mxu1 %v4286_v16  ;;  %v1022_v53 = vld [vmem:[%s7798_s2 + $0x188] sm:$0xff]  ;;  %v6315_v55 = vpack.c.bf16 %v1017_v45, %v1013_v44  ;;  %v1021_v61 = vld [vmem:[%s7798_s2 + $0x180] sm:$0xff]  ;;  %v402_v1 = vld [vmem:[%s7797_s1 + $0x398] sm:$0xff] }
  0x3c   : > { %4381 = vmatpush1.bf16.msra.mxu0 %v6204_v13  ;;  %765 = vmatprep.mubr.f32.mxu0 %v7804_v7  ;;  %7875 = vst [vmem:[#allocation10_spill] sm:$0xff] %v6295_v47  ;;  %v1026_v54 = vld [vmem:[%s7798_s2 + $0x1a8] sm:$0xff]  ;;  %v1025_v62 = vld [vmem:[%s7798_s2 + $0x1a0] sm:$0xff]  ;;  %v410_v2 = vld [vmem:[%s7797_s1 + $0x3d8] sm:$0xff] }
  0x3d   : > { %540 = vmatmul.mubr.f32.gmra.mrb[6].mxu1 %v6231_v22  ;;  %4383 = vmatprep.subr.bf16.mxu0 %v6221_v19  ;;  %7876 = vst [vmem:[#allocation11_spill] sm:$0xff] %v6315_v55  ;;  %v6332_v0 = vpack.c.bf16 %v1026_v54, %v1022_v53  ;;  %v6342_v3 = vld [vmem:[%s6100_s17 + $0x30] sm:$0xff]  ;;  %v1030_v6 = vld [vmem:[%s7798_s2 + $0x1c8] sm:$0xff]  ;;  %v6352_v10 = vpack.c.bf16 %v1025_v62, %v1021_v61  ;;  %v1029_v15 = vld [vmem:[%s7798_s2 + $0x1c0] sm:$0xff] }
  0x3e   : > { %4289 = vmatpush1.bf16.msra.mxu1 %v4288_v23  ;;  %545 = vmatprep.mubr.f32.mxu1 %v7804_v7  ;;  %v1034_v8 = vld [vmem:[%s7798_s2 + $0x1e8] sm:$0xff]  ;;  %v401_v11 = vld [vmem:[%s7797_s1 + $0x390] sm:$0xff]  ;;  %v4302_v14 = vpack.c.bf16 %v410_v2, %v402_v1  ;;  %v1033_v16 = vld [vmem:[%s7798_s2 + $0x1e0] sm:$0xff] }
  0x3f   : > { %766 = vmatmul.mubr.f32.gmra.mrb[6].mxu0 %v6231_v22  ;;  %4291 = vmatprep.subr.bf16.mxu1 %v4290_v29  ;;  %7877 = vst [vmem:[#allocation12_spill] sm:$0xff] %v6332_v0  ;;  %7878 = vst [vmem:[#allocation13_spill] sm:$0xff] %v6352_v10  ;;  %v409_v12 = vld [vmem:[%s7797_s1 + $0x3d0] sm:$0xff]  ;;  %v6369_v17 = vpack.c.bf16 %v1034_v8, %v1030_v6  ;;  %v294_v18 = vld [vmem:[%s7797_s1 + $0x38] sm:$0xff]  ;;  %v6389_v27 = vpack.c.bf16 %v1033_v16, %v1029_v15 }
  0x40   : > { %4385 = vmatpush1.bf16.msra.mxu0 %v6241_v26  ;;  %771 = vmatprep.mubr.f32.mxu0 %v7804_v7  ;;  %v302_v20 = vld [vmem:[%s7797_s1 + $0x78] sm:$0xff]  ;;  %v4304_v23 = vpack.c.bf16 %v409_v12, %v401_v11  ;;  %v1038_v24 = vld [vmem:[%s7799_s3 + $0x8] sm:$0xff]  ;;  %v293_v28 = vld [vmem:[%s7797_s1 + $0x30] sm:$0xff] }
  0x41   : > { %546 = vmatmul.mubr.f32.gmra.mrb[8].mxu1 %v6268_v35  ;;  %4387 = vmatprep.subr.bf16.mxu0 %v6258_v32  ;;  %7879 = vst [vmem:[#allocation14_spill] sm:$0xff] %v6369_v17  ;;  %v6379_v21 = vld [vmem:[%s6100_s17 + $0x38] sm:$0xff]  ;;  %v1042_v25 = vld [vmem:[%s7799_s3 + $0x28] sm:$0xff]  ;;  %7880 = vst [vmem:[#allocation15_spill] sm:$0xff] %v6389_v27  ;;  %v4338_v30 = vpack.c.bf16 %v302_v20, %v294_v18 }
  0x42   : > { %4293 = vmatpush1.bf16.msra.mxu1 %v4292_v36  ;;  %551 = vmatprep.mubr.f32.mxu1 %v7804_v7  ;;  %v301_v29 = vld [vmem:[%s7797_s1 + $0x70] sm:$0xff]  ;;  %v310_v31 = vld [vmem:[%s7797_s1 + $0xb8] sm:$0xff]  ;;  %v6406_v34 = vpack.c.bf16 %v1042_v25, %v1038_v24  ;;  %v1037_v36 = vld [vmem:[%s7799_s3] sm:$0xff] }
  0x43   : > { %772 = vmatmul.mubr.f32.gmra.mrb[8].mxu0 %v6268_v35  ;;  %4295 = vmatprep.subr.bf16.mxu1 %v4294_v43  ;;  %v318_v33 = vld [vmem:[%s7797_s1 + $0xf8] sm:$0xff]  ;;  %v1041_v37 = vld [vmem:[%s7799_s3 + $0x20] sm:$0xff]  ;;  %v4340_v38 = vpack.c.bf16 %v301_v29, %v293_v28  ;;  %v1046_v40 = vld [vmem:[%s7799_s3 + $0x48] sm:$0xff] }
  0x44   : > { %4389 = vmatpush1.bf16.msra.mxu0 %v6278_v39  ;;  %777 = vmatprep.mubr.f32.mxu0 %v7804_v7  ;;  %7881 = vst [vmem:[#allocation16_spill] sm:$0xff] %v6406_v34  ;;  %v1050_v42 = vld [vmem:[%s7799_s3 + $0x68] sm:$0xff]  ;;  %v4342_v43 = vpack.c.bf16 %v318_v33, %v310_v31  ;;  %v309_v44 = vld [vmem:[%s7797_s1 + $0xb0] sm:$0xff]  ;;  %v326_v48 = vld [vmem:[%s7797_s1 + $0x138] sm:$0xff] }
  0x45   : > { %552 = vmatmul.mubr.f32.gmra.mrb[10].mxu1 %v6305_v51  ;;  %4391 = vmatprep.subr.bf16.mxu0 %v6295_v47  ;;  %v317_v45 = vld [vmem:[%s7797_s1 + $0xf0] sm:$0xff]  ;;  %v334_v49 = vld [vmem:[%s7797_s1 + $0x178] sm:$0xff]  ;;  %v6440_v53 = vpack.c.bf16 %v1050_v42, %v1046_v40  ;;  %v1045_v54 = vld [vmem:[%s7799_s3 + $0x40] sm:$0xff] }
  0x46   : > { %4297 = vmatpush1.bf16.msra.mxu1 %v4296_v52  ;;  %557 = vmatprep.mubr.f32.mxu1 %v7804_v7  ;;  %v6436_v52 = vpack.c.bf16 %v1041_v37, %v1037_v36  ;;  %v1049_v57 = vld [vmem:[%s7799_s3 + $0x60] sm:$0xff]  ;;  %v4344_v58 = vpack.c.bf16 %v317_v45, %v309_v44  ;;  %v1058_v61 = vld [vmem:[%s7799_s3 + $0xa8] sm:$0xff]  ;;  %v4346_v62 = vpack.c.bf16 %v334_v49, %v326_v48  ;;  %v325_v1 = vld [vmem:[%s7797_s1 + $0x130] sm:$0xff] }
  0x47   : > { %778 = vmatmul.mubr.f32.gmra.mrb[10].mxu0 %v6305_v51  ;;  %4299 = vmatprep.subr.bf16.mxu1 %v4298_v60  ;;  %v1054_v60 = vld [vmem:[%s7799_s3 + $0x88] sm:$0xff]  ;;  %v333_v2 = vld [vmem:[%s7797_s1 + $0x170] sm:$0xff]  ;;  %v350_v6 = vld [vmem:[%s7797_s1 + $0x1f8] sm:$0xff]  ;;  %v6469_v8 = vpack.c.bf16 %v1049_v57, %v1045_v54 }
  0x48   : > { %4393 = vmatpush1.bf16.msra.mxu0 %v6315_v55  ;;  %783 = vmatprep.mubr.f32.mxu0 %v7804_v7  ;;  %v6474_v11 = vpack.c.bf16 %v1058_v61, %v1054_v60  ;;  %v1053_v12 = vld [vmem:[%s7799_s3 + $0x80] sm:$0xff]  ;;  %v4348_v15 = vpack.c.bf16 %v333_v2, %v325_v1  ;;  %v1062_v16 = vld [vmem:[%s7799_s3 + $0xc8] sm:$0xff]  ;;  %v349_v24 = vld [vmem:[%s7797_s1 + $0x1f0] sm:$0xff] }
  0x49   : > { %558 = vmatmul.mubr.f32.gmra.mrb[12].mxu1 %v6342_v3  ;;  %4395 = vmatprep.subr.bf16.mxu0 %v6332_v0  ;;  %v1066_v18 = vld [vmem:[%s7799_s3 + $0xe8] sm:$0xff]  ;;  %v358_v25 = vld [vmem:[%s7797_s1 + $0x238] sm:$0xff]  ;;  %v1061_v31 = vld [vmem:[%s7799_s3 + $0xc0] sm:$0xff] }
  0x4a   : > { %4301 = vmatpush1.bf16.msra.mxu1 %v4300_v4  ;;  %563 = vmatprep.mubr.f32.mxu1 %v7804_v7  ;;  %v342_v4 = vld [vmem:[%s7797_s1 + $0x1b8] sm:$0xff]  ;;  %v1065_v33 = vld [vmem:[%s7799_s3 + $0xe0] sm:$0xff]  ;;  %v1070_v37 = vld [vmem:[%s7799_s3 + $0x108] sm:$0xff] }
  0x4b   : > { %784 = vmatmul.mubr.f32.gmra.mrb[12].mxu0 %v6342_v3  ;;  %4303 = vmatprep.subr.bf16.mxu1 %v4302_v14  ;;  %v1057_v14 = vld [vmem:[%s7799_s3 + $0xa0] sm:$0xff]  ;;  %v4350_v20 = vpack.c.bf16 %v350_v6, %v342_v4  ;;  %v366_v28 = vld [vmem:[%s7797_s1 + $0x278] sm:$0xff]  ;;  %v357_v42 = vld [vmem:[%s7797_s1 + $0x230] sm:$0xff]  ;;  %v6534_v48 = vpack.c.bf16 %v1065_v33, %v1061_v31 }
  0x4c   : > { %4397 = vmatpush1.bf16.msra.mxu0 %v6352_v10  ;;  %789 = vmatprep.mubr.f32.mxu0 %v7804_v7  ;;  %v6502_v29 = vpack.c.bf16 %v1057_v14, %v1053_v12  ;;  %v4354_v40 = vpack.c.bf16 %v366_v28, %v358_v25  ;;  %v374_v44 = vld [vmem:[%s7797_s1 + $0x2b8] sm:$0xff]  ;;  %v1069_v54 = vld [vmem:[%s7799_s3 + $0x100] sm:$0xff]  ;;  %v1078_v60 = vld [vmem:[%s7799_s3 + $0x148] sm:$0xff] }
  0x4d   : > { %564 = vmatmul.mubr.f32.gmra.mrb[14].mxu1 %v6379_v21  ;;  %4399 = vmatprep.subr.bf16.mxu0 %v6369_v17  ;;  %v382_v45 = vld [vmem:[%s7797_s1 + $0x2f8] sm:$0xff]  ;;  %v1073_v57 = vld [vmem:[%s7799_s3 + $0x120] sm:$0xff]  ;;  %v1082_v61 = vld [vmem:[%s7799_s3 + $0x168] sm:$0xff] }
  0x4e   : > { %4305 = vmatpush1.bf16.msra.mxu1 %v4304_v23  ;;  %634 = vmatprep.mubr.f32.mxu1 %v7804_v7  ;;  %v341_v23 = vld [vmem:[%s7797_s1 + $0x1b0] sm:$0xff]  ;;  %v390_v4 = vld [vmem:[%s7797_s1 + $0x338] sm:$0xff]  ;;  %v6566_v12 = vpack.c.bf16 %v1073_v57, %v1069_v54  ;;  %v6570_v14 = vpack.c.bf16 %v1082_v61, %v1078_v60 }
  0x4f   : > { %790 = vmatmul.mubr.f32.gmra.mrb[14].mxu0 %v6379_v21  ;;  %4339 = vmatprep.subr.bf16.mxu1 %v4338_v30  ;;  %v6506_v30 = vpack.c.bf16 %v1066_v18, %v1062_v16  ;;  %v4352_v36 = vpack.c.bf16 %v349_v24, %v341_v23  ;;  %v373_v1 = vld [vmem:[%s7797_s1 + $0x2b0] sm:$0xff]  ;;  %v398_v6 = vld [vmem:[%s7797_s1 + $0x378] sm:$0xff]  ;;  %v1081_v16 = vld [vmem:[%s7799_s3 + $0x160] sm:$0xff] }
  0x50   : > { %4401 = vmatpush1.bf16.msra.mxu0 %v6389_v27  ;;  %1169 = vmatprep.mubr.f32.mxu0 %v7804_v7  ;;  %v381_v2 = vld [vmem:[%s7797_s1 + $0x2f0] sm:$0xff]  ;;  %v1090_v23 = vld [vmem:[%s7799_s3 + $0x1a8] sm:$0xff]  ;;  %v4362_v24 = vpack.c.bf16 %v398_v6, %v390_v4  ;;  %v406_v31 = vld [vmem:[%s7797_s1 + $0x3b8] sm:$0xff] }
  0x51   : > { %635 = vmatmul.mubr.f32.vlgmr.msra.gmra.mrb[16].mxu1 %v6123_v46  ;;  %4435 = vmatprep.subr.bf16.mxu0 %v6406_v34  ;;  %v4360_v18 = vpack.c.bf16 %v381_v2, %v373_v1  ;;  %v389_v25 = vld [vmem:[%s7797_s1 + $0x330] sm:$0xff]  ;;  %v414_v33 = vld [vmem:[%s7797_s1 + $0x3f8] sm:$0xff]  ;;  %v1093_v1 = vld [vmem:[%s7799_s3 + $0x1c0] sm:$0xff] }
  0x52   : > { %4341 = vmatpush1.bf16.msra.mxu1 %v4340_v38  ;;  %640 = vmatprep.mubr.f32.mxu1 %v7804_v7  ;;  %v1074_v38 = vld [vmem:[%s7799_s3 + $0x128] sm:$0xff]  ;;  %v397_v28 = vld [vmem:[%s7797_s1 + $0x370] sm:$0xff]  ;;  %v980_v60 = vld [vmem:[%s7798_s2 + $0x38] sm:$0xff] }
  0x53   : > { %1170 = vmatmul.mubr.f32.vlgmr.msra.gmra.mrb[16].mxu0 %v7804_v7  ;;  %4343 = vmatprep.subr.bf16.mxu1 %v4342_v43  ;;  %v365_v43 = vld [vmem:[%s7797_s1 + $0x270] sm:$0xff]  ;;  %v6538_v49 = vpack.c.bf16 %v1074_v38, %v1070_v37  ;;  %v1085_v38 = vld [vmem:[%s7799_s3 + $0x180] sm:$0xff] }
  0x54   : > { %4437 = vmatpush1.bf16.msra.mxu0 %v6436_v52  ;;  %1319 = vmatprep.mubr.f32.mxu0 %v7804_v7  ;;  %v405_v54 = vld [vmem:[%s7797_s1 + $0x3b0] sm:$0xff]  ;;  %v1097_v2 = vld [vmem:[%s7799_s3 + $0x1e0] sm:$0xff] }
  0x55   : > { %641 = vmatmul.mubr.f32.gmra.mrb[18].mxu1 %v6157_v59  ;;  %4439 = vmatprep.subr.bf16.mxu0 %v6440_v53  ;;  %v413_v57 = vld [vmem:[%s7797_s1 + $0x3f0] sm:$0xff] }
  0x56   : > { %4345 = vmatpush1.bf16.msra.mxu1 %v4344_v58  ;;  %646 = vmatprep.mubr.f32.mxu1 %v7804_v7  ;;  %v4356_v58 = vpack.c.bf16 %v365_v43, %v357_v42  ;;  %v4364_v42 = vpack.c.bf16 %v397_v28, %v389_v25  ;;  %v1094_v43 = vld [vmem:[%s7799_s3 + $0x1c8] sm:$0xff]  ;;  %v4368_v4 = vpack.c.bf16 %v413_v57, %v405_v54  ;;  %v983_v28 = vld [vmem:[%s7798_s2 + $0x50] sm:$0xff] }
  0x57   : > { %4347 = vmatprep.subr.bf16.mxu1 %v4346_v62  ;;  %v4358_v62 = vpack.c.bf16 %v382_v45, %v374_v44  ;;  %v1098_v44 = vld [vmem:[%s7799_s3 + $0x1e8] sm:$0xff]  ;;  %v4366_v45 = vpack.c.bf16 %v414_v33, %v406_v31  ;;  %v987_v31 = vld [vmem:[%s7798_s2 + $0x70] sm:$0xff]  ;;  %v992_v33 = vld [vmem:[%s7798_s2 + $0x98] sm:$0xff] }
  0x58   : > { %4441 = vmatpush1.bf16.msra.mxu0 %v6469_v8 }
  0x59   : > { %647 = vmatmul.mubr.f32.gmra.mrb[20].mxu1 %v6194_v9  ;;  %4443 = vmatprep.subr.bf16.mxu0 %v6474_v11 }
  0x5a   : > { %4349 = vmatpush1.bf16.msra.mxu1 %v4348_v15  ;;  %652 = vmatprep.mubr.f32.mxu1 %v7804_v7  ;;  %v1077_v15 = vld [vmem:[%s7799_s3 + $0x140] sm:$0xff] }
  0x5b   : > { %4351 = vmatprep.subr.bf16.mxu1 %v4350_v20  ;;  %v1086_v20 = vld [vmem:[%s7799_s3 + $0x188] sm:$0xff] }
  0x5c   : > { %4445 = vmatpush1.bf16.msra.mxu0 %v6502_v29  ;;  %v6602_v37 = vpack.c.bf16 %v1090_v23, %v1086_v20  ;;  %v988_v20 = vld [vmem:[%s7798_s2 + $0x78] sm:$0xff]  ;;  %v6658_v23 = vpack.c.bf16 %v1097_v2, %v1093_v1 }
  0x5d   : > { %653 = vmatmul.mubr.f32.gmra.mrb[22].mxu1 %v6231_v22  ;;  %4447 = vmatprep.subr.bf16.mxu0 %v6506_v30  ;;  %v1012_v1 = vld [vmem:[%s7798_s2 + $0x138] sm:$0xff] }
  0x5e   : > { %4353 = vmatpush1.bf16.msra.mxu1 %v4352_v36  ;;  %658 = vmatprep.mubr.f32.mxu1 %v7804_v7  ;;  %v6598_v36 = vpack.c.bf16 %v1081_v16, %v1077_v15  ;;  %v975_v15 = vld [vmem:[%s7798_s2 + $0x10] sm:$0xff] }
  0x5f   : > { %4355 = vmatprep.subr.bf16.mxu1 %v4354_v40  ;;  %v1089_v40 = vld [vmem:[%s7799_s3 + $0x1a0] sm:$0xff]  ;;  %v979_v16 = vld [vmem:[%s7798_s2 + $0x30] sm:$0xff] }
  0x60   : > { %4449 = vmatpush1.bf16.msra.mxu0 %v6534_v48  ;;  %v6630_v61 = vpack.c.bf16 %v1089_v40, %v1085_v38  ;;  %v996_v38 = vld [vmem:[%s7798_s2 + $0xb8] sm:$0xff]  ;;  %v6685_v40 = vpack.c.bf16 %v987_v31, %v983_v28  ;;  %v1015_v31 = vld [vmem:[%s7798_s2 + $0x150] sm:$0xff] }
  0x61   : > { %659 = vmatmul.mubr.f32.gmra.mrb[24].mxu1 %v6268_v35  ;;  %4451 = vmatprep.subr.bf16.mxu0 %v6538_v49 }
  0x62   : > { %4357 = vmatpush1.bf16.msra.mxu1 %v4356_v58  ;;  %664 = vmatprep.mubr.f32.mxu1 %v7804_v7  ;;  %v976_v58 = vld [vmem:[%s7798_s2 + $0x18] sm:$0xff] }
  0x63   : > { %4359 = vmatprep.subr.bf16.mxu1 %v4358_v62  ;;  %v6634_v62 = vpack.c.bf16 %v1098_v44, %v1094_v43  ;;  %v6643_v6 = vpack.c.bf16 %v980_v60, %v976_v58  ;;  %v991_v43 = vld [vmem:[%s7798_s2 + $0x90] sm:$0xff]  ;;  %v1000_v44 = vld [vmem:[%s7798_s2 + $0xd8] sm:$0xff] }
  0x64   : > { %4453 = vmatpush1.bf16.msra.mxu0 %v6566_v12  ;;  %v999_v58 = vld [vmem:[%s7798_s2 + $0xd0] sm:$0xff]  ;;  %v1008_v60 = vld [vmem:[%s7798_s2 + $0x118] sm:$0xff] }
  0x65   : > { %665 = vmatmul.mubr.f32.gmra.mrb[26].mxu1 %v6305_v51  ;;  %4455 = vmatprep.subr.bf16.mxu0 %v6570_v14 }
  0x66   : > { %4361 = vmatpush1.bf16.msra.mxu1 %v4360_v18  ;;  %670 = vmatprep.mubr.f32.mxu1 %v7804_v7  ;;  %v984_v18 = vld [vmem:[%s7798_s2 + $0x58] sm:$0xff] }
  0x67   : > { %4363 = vmatprep.subr.bf16.mxu1 %v4362_v24  ;;  %v6663_v24 = vpack.c.bf16 %v979_v16, %v975_v15  ;;  %v6666_v25 = vpack.c.bf16 %v988_v20, %v984_v18  ;;  %v1007_v15 = vld [vmem:[%s7798_s2 + $0x110] sm:$0xff]  ;;  %v1016_v16 = vld [vmem:[%s7798_s2 + $0x158] sm:$0xff] }
  0x68   : > { %4457 = vmatpush1.bf16.msra.mxu0 %v6598_v36  ;;  %v1020_v18 = vld [vmem:[%s7798_s2 + $0x178] sm:$0xff] }
  0x69   : > { %671 = vmatmul.mubr.f32.gmra.mrb[28].mxu1 %v6342_v3  ;;  %4459 = vmatprep.subr.bf16.mxu0 %v6602_v37  ;;  %v6756_v28 = vpack.c.bf16 %v1020_v18, %v1016_v16 }
  0x6a   : > { %4365 = vmatpush1.bf16.msra.mxu1 %v4364_v42  ;;  %676 = vmatprep.mubr.f32.mxu1 %v7804_v7  ;;  %v6688_v42 = vpack.c.bf16 %v996_v38, %v992_v33  ;;  %v1024_v33 = vld [vmem:[%s7798_s2 + $0x198] sm:$0xff] }
  0x6b   : > { %4367 = vmatprep.subr.bf16.mxu1 %v4366_v45  ;;  %v1004_v45 = vld [vmem:[%s7798_s2 + $0xf8] sm:$0xff]  ;;  %7888 = vst [vmem:[#allocation23_spill] sm:$0xff] %v6756_v28 }
  0x6c   : > { %4461 = vmatpush1.bf16.msra.mxu0 %v6630_v61  ;;  %7882 = vst [vmem:[#allocation17_spill] sm:$0xff] %v6688_v42  ;;  %v6712_v57 = vpack.c.bf16 %v1004_v45, %v1000_v44  ;;  %v1028_v38 = vld [vmem:[%s7798_s2 + $0x1b8] sm:$0xff]  ;;  %v1023_v44 = vld [vmem:[%s7798_s2 + $0x190] sm:$0xff] }
  0x6d   : > { %677 = vmatmul.mubr.f32.gmra.mrb[30].mxu1 %v6379_v21  ;;  %4463 = vmatprep.subr.bf16.mxu0 %v6634_v62  ;;  %v1032_v45 = vld [vmem:[%s7798_s2 + $0x1d8] sm:$0xff] }
  0x6e   : > { %4369 = vmatpush1.bf16.msra.mxu1 %v4368_v4  ;;  %860 = vmatprep.mubr.f32.mxu1 %v7804_v7  ;;  %7884 = vst [vmem:[#allocation19_spill] sm:$0xff] %v6712_v57  ;;  %v6734_v4 = vpack.c.bf16 %v1012_v1, %v1008_v60  ;;  %v1031_v1 = vld [vmem:[%s7798_s2 + $0x1d0] sm:$0xff] }
  0x6f   : > { %4403 = vmatprep.subr.bf16.mxu1 %v6643_v6 }
  0x70   : > { %4465 = vmatpush1.bf16.msra.mxu0 %v6658_v23  ;;  %7886 = vst [vmem:[#allocation21_spill] sm:$0xff] %v6734_v4 }
  0x71   : > { %861 = vmatmul.mubr.f32.vlgmr.msra.gmra.mrb[32].mxu1 %v6123_v46  ;;  %4499 = vmatprep.subr.bf16.mxu0 %v6108_v41  ;;  %v995_v46 = vld [vmem:[%s7798_s2 + $0xb0] sm:$0xff] }
  0x72   : > { %4405 = vmatpush1.bf16.msra.mxu1 %v6663_v24  ;;  %866 = vmatprep.mubr.f32.mxu1 %v7804_v7  ;;  %v6709_v54 = vpack.c.bf16 %v995_v46, %v991_v43  ;;  %v6778_v46 = vpack.c.bf16 %v1028_v38, %v1024_v33  ;;  %v1052_v33 = vld [vmem:[%s7799_s3 + $0x78] sm:$0xff] }
  0x73   : > { %4407 = vmatprep.subr.bf16.mxu1 %v6666_v25  ;;  %1320 = vmatmul.mubr.f32.vlgmr.msra.gmra.mrb[14].mxu0 %v7804_v7 }
  0x74   : > { %4501 = vmatpush1.bf16.msra.mxu0 %v6131_v50  ;;  %1519 = vmatprep.mubr.f32.mxu0 %v7804_v7  ;;  %7883 = vst [vmem:[#allocation18_spill] sm:$0xff] %v6709_v54  ;;  %7890 = vst [vmem:[#allocation25_spill] sm:$0xff] %v6778_v46 }
  0x75   : > { %867 = vmatmul.mubr.f32.gmra.mrb[34].mxu1 %v6157_v59  ;;  %4503 = vmatprep.subr.bf16.mxu0 %v6147_v56  ;;  %v1003_v59 = vld [vmem:[%s7798_s2 + $0xf0] sm:$0xff] }
  0x76   : > { %4409 = vmatpush1.bf16.msra.mxu1 %v6685_v40  ;;  %872 = vmatprep.mubr.f32.mxu1 %v7804_v7  ;;  %v6731_v2 = vpack.c.bf16 %v1003_v59, %v999_v58  ;;  %v1036_v58 = vld [vmem:[%s7798_s2 + $0x1f8] sm:$0xff] }
  0x77   : > { %4411 = vmatprep.subr.bf16.mxu1 %v6688_v42  ;;  %v6800_v60 = vpack.c.bf16 %v1036_v58, %v1032_v45  ;;  %v1056_v45 = vld [vmem:[%s7799_s3 + $0x98] sm:$0xff] }
  0x78   : > { %4505 = vmatpush1.bf16.msra.mxu0 %v6167_v63  ;;  %7885 = vst [vmem:[#allocation20_spill] sm:$0xff] %v6731_v2  ;;  %v1060_v58 = vld [vmem:[%s7799_s3 + $0xb8] sm:$0xff] }
  0x79   : > { %873 = vmatmul.mubr.f32.gmra.mrb[36].mxu1 %v6194_v9  ;;  %4507 = vmatprep.subr.bf16.mxu0 %v6184_v5  ;;  %v1011_v9 = vld [vmem:[%s7798_s2 + $0x130] sm:$0xff]  ;;  %7892 = vst [vmem:[#allocation27_spill] sm:$0xff] %v6800_v60 }
  0x7a   : > { %4413 = vmatpush1.bf16.msra.mxu1 %v6709_v54  ;;  %878 = vmatprep.mubr.f32.mxu1 %v7804_v7  ;;  %v6753_v20 = vpack.c.bf16 %v1011_v9, %v1007_v15  ;;  %v1040_v15 = vld [vmem:[%s7799_s3 + $0x18] sm:$0xff] }
  0x7b   : > { %4415 = vmatprep.subr.bf16.mxu1 %v6712_v57  ;;  %v1044_v9 = vld [vmem:[%s7799_s3 + $0x38] sm:$0xff] }
  0x7c   : > { %4509 = vmatpush1.bf16.msra.mxu0 %v6204_v13  ;;  %7887 = vst [vmem:[#allocation22_spill] sm:$0xff] %v6753_v20  ;;  %v6822_v18 = vpack.c.bf16 %v1044_v9, %v1040_v15  ;;  %v1055_v15 = vld [vmem:[%s7799_s3 + $0x90] sm:$0xff] }
  0x7d   : > { %879 = vmatmul.mubr.f32.gmra.mrb[38].mxu1 %v6231_v22  ;;  %4511 = vmatprep.subr.bf16.mxu0 %v6221_v19  ;;  %v1019_v22 = vld [vmem:[%s7798_s2 + $0x170] sm:$0xff] }
  0x7e   : > { %4417 = vmatpush1.bf16.msra.mxu1 %v6731_v2  ;;  %884 = vmatprep.mubr.f32.mxu1 %v7804_v7  ;;  %v6775_v43 = vpack.c.bf16 %v1019_v22, %v1015_v31  ;;  %7894 = vst [vmem:[#allocation29_spill] sm:$0xff] %v6822_v18  ;;  %v1039_v31 = vld [vmem:[%s7799_s3 + $0x10] sm:$0xff]  ;;  %v1048_v22 = vld [vmem:[%s7799_s3 + $0x58] sm:$0xff] }
  0x7f   : > { %4419 = vmatprep.subr.bf16.mxu1 %v6734_v4  ;;  %v1059_v9 = vld [vmem:[%s7799_s3 + $0xb0] sm:$0xff] }
  0x80   : > { %4513 = vmatpush1.bf16.msra.mxu0 %v6241_v26  ;;  %7889 = vst [vmem:[#allocation24_spill] sm:$0xff] %v6775_v43 }
  0x81   : > { %885 = vmatmul.mubr.f32.gmra.mrb[40].mxu1 %v6268_v35  ;;  %4515 = vmatprep.subr.bf16.mxu0 %v6258_v32  ;;  %v1027_v35 = vld [vmem:[%s7798_s2 + $0x1b0] sm:$0xff] }
  0x82   : > { %4421 = vmatpush1.bf16.msra.mxu1 %v6753_v20  ;;  %890 = vmatprep.mubr.f32.mxu1 %v7804_v7  ;;  %v6797_v59 = vpack.c.bf16 %v1027_v35, %v1023_v44  ;;  %v6844_v44 = vpack.c.bf16 %v1052_v33, %v1048_v22  ;;  %v1047_v35 = vld [vmem:[%s7799_s3 + $0x50] sm:$0xff]  ;;  %v6881_v22 = vpack.c.bf16 %v1059_v9, %v1055_v15 }
  0x83   : > { %4423 = vmatprep.subr.bf16.mxu1 %v6756_v28 }
  0x84   : > { %4517 = vmatpush1.bf16.msra.mxu0 %v6278_v39  ;;  %7891 = vst [vmem:[#allocation26_spill] sm:$0xff] %v6797_v59 }
  0x85   : > { %891 = vmatmul.mubr.f32.gmra.mrb[42].mxu1 %v6305_v51  ;;  %4519 = vmatprep.subr.bf16.mxu0 %v6295_v47  ;;  %v1035_v51 = vld [vmem:[%s7798_s2 + $0x1f0] sm:$0xff] }
  0x86   : > { %4425 = vmatpush1.bf16.msra.mxu1 %v6775_v43  ;;  %896 = vmatprep.mubr.f32.mxu1 %v7804_v7  ;;  %v6819_v16 = vpack.c.bf16 %v1035_v51, %v1031_v1  ;;  %v6866_v51 = vpack.c.bf16 %v1060_v58, %v1056_v45  ;;  %v1072_v45 = vld [vmem:[%s7799_s3 + $0x118] sm:$0xff] }
  0x87   : > { %4427 = vmatprep.subr.bf16.mxu1 %v6778_v46  ;;  %v1076_v58 = vld [vmem:[%s7799_s3 + $0x138] sm:$0xff] }
  0x88   : > { %4521 = vmatpush1.bf16.msra.mxu0 %v6315_v55  ;;  %7893 = vst [vmem:[#allocation28_spill] sm:$0xff] %v6819_v16  ;;  %v6902_v9 = vpack.c.bf16 %v1076_v58, %v1072_v45  ;;  %v1079_v58 = vld [vmem:[%s7799_s3 + $0x150] sm:$0xff] }
  0x89   : > { %897 = vmatmul.mubr.f32.gmra.mrb[44].mxu1 %v6342_v3  ;;  %4523 = vmatprep.subr.bf16.mxu0 %v6332_v0  ;;  %v1043_v3 = vld [vmem:[%s7799_s3 + $0x30] sm:$0xff] }
  0x8a   : > { %4429 = vmatpush1.bf16.msra.mxu1 %v6797_v59  ;;  %902 = vmatprep.mubr.f32.mxu1 %v7804_v7  ;;  %v6841_v38 = vpack.c.bf16 %v1043_v3, %v1039_v31  ;;  %v1064_v31 = vld [vmem:[%s7799_s3 + $0xd8] sm:$0xff]  ;;  %v1099_v0 = vld [vmem:[%s7799_s3 + $0x1f0] sm:$0xff] }
  0x8b   : > { %4431 = vmatprep.subr.bf16.mxu1 %v6800_v60  ;;  %v1068_v3 = vld [vmem:[%s7799_s3 + $0xf8] sm:$0xff] }
  0x8c   : > { %4525 = vmatpush1.bf16.msra.mxu0 %v6352_v10  ;;  %v6884_v33 = vpack.c.bf16 %v1068_v3, %v1064_v31  ;;  %v1071_v31 = vld [vmem:[%s7799_s3 + $0x110] sm:$0xff]  ;;  %v1096_v10 = vld [vmem:[%s7799_s3 + $0x1d8] sm:$0xff] }
  0x8d   : > { %903 = vmatmul.mubr.f32.gmra.mrb[46].mxu1 %v6379_v21  ;;  %4527 = vmatprep.subr.bf16.mxu0 %v6369_v17  ;;  %v1051_v21 = vld [vmem:[%s7799_s3 + $0x70] sm:$0xff] }
  0x8e   : > { %4433 = vmatpush1.bf16.msra.mxu1 %v6819_v16  ;;  %1240 = vmatprep.mubr.f32.mxu1 %v7804_v7  ;;  %v6862_v1 = vpack.c.bf16 %v1051_v21, %v1047_v35  ;;  %v1063_v35 = vld [vmem:[%s7799_s3 + $0xd0] sm:$0xff] }
  0x8f   : > { %4467 = vmatprep.subr.bf16.mxu1 %v6822_v18  ;;  %v1067_v21 = vld [vmem:[%s7799_s3 + $0xf0] sm:$0xff] }
  0x90   : > { %4529 = vmatpush1.bf16.msra.mxu0 %v6389_v27  ;;  %v6899_v15 = vpack.c.bf16 %v1067_v21, %v1063_v35  ;;  %v1075_v3 = vld [vmem:[%s7799_s3 + $0x130] sm:$0xff]  ;;  %v1084_v35 = vld [vmem:[%s7799_s3 + $0x178] sm:$0xff] }
  0x91   : > { %1241 = vmatmul.mubr.f32.vlgmr.msra.gmra.mrb[16].mxu1 %v7804_v7  ;;  %4563 = vmatprep.subr.bf16.mxu0 %v6406_v34  ;;  %v6917_v21 = vpack.c.bf16 %v1075_v3, %v1071_v31  ;;  %v1083_v34 = vld [vmem:[%s7799_s3 + $0x170] sm:$0xff]  ;;  %v1088_v27 = vld [vmem:[%s7799_s3 + $0x198] sm:$0xff] }
  0x92   : > { %4469 = vmatpush1.bf16.msra.mxu1 %v6841_v38  ;;  %1390 = vmatprep.mubr.f32.mxu1 %v7804_v7  ;;  %v1080_v7 = vld [vmem:[%s7799_s3 + $0x158] sm:$0xff]  ;;  %v1091_v17 = vld [vmem:[%s7799_s3 + $0x1b0] sm:$0xff] }
  0x93   : > { %4471 = vmatprep.subr.bf16.mxu1 %v6844_v44  ;;  %v6920_v45 = vpack.c.bf16 %v1084_v35, %v1080_v7  ;;  %v1092_v31 = vld [vmem:[%s7799_s3 + $0x1b8] sm:$0xff]  ;;  %v6935_v7 = vpack.c.bf16 %v1083_v34, %v1079_v58  ;;  %v1087_v35 = vld [vmem:[%s7799_s3 + $0x190] sm:$0xff] }
  0x94   : > { %v6938_v3 = vpack.c.bf16 %v1092_v31, %v1088_v27  ;;  %v1100_v34 = vld [vmem:[%s7799_s3 + $0x1f8] sm:$0xff]  ;;  %v6953_v27 = vpack.c.bf16 %v1091_v17, %v1087_v35  ;;  %v1095_v31 = vld [vmem:[%s7799_s3 + $0x1d0] sm:$0xff] }
  0x95   : > { %v6956_v58 = vpack.c.bf16 %v1100_v34, %v1096_v10  ;;  %v6965_v55 = vpack.c.bf16 %v1099_v0, %v1095_v31  ;;  %v7895_v10 = vmov 0.0   ;;  %v417_v0 = vlaneseq  ;;  %v6994_v34 = vld [vmem:[%s7800_s4] sm:$0xff] }
  0x96   : > { %4473 = vmatpush1.bf16.msra.mxu1 %v6862_v1 }
  0x97   : > { %4475 = vmatprep.subr.bf16.mxu1 %v6866_v51  ;;  %v6988_v17 = vshrl.u32 %v417_v0, 7 }
  0x99   : > { %v419_v35 = vsub.s32 0, %v6988_v17 }
  0x9a   : > { %4477 = vmatpush1.bf16.msra.mxu1 %v6881_v22 }
  0x9b   : > { %4479 = vmatprep.subr.bf16.mxu1 %v6884_v33 }
  0x9e   : > { %4481 = vmatpush1.bf16.msra.mxu1 %v6899_v15 }
  0x9f   : > { %4483 = vmatprep.subr.bf16.mxu1 %v6902_v9 }
  0xa2   : > { %4485 = vmatpush1.bf16.msra.mxu1 %v6917_v21 }
  0xa3   : > { %4487 = vmatprep.subr.bf16.mxu1 %v6920_v45 }
  0xa6   : > { %4489 = vmatpush1.bf16.msra.mxu1 %v6935_v7 }
  0xa7   : > { %4491 = vmatprep.subr.bf16.mxu1 %v6938_v3 }
  0xaa   : > { %4493 = vmatpush1.bf16.msra.mxu1 %v6953_v27 }
  0xab   : > { %4495 = vmatprep.subr.bf16.mxu1 %v6956_v58 }
  0xae   : > { %4497 = vmatpush1.bf16.msra.mxu1 %v6965_v55 }
  0xaf   : > { %4531 = vmatprep.subr.bf16.mxu1 %v6643_v6 }
  0xb1   : > { %1391 = vmatmul.mubr.f32.vlgmr.msra.gmra.mrb[46].mxu1 %v7895_v10 }
  0xb2   : > { %4533 = vmatpush1.bf16.msra.mxu1 %v6663_v24  ;;  %1590 = vmatprep.mubr.f32.mxu1 %v7895_v10 }
  0xb3   : > { %4535 = vmatprep.subr.bf16.mxu1 %v6666_v25 }
  0xb6   : > { %4537 = vmatpush1.bf16.msra.mxu1 %v6685_v40 }
  0xb7   : > { %4539 = vmatprep.subr.bf16.mxu1 %v6688_v42 }
  0xba   : > { %4541 = vmatpush1.bf16.msra.mxu1 %v6709_v54 }
  0xbb   : > { %4543 = vmatprep.subr.bf16.mxu1 %v6712_v57 }
  0xbe   : > { %4545 = vmatpush1.bf16.msra.mxu1 %v6731_v2 }
  0xbf   : > { %4547 = vmatprep.subr.bf16.mxu1 %v6734_v4 }
  0xc2   : > { %4549 = vmatpush1.bf16.msra.mxu1 %v6753_v20 }
  0xc3   : > { %4551 = vmatprep.subr.bf16.mxu1 %v6756_v28 }
  0xc6   : > { %4553 = vmatpush1.bf16.msra.mxu1 %v6775_v43 }
  0xc7   : > { %4555 = vmatprep.subr.bf16.mxu1 %v6778_v46  ;;  %v423_v46 = vsub.s32 1, %v6988_v17 }
  0xca   : > { %4557 = vmatpush1.bf16.msra.mxu1 %v6797_v59 }
  0xcb   : > { %4559 = vmatprep.subr.bf16.mxu1 %v6800_v60  ;;  %v420_v60 = vrot.slane %v6994_v34, %v419_v35 }
  0xce   : > { %4561 = vmatpush1.bf16.msra.mxu1 %v6819_v16  ;;  %v424_v16 = vrot.slane %v6994_v34, %v423_v46 }
  0xcf   : > { %4595 = vmatprep.subr.bf16.mxu1 %v6822_v18 }
 0x104   : > { %v523_v31 = vpop.f32.mrb[0].mxu1 }
 0x105   : > { %v525_v59 = vpop.f32.mrb[1].mxu1 }
 0x108   : > { %v529_v43 = vpop.f32.mrb[2].mxu1 }
 0x109   : > { %v6999_v18 = vadd.f32 %v529_v43, %v420_v60  ;;  %v531_v0 = vpop.f32.mrb[3].mxu1 }
 0x10a   : > { %v7001_v28 = vadd.f32 %v531_v0, %v424_v16 }
 0x10b   : > { %7896 = vst [vmem:[#allocation30_spill] sm:$0xff] %v6999_v18 }
 0x10c   : > { %7897 = vst [vmem:[#allocation31_spill] sm:$0xff] %v7001_v28  ;;  %v535_v47 = vpop.f32.mrb[4].mxu1 }
 0x10d   : > { %v7003_v20 = vadd.f32 %v535_v47, %v420_v60  ;;  %v537_v39 = vpop.f32.mrb[5].mxu1 }
 0x10e   : > { %v7005_v4 = vadd.f32 %v537_v39, %v424_v16 }
 0x10f   : > { %7898 = vst [vmem:[#allocation32_spill] sm:$0xff] %v7003_v20 }
 0x110   : > { %7899 = vst [vmem:[#allocation33_spill] sm:$0xff] %v7005_v4  ;;  %v541_v32 = vpop.f32.mrb[6].mxu1 }
 0x111   : > { %v7007_v2 = vadd.f32 %v541_v32, %v420_v60  ;;  %v543_v26 = vpop.f32.mrb[7].mxu1 }
 0x112   : > { %v7009_v57 = vadd.f32 %v543_v26, %v424_v16 }
 0x113   : > { %7900 = vst [vmem:[#allocation34_spill] sm:$0xff] %v7007_v2 }
 0x114   : > { %7901 = vst [vmem:[#allocation35_spill] sm:$0xff] %v7009_v57  ;;  %v547_v35 = vpop.f32.mrb[8].mxu1 }
 0x115   : > { %v7011_v46 = vadd.f32 %v547_v35, %v420_v60  ;;  %v549_v43 = vpop.f32.mrb[9].mxu1 }
 0x116   : > { %v7013_v18 = vadd.f32 %v549_v43, %v424_v16  ;;  %v524_v43 = vadd.f32 %v523_v31, %v420_v60 }
 0x117   : > { %7902 = vst [vmem:[#allocation36_spill] sm:$0xff] %v7011_v46 }
 0x118   : > { %7903 = vst [vmem:[#allocation37_spill] sm:$0xff] %v7013_v18  ;;  %v553_v0 = vpop.f32.mrb[10].mxu1  ;;  %v526_v18 = vadd.f32 %v525_v59, %v424_v16 }
 0x119   : > { %v7015_v28 = vadd.f32 %v553_v0, %v420_v60  ;;  %v555_v47 = vpop.f32.mrb[11].mxu1 }
 0x11a   : > { %v7017_v20 = vadd.f32 %v555_v47, %v424_v16 }
 0x11b   : > { %7904 = vst [vmem:[#allocation38_spill] sm:$0xff] %v7015_v28 }
 0x11c   : > { %7905 = vst [vmem:[#allocation39_spill] sm:$0xff] %v7017_v20  ;;  %v559_v39 = vpop.f32.mrb[12].mxu1 }
 0x11d   : > { %v7019_v4 = vadd.f32 %v559_v39, %v420_v60  ;;  %v561_v32 = vpop.f32.mrb[13].mxu1 }
 0x11e   : > { %v7021_v2 = vadd.f32 %v561_v32, %v424_v16  ;;  %v427_v32 = vsub.s32 2, %v6988_v17 }
 0x11f   : > { %7906 = vst [vmem:[#allocation40_spill] sm:$0xff] %v7019_v4 }
 0x120   : > { %7907 = vst [vmem:[#allocation41_spill] sm:$0xff] %v7021_v2  ;;  %v565_v26 = vpop.f32.mrb[14].mxu1 }
 0x121   : > { %v7023_v57 = vadd.f32 %v565_v26, %v420_v60  ;;  %v567_v35 = vpop.f32.mrb[15].mxu1  ;;  %v431_v26 = vsub.s32 3, %v6988_v17  ;;  %v7030_v60 = vrot.slane %v6994_v34, %v427_v32 }
 0x122   : > { %v7025_v46 = vadd.f32 %v567_v35, %v424_v16 }
 0x123   : > { %7908 = vst [vmem:[#allocation42_spill] sm:$0xff] %v7023_v57 }
 0x124   : > { %7909 = vst [vmem:[#allocation43_spill] sm:$0xff] %v7025_v46 }
 0x126   : > { %v1171_v19 = vpop.f32.mrb[16].mxu0 }
 0x127   : > { %v1247_v0 = vadd.f32 %v1171_v19, %v524_v43  ;;  %v1173_v28 = vpop.f32.mrb[17].mxu0  ;;  %v7033_v19 = vrot.slane %v6994_v34, %v431_v26 }
 0x128   : > { %v1248_v54 = vadd.f32 %v1173_v28, %v526_v18  ;;  %v439_v28 = vsub.s32 5, %v6988_v17 }
 0x129   : > { %v4133_v39 = vmul.f32 -1.442695, %v1247_v0 }
 0x12a   : > { %v4134_v13 = vmul.f32 -1.442695, %v1248_v54 }
 0x12c   : > { %5563 = vpow2.f32 %v4134_v13  ;;  %v435_v13 = vsub.s32 4, %v6988_v17 }
 0x12d   : > { %5565 = vpow2.f32 %v4133_v39 }
 0x12e   : > { %v7043_v43 = vrot.slane %v6994_v34, %v435_v13 }
 0x136   : > { %v5564_v2 = vpop.eup %5563 }
 0x137   : > { %v5566_v57 = vpop.eup %5565  ;;  %v1410_v35 = vadd.f32 1.0, %v5564_v2  ;;  %v7040_v2 = vrot.slane %v6994_v34, %v439_v28 }
 0x138   : > { %v1404_v59 = vadd.f32 1.0, %v5566_v57 }
 0x139   : > { %5567 = vrcp.f32 %v1410_v35 }
 0x13a   : > { %5569 = vrcp.f32 %v1404_v59 }
 0x143   : > { %v5568_v32 = vpop.eup %5567 }
 0x144   : > { %v5570_v26 = vpop.eup %5569  ;;  %v1420_v46 = vmul.f32 0.0, %v5568_v32 }
 0x146   : > { %v1321_v47 = vpop.f32.mrb[14].mxu0 }
 0x147   : > { %v1323_v20 = vpop.f32.mrb[15].mxu0  ;;  %v5488_v39 = vadd.f32 %v1321_v47, %v7043_v43  ;;  %v447_v47 = vsub.s32 7, %v6988_v17 }
 0x148   : > { %v5489_v0 = vadd.f32 %v1323_v20, %v7040_v2  ;;  %v443_v20 = vsub.s32 6, %v6988_v17 }
 0x149   : > { %v4136_v59 = vmul.f32 -1.442695, %v5488_v39 }
 0x14a   : > { %v4137_v35 = vmul.f32 -1.442695, %v5489_v0  ;;  %v7053_v32 = vrot.slane %v6994_v34, %v443_v20 }
 0x164   : > { %v1242_v54 = vpop.f32.mrb[16].mxu1 }
 0x165   : > { %v5458_v16 = vadd.f32 %v1242_v54, %v7030_v60  ;;  %v1244_v18 = vpop.f32.mrb[17].mxu1 }
 0x166   : > { %v5459_v31 = vadd.f32 %v1244_v18, %v7033_v19 }
 0x167   : > { %5571 = vtanh.f32 %v5458_v16 }
 0x168   : > { %v4135_v57 = vmul.f32 -1.442695, %v5459_v31 }
 0x16a   : > { %5573 = vpow2.f32 %v4135_v57 }
 0x16b   : > { %5575 = vpow2.f32 %v4137_v35  ;;  %v7058_v35 = vrot.slane %v6994_v34, %v447_v47 }
 0x16c   : > { %5577 = vpow2.f32 %v4136_v59 }
 0x171   : > { %v5572_v54 = vpop.eup %5571 }
 0x172   : > { %v1421_v18 = vmul.f32 %v5572_v54, %v5570_v26 }
 0x174   : > { %v5574_v16 = vpop.eup %5573  ;;  %v7047_v28 = vadd.f32 %v1421_v18, %v1420_v46 }
 0x175   : > { %v1417_v31 = vadd.f32 1.0, %v5574_v16  ;;  %v5576_v13 = vpop.eup %5575 }
 0x176   : > { %5579 = vtanh.f32 %v7047_v28  ;;  %v5578_v57 = vpop.eup %5577  ;;  %v1434_v39 = vadd.f32 1.0, %v5576_v13 }
 0x177   : > { %5581 = vrcp.f32 %v1417_v31  ;;  %v1428_v26 = vadd.f32 1.0, %v5578_v57 }
 0x178   : > { %5583 = vrcp.f32 %v1434_v39 }
 0x179   : > { %5585 = vrcp.f32 %v1428_v26 }
 0x180   : > { %v5580_v0 = vpop.eup %5579 }
 0x181   : > { %v5582_v4 = vpop.eup %5581 }
 0x182   : > { %v7055_v46 = vmul.f32 %v5582_v4, %v5580_v0  ;;  %v5584_v18 = vpop.eup %5583 }
 0x183   : > { %v5586_v16 = vpop.eup %5585  ;;  %v1444_v20 = vmul.f32 0.0, %v5584_v18  ;;  %v7916_v18 = vld [vmem:[#allocation7_spill] sm:$0xff] }
 0x184   : > { %7910 = vst [vmem:[#allocation44_spill] sm:$0xff] %v7055_v46  ;;  %v1392_v54 = vpop.f32.mrb[46].mxu1  ;;  %1520 = vmatmul.mubr.f32.vlgmr.msra.gmra.mrb[18].mxu0 %v7055_v46  ;;  %1591 = vmatmul.mubr.f32.vlgmr.msra.gmra.mrb[18].mxu1 %v7055_v46  ;;  %v7926_v46 = vld [vmem:[#allocation12_spill] sm:$0xff] }
 0x185   : > { %v5504_v17 = vadd.f32 %v1392_v54, %v7053_v32  ;;  %v1394_v59 = vpop.f32.mrb[47].mxu1  ;;  %4565 = vmatpush1.bf16.msra.mxu0 %v6436_v52  ;;  %4597 = vmatpush1.bf16.msra.mxu1 %v6841_v38 }
 0x186   : > { %v5505_v4 = vadd.f32 %v1394_v59, %v7058_v35  ;;  %4567 = vmatprep.subr.bf16.mxu0 %v6440_v53  ;;  %4599 = vmatprep.subr.bf16.mxu1 %v6844_v44  ;;  %v7913_v59 = vld [vmem:[#allocation18_spill] sm:$0xff] }
 0x187   : > { %5587 = vtanh.f32 %v5504_v17  ;;  %1669 = vmatprep.mubr.f32.mxu0 %v7895_v10  ;;  %1740 = vmatprep.mubr.f32.mxu1 %v7895_v10  ;;  %v7912_v17 = vld [vmem:[#allocation5_spill] sm:$0xff] }
 0x188   : > { %v4138_v34 = vmul.f32 -1.442695, %v5505_v4  ;;  %v7914_v4 = vld [vmem:[#allocation6_spill] sm:$0xff] }
 0x189   : > { %4569 = vmatpush1.bf16.msra.mxu0 %v6469_v8  ;;  %4601 = vmatpush1.bf16.msra.mxu1 %v6862_v1 }
 0x18a   : > { %5589 = vpow2.f32 %v4138_v34  ;;  %4571 = vmatprep.subr.bf16.mxu0 %v6474_v11  ;;  %4603 = vmatprep.subr.bf16.mxu1 %v6866_v51  ;;  %v7915_v34 = vld [vmem:[#allocation19_spill] sm:$0xff] }
 0x18d   : > { %4573 = vmatpush1.bf16.msra.mxu0 %v6502_v29  ;;  %4605 = vmatpush1.bf16.msra.mxu1 %v6881_v22 }
 0x18e   : > { %4575 = vmatprep.subr.bf16.mxu0 %v6506_v30  ;;  %4607 = vmatprep.subr.bf16.mxu1 %v6884_v33 }
 0x191   : > { %v5588_v31 = vpop.eup %5587  ;;  %4577 = vmatpush1.bf16.msra.mxu0 %v6534_v48  ;;  %4609 = vmatpush1.bf16.msra.mxu1 %v6899_v15 }
 0x192   : > { %v1445_v13 = vmul.f32 %v5588_v31, %v5586_v16  ;;  %4579 = vmatprep.subr.bf16.mxu0 %v6538_v49  ;;  %4611 = vmatprep.subr.bf16.mxu1 %v6902_v9  ;;  %v7917_v16 = vld [vmem:[#allocation20_spill] sm:$0xff] }
 0x193   : > { %v7918_v31 = vld [vmem:[#allocation8_spill] sm:$0xff] }
 0x194   : > { %v5590_v47 = vpop.eup %5589  ;;  %v7082_v57 = vadd.f32 %v1445_v13, %v1444_v20  ;;  %v7919_v20 = vld [vmem:[#allocation21_spill] sm:$0xff] }
 0x195   : > { %v1441_v0 = vadd.f32 1.0, %v5590_v47  ;;  %4581 = vmatpush1.bf16.msra.mxu0 %v6566_v12  ;;  %4613 = vmatpush1.bf16.msra.mxu1 %v6917_v21  ;;  %v7920_v13 = vld [vmem:[#allocation9_spill] sm:$0xff]  ;;  %v7921_v47 = vld [vmem:[#allocation22_spill] sm:$0xff] }
 0x196   : > { %5591 = vtanh.f32 %v7082_v57  ;;  %4583 = vmatprep.subr.bf16.mxu0 %v6570_v14  ;;  %4615 = vmatprep.subr.bf16.mxu1 %v6920_v45 }
 0x197   : > { %5593 = vrcp.f32 %v1441_v0  ;;  %v7922_v0 = vld [vmem:[#allocation10_spill] sm:$0xff] }
 0x199   : > { %4585 = vmatpush1.bf16.msra.mxu0 %v6598_v36  ;;  %4617 = vmatpush1.bf16.msra.mxu1 %v6935_v7 }
 0x19a   : > { %4587 = vmatprep.subr.bf16.mxu0 %v6602_v37  ;;  %4619 = vmatprep.subr.bf16.mxu1 %v6938_v3 }
 0x19d   : > { %4589 = vmatpush1.bf16.msra.mxu0 %v6630_v61  ;;  %4621 = vmatpush1.bf16.msra.mxu1 %v6953_v27 }
 0x19e   : > { %4591 = vmatprep.subr.bf16.mxu0 %v6634_v62  ;;  %4623 = vmatprep.subr.bf16.mxu1 %v6956_v58 }
 0x1a0   : > { %v5592_v39 = vpop.eup %5591 }
 0x1a1   : > { %v5594_v26 = vpop.eup %5593  ;;  %4593 = vmatpush1.bf16.msra.mxu0 %v6658_v23  ;;  %4625 = vmatpush1.bf16.msra.mxu1 %v6965_v55 }
 0x1a2   : > { %v7099_v54 = vmul.f32 %v5594_v26, %v5592_v39  ;;  %4627 = vmatprep.subr.bf16.mxu0 %v6108_v41  ;;  %4659 = vmatprep.subr.bf16.mxu1 %v6643_v6  ;;  %v7923_v39 = vld [vmem:[#allocation23_spill] sm:$0xff] }
 0x1a3   : > { %v7924_v26 = vld [vmem:[#allocation11_spill] sm:$0xff] }
 0x1a4   : > { %7911 = vst [vmem:[#allocation45_spill] sm:$0xff] %v7099_v54  ;;  %1670 = vmatmul.mubr.f32.vlgmr.msra.gmra.mrb[12].mxu0 %v7099_v54  ;;  %1741 = vmatmul.mubr.f32.vlgmr.msra.gmra.mrb[44].mxu1 %v7099_v54  ;;  %v7925_v54 = vld [vmem:[#allocation24_spill] sm:$0xff] }
 0x1a5   : > { %4629 = vmatpush1.bf16.msra.mxu0 %v6131_v50  ;;  %4661 = vmatpush1.bf16.msra.mxu1 %v6663_v24 }
 0x1a6   : > { %4631 = vmatprep.subr.bf16.mxu0 %v6147_v56  ;;  %4663 = vmatprep.subr.bf16.mxu1 %v6666_v25 }
 0x1a7   : > { %1869 = vmatprep.mubr.f32.mxu0 %v7895_v10  ;;  %1940 = vmatprep.mubr.f32.mxu1 %v7895_v10 }
 0x1a9   : > { %4633 = vmatpush1.bf16.msra.mxu0 %v6167_v63  ;;  %4665 = vmatpush1.bf16.msra.mxu1 %v6685_v40 }
 0x1aa   : > { %4635 = vmatprep.subr.bf16.mxu0 %v6184_v5  ;;  %4667 = vmatprep.subr.bf16.mxu1 %v6688_v42 }
 0x1ad   : > { %4637 = vmatpush1.bf16.msra.mxu0 %v7912_v17  ;;  %4669 = vmatpush1.bf16.msra.mxu1 %v7913_v59  ;;  %v7937_v59 = vld [vmem:[#allocation31_spill] sm:$0xff] }
 0x1ae   : > { %4639 = vmatprep.subr.bf16.mxu0 %v7914_v4  ;;  %4671 = vmatprep.subr.bf16.mxu1 %v7915_v34  ;;  %v7936_v34 = vld [vmem:[#allocation30_spill] sm:$0xff] }
 0x1b1   : > { %4641 = vmatpush1.bf16.msra.mxu0 %v7916_v18  ;;  %4673 = vmatpush1.bf16.msra.mxu1 %v7917_v16  ;;  %v7927_v18 = vld [vmem:[#allocation25_spill] sm:$0xff] }
 0x1b2   : > { %4643 = vmatprep.subr.bf16.mxu0 %v7918_v31  ;;  %4675 = vmatprep.subr.bf16.mxu1 %v7919_v20  ;;  %v7928_v16 = vld [vmem:[#allocation13_spill] sm:$0xff]  ;;  %v7929_v31 = vld [vmem:[#allocation26_spill] sm:$0xff] }
 0x1b3   : > { %v7930_v20 = vld [vmem:[#allocation14_spill] sm:$0xff] }
 0x1b5   : > { %4645 = vmatpush1.bf16.msra.mxu0 %v7920_v13  ;;  %4677 = vmatpush1.bf16.msra.mxu1 %v7921_v47  ;;  %v7931_v13 = vld [vmem:[#allocation27_spill] sm:$0xff] }
 0x1b6   : > { %4647 = vmatprep.subr.bf16.mxu0 %v7922_v0  ;;  %4679 = vmatprep.subr.bf16.mxu1 %v7923_v39  ;;  %v7932_v47 = vld [vmem:[#allocation15_spill] sm:$0xff]  ;;  %v7933_v0 = vld [vmem:[#allocation28_spill] sm:$0xff] }
 0x1b7   : > { %v7934_v39 = vld [vmem:[#allocation16_spill] sm:$0xff] }
 0x1b9   : > { %4649 = vmatpush1.bf16.msra.mxu0 %v7924_v26  ;;  %4681 = vmatpush1.bf16.msra.mxu1 %v7925_v54  ;;  %v7935_v26 = vld [vmem:[#allocation29_spill] sm:$0xff] }
 0x1ba   : > { %4651 = vmatprep.subr.bf16.mxu0 %v7926_v46  ;;  %4683 = vmatprep.subr.bf16.mxu1 %v7927_v18 }
 0x1bd   : > { %4653 = vmatpush1.bf16.msra.mxu0 %v7928_v16  ;;  %4685 = vmatpush1.bf16.msra.mxu1 %v7929_v31 }
 0x1be   : > { %4655 = vmatprep.subr.bf16.mxu0 %v7930_v20  ;;  %4687 = vmatprep.subr.bf16.mxu1 %v7931_v13 }
 0x1c1   : > { %4657 = vmatpush1.bf16.msra.mxu0 %v7932_v47  ;;  %4689 = vmatpush1.bf16.msra.mxu1 %v7933_v0 }
 0x1c2   : > { %4691 = vmatprep.subr.bf16.mxu0 %v7934_v39  ;;  %4723 = vmatprep.subr.bf16.mxu1 %v7935_v26 }
 0x257   : > { %v1521_v54 = vpop.f32.mrb[18].mxu0  ;;  %v1592_v46 = vpop.f32.mrb[18].mxu1 }
 0x258   : > { %v1597_v18 = vadd.f32 %v1521_v54, %v7936_v34  ;;  %v1523_v4 = vpop.f32.mrb[19].mxu0  ;;  %v1594_v16 = vpop.f32.mrb[19].mxu1  ;;  %v5460_v0 = vadd.f32 %v1592_v46, %v7030_v60 }
 0x259   : > { %v1598_v31 = vadd.f32 %v1523_v4, %v7937_v59  ;;  %v5461_v47 = vadd.f32 %v1594_v16, %v7033_v19 }
 0x25a   : > { %v4139_v17 = vmul.f32 -1.442695, %v1597_v18 }
 0x25b   : > { %v4140_v20 = vmul.f32 -1.442695, %v1598_v31  ;;  %v4141_v13 = vmul.f32 -1.442695, %v5461_v47 }
 0x25c   : > { %5595 = vpow2.f32 %v4139_v17 }
 0x25d   : > { %5597 = vpow2.f32 %v4140_v20 }
 0x25e   : > { %5599 = vpow2.f32 %v4141_v13 }
 0x25f   : > { %5601 = vtanh.f32 %v5460_v0 }
 0x266   : > { %v5596_v39 = vpop.eup %5595 }
 0x267   : > { %v5598_v42 = vpop.eup %5597  ;;  %v1754_v26 = vadd.f32 1.0, %v5596_v39 }
 0x268   : > { %v1760_v5 = vadd.f32 1.0, %v5598_v42  ;;  %v5600_v54 = vpop.eup %5599 }
 0x269   : > { %5603 = vrcp.f32 %v1754_v26  ;;  %v5602_v34 = vpop.eup %5601  ;;  %v1767_v17 = vadd.f32 1.0, %v5600_v54 }
 0x26a   : > { %5605 = vrcp.f32 %v1760_v5 }
 0x26b   : > { %5607 = vrcp.f32 %v1767_v17 }
 0x273   : > { %v5604_v59 = vpop.eup %5603 }
 0x274   : > { %v5606_v4 = vpop.eup %5605  ;;  %v1771_v18 = vmul.f32 %v5604_v59, %v5602_v34 }
 0x275   : > { %v1770_v31 = vmul.f32 %v5606_v4, %v7047_v28  ;;  %v5608_v28 = vpop.eup %5607 }
 0x277   : > { %v7144_v16 = vadd.f32 %v1771_v18, %v1770_v31  ;;  %v1671_v20 = vpop.f32.mrb[12].mxu0  ;;  %v1742_v46 = vpop.f32.mrb[44].mxu1 }
 0x278   : > { %v5486_v47 = vadd.f32 %v1671_v20, %v7043_v43  ;;  %v1673_v13 = vpop.f32.mrb[13].mxu0  ;;  %v1744_v0 = vpop.f32.mrb[45].mxu1  ;;  %v5502_v59 = vadd.f32 %v1742_v46, %v7053_v32 }
 0x279   : > { %v5487_v42 = vadd.f32 %v1673_v13, %v7040_v2  ;;  %5609 = vtanh.f32 %v7144_v16  ;;  %v5503_v26 = vadd.f32 %v1744_v0, %v7058_v35 }
 0x27a   : > { %v4142_v5 = vmul.f32 -1.442695, %v5486_v47 }
 0x27b   : > { %v4143_v39 = vmul.f32 -1.442695, %v5487_v42  ;;  %v4144_v34 = vmul.f32 -1.442695, %v5503_v26 }
 0x27c   : > { %5611 = vpow2.f32 %v4142_v5 }
 0x27d   : > { %5613 = vpow2.f32 %v4143_v39 }
 0x27e   : > { %5615 = vpow2.f32 %v4144_v34  ;;  %v7940_v34 = vld [vmem:[#allocation4_spill] sm:$0xff] }
 0x27f   : > { %5617 = vtanh.f32 %v5502_v59  ;;  %v7941_v59 = vld [vmem:[#allocation17_spill] sm:$0xff] }
 0x283   : > { %v5610_v54 = vpop.eup %5609 }
 0x284   : > { %v7151_v4 = vmul.f32 %v5610_v54, %v5608_v28 }
 0x286   : > { %7938 = vst [vmem:[#allocation30_spill] sm:$0xff] %v7151_v4  ;;  %v5612_v18 = vpop.eup %5611  ;;  %1870 = vmatmul.mubr.f32.vlgmr.msra.gmra.mrb[20].mxu0 %v7151_v4  ;;  %1941 = vmatmul.mubr.f32.vlgmr.msra.gmra.mrb[20].mxu1 %v7151_v4  ;;  %v7956_v4 = vld [vmem:[#allocation12_spill] sm:$0xff] }
 0x287   : > { %v5614_v17 = vpop.eup %5613  ;;  %v1778_v31 = vadd.f32 1.0, %v5612_v18  ;;  %4693 = vmatpush1.bf16.msra.mxu0 %v6436_v52  ;;  %4725 = vmatpush1.bf16.msra.mxu1 %v6841_v38  ;;  %v7942_v18 = vld [vmem:[#allocation5_spill] sm:$0xff] }
 0x288   : > { %v1784_v20 = vadd.f32 1.0, %v5614_v17  ;;  %4695 = vmatprep.subr.bf16.mxu0 %v6440_v53  ;;  %4727 = vmatprep.subr.bf16.mxu1 %v6844_v44  ;;  %v5616_v46 = vpop.eup %5615  ;;  %v7943_v17 = vld [vmem:[#allocation18_spill] sm:$0xff] }
 0x289   : > { %5619 = vrcp.f32 %v1778_v31  ;;  %2019 = vmatprep.mubr.f32.mxu0 %v7895_v10  ;;  %2090 = vmatprep.mubr.f32.mxu1 %v7895_v10  ;;  %v5618_v47 = vpop.eup %5617  ;;  %v1791_v5 = vadd.f32 1.0, %v5616_v46  ;;  %v7944_v31 = vld [vmem:[#allocation6_spill] sm:$0xff]  ;;  %v7946_v46 = vld [vmem:[#allocation7_spill] sm:$0xff] }
 0x28a   : > { %5621 = vrcp.f32 %v1784_v20  ;;  %v7945_v20 = vld [vmem:[#allocation19_spill] sm:$0xff] }
 0x28b   : > { %4697 = vmatpush1.bf16.msra.mxu0 %v6469_v8  ;;  %4729 = vmatpush1.bf16.msra.mxu1 %v6862_v1  ;;  %5623 = vrcp.f32 %v1791_v5  ;;  %v7951_v5 = vld [vmem:[#allocation22_spill] sm:$0xff] }
 0x28c   : > { %4699 = vmatprep.subr.bf16.mxu0 %v6474_v11  ;;  %4731 = vmatprep.subr.bf16.mxu1 %v6866_v51 }
 0x28f   : > { %4701 = vmatpush1.bf16.msra.mxu0 %v6502_v29  ;;  %4733 = vmatpush1.bf16.msra.mxu1 %v6881_v22 }
 0x290   : > { %4703 = vmatprep.subr.bf16.mxu0 %v6506_v30  ;;  %4735 = vmatprep.subr.bf16.mxu1 %v6884_v33 }
 0x293   : > { %v5620_v13 = vpop.eup %5619  ;;  %4705 = vmatpush1.bf16.msra.mxu0 %v6534_v48  ;;  %4737 = vmatpush1.bf16.msra.mxu1 %v6899_v15 }
 0x294   : > { %v5622_v0 = vpop.eup %5621  ;;  %v1795_v42 = vmul.f32 %v5620_v13, %v5618_v47  ;;  %4707 = vmatprep.subr.bf16.mxu0 %v6538_v49  ;;  %4739 = vmatprep.subr.bf16.mxu1 %v6902_v9  ;;  %v7947_v47 = vld [vmem:[#allocation20_spill] sm:$0xff] }
 0x295   : > { %v1794_v39 = vmul.f32 %v5622_v0, %v7082_v57  ;;  %v5624_v57 = vpop.eup %5623  ;;  %v7948_v13 = vld [vmem:[#allocation8_spill] sm:$0xff]  ;;  %v7949_v0 = vld [vmem:[#allocation21_spill] sm:$0xff] }
 0x297   : > { %v7174_v26 = vadd.f32 %v1795_v42, %v1794_v39  ;;  %4709 = vmatpush1.bf16.msra.mxu0 %v6566_v12  ;;  %4741 = vmatpush1.bf16.msra.mxu1 %v6917_v21  ;;  %v7950_v42 = vld [vmem:[#allocation9_spill] sm:$0xff]  ;;  %v7952_v39 = vld [vmem:[#allocation10_spill] sm:$0xff] }
 0x298   : > { %4711 = vmatprep.subr.bf16.mxu0 %v6570_v14  ;;  %4743 = vmatprep.subr.bf16.mxu1 %v6920_v45 }
 0x299   : > { %5625 = vtanh.f32 %v7174_v26 }
 0x29b   : > { %4713 = vmatpush1.bf16.msra.mxu0 %v6598_v36  ;;  %4745 = vmatpush1.bf16.msra.mxu1 %v6935_v7 }
 0x29c   : > { %4715 = vmatprep.subr.bf16.mxu0 %v6602_v37  ;;  %4747 = vmatprep.subr.bf16.mxu1 %v6938_v3 }
 0x29f   : > { %4717 = vmatpush1.bf16.msra.mxu0 %v6630_v61  ;;  %4749 = vmatpush1.bf16.msra.mxu1 %v6953_v27 }
 0x2a0   : > { %4719 = vmatprep.subr.bf16.mxu0 %v6634_v62  ;;  %4751 = vmatprep.subr.bf16.mxu1 %v6956_v58 }
 0x2a3   : > { %v5626_v28 = vpop.eup %5625  ;;  %4721 = vmatpush1.bf16.msra.mxu0 %v6658_v23  ;;  %4753 = vmatpush1.bf16.msra.mxu1 %v6965_v55 }
 0x2a4   : > { %v7191_v54 = vmul.f32 %v5626_v28, %v5624_v57  ;;  %4755 = vmatprep.subr.bf16.mxu0 %v6108_v41  ;;  %4787 = vmatprep.subr.bf16.mxu1 %v6643_v6  ;;  %v7953_v57 = vld [vmem:[#allocation23_spill] sm:$0xff] }
 0x2a5   : > { %v7954_v28 = vld [vmem:[#allocation11_spill] sm:$0xff] }
 0x2a6   : > { %7939 = vst [vmem:[#allocation31_spill] sm:$0xff] %v7191_v54  ;;  %2020 = vmatmul.mubr.f32.vlgmr.msra.gmra.mrb[10].mxu0 %v7191_v54  ;;  %2091 = vmatmul.mubr.f32.vlgmr.msra.gmra.mrb[42].mxu1 %v7191_v54  ;;  %v7955_v54 = vld [vmem:[#allocation24_spill] sm:$0xff] }
 0x2a7   : > { %4757 = vmatpush1.bf16.msra.mxu0 %v6131_v50  ;;  %4789 = vmatpush1.bf16.msra.mxu1 %v6663_v24 }
 0x2a8   : > { %4759 = vmatprep.subr.bf16.mxu0 %v6147_v56  ;;  %4791 = vmatprep.subr.bf16.mxu1 %v6666_v25 }
 0x2a9   : > { %2219 = vmatprep.mubr.f32.mxu0 %v7895_v10  ;;  %2290 = vmatprep.mubr.f32.mxu1 %v7895_v10 }
 0x2ab   : > { %4761 = vmatpush1.bf16.msra.mxu0 %v6167_v63  ;;  %4793 = vmatpush1.bf16.msra.mxu1 %v6685_v40 }
 0x2ac   : > { %4763 = vmatprep.subr.bf16.mxu0 %v7940_v34  ;;  %4795 = vmatprep.subr.bf16.mxu1 %v7941_v59 }
 0x2af   : > { %4765 = vmatpush1.bf16.msra.mxu0 %v7942_v18  ;;  %4797 = vmatpush1.bf16.msra.mxu1 %v7943_v17  ;;  %v7967_v17 = vld [vmem:[#allocation33_spill] sm:$0xff] }
 0x2b0   : > { %4767 = vmatprep.subr.bf16.mxu0 %v7944_v31  ;;  %4799 = vmatprep.subr.bf16.mxu1 %v7945_v20  ;;  %v7966_v20 = vld [vmem:[#allocation32_spill] sm:$0xff] }
 0x2b3   : > { %4769 = vmatpush1.bf16.msra.mxu0 %v7946_v46  ;;  %4801 = vmatpush1.bf16.msra.mxu1 %v7947_v47  ;;  %v7957_v46 = vld [vmem:[#allocation25_spill] sm:$0xff] }
 0x2b4   : > { %4771 = vmatprep.subr.bf16.mxu0 %v7948_v13  ;;  %4803 = vmatprep.subr.bf16.mxu1 %v7949_v0  ;;  %v7958_v47 = vld [vmem:[#allocation13_spill] sm:$0xff]  ;;  %v7959_v13 = vld [vmem:[#allocation26_spill] sm:$0xff] }
 0x2b5   : > { %v7960_v0 = vld [vmem:[#allocation14_spill] sm:$0xff] }
 0x2b7   : > { %4773 = vmatpush1.bf16.msra.mxu0 %v7950_v42  ;;  %4805 = vmatpush1.bf16.msra.mxu1 %v7951_v5  ;;  %v7961_v42 = vld [vmem:[#allocation27_spill] sm:$0xff] }
 0x2b8   : > { %4775 = vmatprep.subr.bf16.mxu0 %v7952_v39  ;;  %4807 = vmatprep.subr.bf16.mxu1 %v7953_v57  ;;  %v7962_v5 = vld [vmem:[#allocation15_spill] sm:$0xff]  ;;  %v7963_v39 = vld [vmem:[#allocation28_spill] sm:$0xff] }
 0x2b9   : > { %v7964_v57 = vld [vmem:[#allocation16_spill] sm:$0xff] }
 0x2bb   : > { %4777 = vmatpush1.bf16.msra.mxu0 %v7954_v28  ;;  %4809 = vmatpush1.bf16.msra.mxu1 %v7955_v54  ;;  %v7965_v28 = vld [vmem:[#allocation29_spill] sm:$0xff] }
 0x2bc   : > { %4779 = vmatprep.subr.bf16.mxu0 %v7956_v4  ;;  %4811 = vmatprep.subr.bf16.mxu1 %v7957_v46 }
 0x2bf   : > { %4781 = vmatpush1.bf16.msra.mxu0 %v7958_v47  ;;  %4813 = vmatpush1.bf16.msra.mxu1 %v7959_v13 }
 0x2c0   : > { %4783 = vmatprep.subr.bf16.mxu0 %v7960_v0  ;;  %4815 = vmatprep.subr.bf16.mxu1 %v7961_v42 }
 0x2c3   : > { %4785 = vmatpush1.bf16.msra.mxu0 %v7962_v5  ;;  %4817 = vmatpush1.bf16.msra.mxu1 %v7963_v39 }
 0x2c4   : > { %4819 = vmatprep.subr.bf16.mxu0 %v7964_v57  ;;  %4851 = vmatprep.subr.bf16.mxu1 %v7965_v28 }
 0x359   : > { %v1871_v54 = vpop.f32.mrb[20].mxu0  ;;  %v1942_v4 = vpop.f32.mrb[20].mxu1 }
 0x35a   : > { %v1947_v46 = vadd.f32 %v1871_v54, %v7966_v20  ;;  %v1873_v31 = vpop.f32.mrb[21].mxu0  ;;  %v1944_v47 = vpop.f32.mrb[21].mxu1  ;;  %v5462_v39 = vadd.f32 %v1942_v4, %v7030_v60 }
 0x35b   : > { %v1948_v13 = vadd.f32 %v1873_v31, %v7967_v17  ;;  %v5463_v5 = vadd.f32 %v1944_v47, %v7033_v19 }
 0x35c   : > { %v4145_v18 = vmul.f32 -1.442695, %v1947_v46 }
 0x35d   : > { %v4146_v0 = vmul.f32 -1.442695, %v1948_v13  ;;  %v4147_v42 = vmul.f32 -1.442695, %v5463_v5 }
 0x35e   : > { %5627 = vpow2.f32 %v4145_v18 }
 0x35f   : > { %5629 = vpow2.f32 %v4146_v0 }
 0x360   : > { %5631 = vpow2.f32 %v4147_v42 }
 0x361   : > { %5633 = vtanh.f32 %v5462_v39 }
 0x368   : > { %v5628_v57 = vpop.eup %5627 }
 0x369   : > { %v5630_v59 = vpop.eup %5629  ;;  %v2104_v28 = vadd.f32 1.0, %v5628_v57 }
 0x36a   : > { %v2110_v34 = vadd.f32 1.0, %v5630_v59  ;;  %v5632_v54 = vpop.eup %5631 }
 0x36b   : > { %5635 = vrcp.f32 %v2104_v28  ;;  %v5634_v20 = vpop.eup %5633  ;;  %v2117_v18 = vadd.f32 1.0, %v5632_v54 }
 0x36c   : > { %5637 = vrcp.f32 %v2110_v34 }
 0x36d   : > { %5639 = vrcp.f32 %v2117_v18 }
 0x375   : > { %v5636_v17 = vpop.eup %5635 }
 0x376   : > { %v5638_v31 = vpop.eup %5637  ;;  %v2121_v46 = vmul.f32 %v5636_v17, %v5634_v20 }
 0x377   : > { %v2120_v13 = vmul.f32 %v5638_v31, %v7144_v16  ;;  %v5640_v16 = vpop.eup %5639 }
 0x379   : > { %v7236_v47 = vadd.f32 %v2121_v46, %v2120_v13  ;;  %v2021_v0 = vpop.f32.mrb[10].mxu0  ;;  %v2092_v4 = vpop.f32.mrb[42].mxu1 }
 0x37a   : > { %v5484_v5 = vadd.f32 %v2021_v0, %v7043_v43  ;;  %v2023_v42 = vpop.f32.mrb[11].mxu0  ;;  %v2094_v39 = vpop.f32.mrb[43].mxu1  ;;  %v5500_v17 = vadd.f32 %v2092_v4, %v7053_v32 }
 0x37b   : > { %v5485_v59 = vadd.f32 %v2023_v42, %v7040_v2  ;;  %5641 = vtanh.f32 %v7236_v47  ;;  %v5501_v28 = vadd.f32 %v2094_v39, %v7058_v35 }
 0x37c   : > { %v4148_v34 = vmul.f32 -1.442695, %v5484_v5 }
 0x37d   : > { %v4149_v57 = vmul.f32 -1.442695, %v5485_v59  ;;  %v4150_v20 = vmul.f32 -1.442695, %v5501_v28 }
 0x37e   : > { %5643 = vpow2.f32 %v4148_v34 }
 0x37f   : > { %5645 = vpow2.f32 %v4149_v57 }
 0x380   : > { %5647 = vpow2.f32 %v4150_v20  ;;  %v7970_v20 = vld [vmem:[#allocation4_spill] sm:$0xff] }
 0x381   : > { %5649 = vtanh.f32 %v5500_v17  ;;  %v7971_v17 = vld [vmem:[#allocation17_spill] sm:$0xff] }
 0x385   : > { %v5642_v54 = vpop.eup %5641 }
 0x386   : > { %v7243_v31 = vmul.f32 %v5642_v54, %v5640_v16 }
 0x388   : > { %7968 = vst [vmem:[#allocation32_spill] sm:$0xff] %v7243_v31  ;;  %v5644_v46 = vpop.eup %5643  ;;  %2220 = vmatmul.mubr.f32.vlgmr.msra.gmra.mrb[22].mxu0 %v7243_v31  ;;  %2291 = vmatmul.mubr.f32.vlgmr.msra.gmra.mrb[22].mxu1 %v7243_v31  ;;  %v7986_v31 = vld [vmem:[#allocation12_spill] sm:$0xff] }
 0x389   : > { %v5646_v18 = vpop.eup %5645  ;;  %v2128_v13 = vadd.f32 1.0, %v5644_v46  ;;  %4821 = vmatpush1.bf16.msra.mxu0 %v6436_v52  ;;  %4853 = vmatpush1.bf16.msra.mxu1 %v6841_v38  ;;  %v7972_v46 = vld [vmem:[#allocation5_spill] sm:$0xff] }
 0x38a   : > { %v2134_v0 = vadd.f32 1.0, %v5646_v18  ;;  %4823 = vmatprep.subr.bf16.mxu0 %v6440_v53  ;;  %4855 = vmatprep.subr.bf16.mxu1 %v6844_v44  ;;  %v5648_v4 = vpop.eup %5647  ;;  %v7973_v18 = vld [vmem:[#allocation18_spill] sm:$0xff] }
 0x38b   : > { %5651 = vrcp.f32 %v2128_v13  ;;  %2369 = vmatprep.mubr.f32.mxu0 %v7895_v10  ;;  %2440 = vmatprep.mubr.f32.mxu1 %v7895_v10  ;;  %v5650_v5 = vpop.eup %5649  ;;  %v2141_v34 = vadd.f32 1.0, %v5648_v4  ;;  %v7974_v13 = vld [vmem:[#allocation6_spill] sm:$0xff]  ;;  %v7976_v4 = vld [vmem:[#allocation7_spill] sm:$0xff] }
 0x38c   : > { %5653 = vrcp.f32 %v2134_v0  ;;  %v7975_v0 = vld [vmem:[#allocation19_spill] sm:$0xff] }
 0x38d   : > { %4825 = vmatpush1.bf16.msra.mxu0 %v6469_v8  ;;  %4857 = vmatpush1.bf16.msra.mxu1 %v6862_v1  ;;  %5655 = vrcp.f32 %v2141_v34  ;;  %v7981_v34 = vld [vmem:[#allocation22_spill] sm:$0xff] }
 0x38e   : > { %4827 = vmatprep.subr.bf16.mxu0 %v6474_v11  ;;  %4859 = vmatprep.subr.bf16.mxu1 %v6866_v51 }
 0x391   : > { %4829 = vmatpush1.bf16.msra.mxu0 %v6502_v29  ;;  %4861 = vmatpush1.bf16.msra.mxu1 %v6881_v22 }
 0x392   : > { %4831 = vmatprep.subr.bf16.mxu0 %v6506_v30  ;;  %4863 = vmatprep.subr.bf16.mxu1 %v6884_v33 }
 0x395   : > { %v5652_v42 = vpop.eup %5651  ;;  %4833 = vmatpush1.bf16.msra.mxu0 %v6534_v48  ;;  %4865 = vmatpush1.bf16.msra.mxu1 %v6899_v15 }
 0x396   : > { %v5654_v39 = vpop.eup %5653  ;;  %v2145_v59 = vmul.f32 %v5652_v42, %v5650_v5  ;;  %4835 = vmatprep.subr.bf16.mxu0 %v6538_v49  ;;  %4867 = vmatprep.subr.bf16.mxu1 %v6902_v9  ;;  %v7977_v5 = vld [vmem:[#allocation20_spill] sm:$0xff] }
 0x397   : > { %v2144_v57 = vmul.f32 %v5654_v39, %v7174_v26  ;;  %v5656_v26 = vpop.eup %5655  ;;  %v7978_v42 = vld [vmem:[#allocation8_spill] sm:$0xff]  ;;  %v7979_v39 = vld [vmem:[#allocation21_spill] sm:$0xff] }
 0x399   : > { %v7266_v28 = vadd.f32 %v2145_v59, %v2144_v57  ;;  %4837 = vmatpush1.bf16.msra.mxu0 %v6566_v12  ;;  %4869 = vmatpush1.bf16.msra.mxu1 %v6917_v21  ;;  %v7980_v59 = vld [vmem:[#allocation9_spill] sm:$0xff]  ;;  %v7982_v57 = vld [vmem:[#allocation10_spill] sm:$0xff] }
 0x39a   : > { %4839 = vmatprep.subr.bf16.mxu0 %v6570_v14  ;;  %4871 = vmatprep.subr.bf16.mxu1 %v6920_v45 }
 0x39b   : > { %5657 = vtanh.f32 %v7266_v28 }
 0x39d   : > { %4841 = vmatpush1.bf16.msra.mxu0 %v6598_v36  ;;  %4873 = vmatpush1.bf16.msra.mxu1 %v6935_v7 }
 0x39e   : > { %4843 = vmatprep.subr.bf16.mxu0 %v6602_v37  ;;  %4875 = vmatprep.subr.bf16.mxu1 %v6938_v3 }
 0x3a1   : > { %4845 = vmatpush1.bf16.msra.mxu0 %v6630_v61  ;;  %4877 = vmatpush1.bf16.msra.mxu1 %v6953_v27 }
 0x3a2   : > { %4847 = vmatprep.subr.bf16.mxu0 %v6634_v62  ;;  %4879 = vmatprep.subr.bf16.mxu1 %v6956_v58 }
 0x3a5   : > { %v5658_v16 = vpop.eup %5657  ;;  %4849 = vmatpush1.bf16.msra.mxu0 %v6658_v23  ;;  %4881 = vmatpush1.bf16.msra.mxu1 %v6965_v55 }
 0x3a6   : > { %v7283_v54 = vmul.f32 %v5658_v16, %v5656_v26  ;;  %4883 = vmatprep.subr.bf16.mxu0 %v6108_v41  ;;  %4915 = vmatprep.subr.bf16.mxu1 %v6643_v6  ;;  %v7983_v26 = vld [vmem:[#allocation23_spill] sm:$0xff] }
 0x3a7   : > { %v7984_v16 = vld [vmem:[#allocation11_spill] sm:$0xff] }
 0x3a8   : > { %7969 = vst [vmem:[#allocation33_spill] sm:$0xff] %v7283_v54  ;;  %2370 = vmatmul.mubr.f32.vlgmr.msra.gmra.mrb[8].mxu0 %v7283_v54  ;;  %2441 = vmatmul.mubr.f32.vlgmr.msra.gmra.mrb[40].mxu1 %v7283_v54  ;;  %v7985_v54 = vld [vmem:[#allocation24_spill] sm:$0xff] }
 0x3a9   : > { %4885 = vmatpush1.bf16.msra.mxu0 %v6131_v50  ;;  %4917 = vmatpush1.bf16.msra.mxu1 %v6663_v24 }
 0x3aa   : > { %4887 = vmatprep.subr.bf16.mxu0 %v6147_v56  ;;  %4919 = vmatprep.subr.bf16.mxu1 %v6666_v25 }
 0x3ab   : > { %2569 = vmatprep.mubr.f32.mxu0 %v7895_v10  ;;  %2640 = vmatprep.mubr.f32.mxu1 %v7895_v10 }
 0x3ad   : > { %4889 = vmatpush1.bf16.msra.mxu0 %v6167_v63  ;;  %4921 = vmatpush1.bf16.msra.mxu1 %v6685_v40 }
 0x3ae   : > { %4891 = vmatprep.subr.bf16.mxu0 %v7970_v20  ;;  %4923 = vmatprep.subr.bf16.mxu1 %v7971_v17 }
 0x3b1   : > { %4893 = vmatpush1.bf16.msra.mxu0 %v7972_v46  ;;  %4925 = vmatpush1.bf16.msra.mxu1 %v7973_v18  ;;  %v7997_v18 = vld [vmem:[#allocation35_spill] sm:$0xff] }
 0x3b2   : > { %4895 = vmatprep.subr.bf16.mxu0 %v7974_v13  ;;  %4927 = vmatprep.subr.bf16.mxu1 %v7975_v0  ;;  %v7996_v0 = vld [vmem:[#allocation34_spill] sm:$0xff] }
 0x3b5   : > { %4897 = vmatpush1.bf16.msra.mxu0 %v7976_v4  ;;  %4929 = vmatpush1.bf16.msra.mxu1 %v7977_v5  ;;  %v7987_v4 = vld [vmem:[#allocation25_spill] sm:$0xff] }
 0x3b6   : > { %4899 = vmatprep.subr.bf16.mxu0 %v7978_v42  ;;  %4931 = vmatprep.subr.bf16.mxu1 %v7979_v39  ;;  %v7988_v5 = vld [vmem:[#allocation13_spill] sm:$0xff]  ;;  %v7989_v42 = vld [vmem:[#allocation26_spill] sm:$0xff] }
 0x3b7   : > { %v7990_v39 = vld [vmem:[#allocation14_spill] sm:$0xff] }
 0x3b9   : > { %4901 = vmatpush1.bf16.msra.mxu0 %v7980_v59  ;;  %4933 = vmatpush1.bf16.msra.mxu1 %v7981_v34  ;;  %v7991_v59 = vld [vmem:[#allocation27_spill] sm:$0xff] }
 0x3ba   : > { %4903 = vmatprep.subr.bf16.mxu0 %v7982_v57  ;;  %4935 = vmatprep.subr.bf16.mxu1 %v7983_v26  ;;  %v7992_v34 = vld [vmem:[#allocation15_spill] sm:$0xff]  ;;  %v7993_v57 = vld [vmem:[#allocation28_spill] sm:$0xff] }
 0x3bb   : > { %v7994_v26 = vld [vmem:[#allocation16_spill] sm:$0xff] }
 0x3bd   : > { %4905 = vmatpush1.bf16.msra.mxu0 %v7984_v16  ;;  %4937 = vmatpush1.bf16.msra.mxu1 %v7985_v54  ;;  %v7995_v16 = vld [vmem:[#allocation29_spill] sm:$0xff] }
 0x3be   : > { %4907 = vmatprep.subr.bf16.mxu0 %v7986_v31  ;;  %4939 = vmatprep.subr.bf16.mxu1 %v7987_v4 }
 0x3c1   : > { %4909 = vmatpush1.bf16.msra.mxu0 %v7988_v5  ;;  %4941 = vmatpush1.bf16.msra.mxu1 %v7989_v42 }
 0x3c2   : > { %4911 = vmatprep.subr.bf16.mxu0 %v7990_v39  ;;  %4943 = vmatprep.subr.bf16.mxu1 %v7991_v59 }
 0x3c5   : > { %4913 = vmatpush1.bf16.msra.mxu0 %v7992_v34  ;;  %4945 = vmatpush1.bf16.msra.mxu1 %v7993_v57 }
 0x3c6   : > { %4947 = vmatprep.subr.bf16.mxu0 %v7994_v26  ;;  %4979 = vmatprep.subr.bf16.mxu1 %v7995_v16 }
 0x45b   : > { %v2221_v54 = vpop.f32.mrb[22].mxu0  ;;  %v2292_v31 = vpop.f32.mrb[22].mxu1 }
 0x45c   : > { %v2297_v4 = vadd.f32 %v2221_v54, %v7996_v0  ;;  %v2223_v13 = vpop.f32.mrb[23].mxu0  ;;  %v2294_v5 = vpop.f32.mrb[23].mxu1  ;;  %v5464_v57 = vadd.f32 %v2292_v31, %v7030_v60 }
 0x45d   : > { %v2298_v42 = vadd.f32 %v2223_v13, %v7997_v18  ;;  %v5465_v34 = vadd.f32 %v2294_v5, %v7033_v19 }
 0x45e   : > { %v4151_v46 = vmul.f32 -1.442695, %v2297_v4 }
 0x45f   : > { %v4152_v39 = vmul.f32 -1.442695, %v2298_v42  ;;  %v4153_v59 = vmul.f32 -1.442695, %v5465_v34 }
 0x460   : > { %5659 = vpow2.f32 %v4151_v46 }
 0x461   : > { %5661 = vpow2.f32 %v4152_v39 }
 0x462   : > { %5663 = vpow2.f32 %v4153_v59 }
 0x463   : > { %5665 = vtanh.f32 %v5464_v57 }
 0x46a   : > { %v5660_v26 = vpop.eup %5659 }
 0x46b   : > { %v5662_v17 = vpop.eup %5661  ;;  %v2454_v16 = vadd.f32 1.0, %v5660_v26 }
 0x46c   : > { %v2460_v20 = vadd.f32 1.0, %v5662_v17  ;;  %v5664_v54 = vpop.eup %5663 }
 0x46d   : > { %5667 = vrcp.f32 %v2454_v16  ;;  %v5666_v0 = vpop.eup %5665  ;;  %v2467_v46 = vadd.f32 1.0, %v5664_v54 }
 0x46e   : > { %5669 = vrcp.f32 %v2460_v20 }
 0x46f   : > { %5671 = vrcp.f32 %v2467_v46 }
 0x477   : > { %v5668_v18 = vpop.eup %5667 }
 0x478   : > { %v5670_v13 = vpop.eup %5669  ;;  %v2471_v4 = vmul.f32 %v5668_v18, %v5666_v0 }
 0x479   : > { %v2470_v42 = vmul.f32 %v5670_v13, %v7236_v47  ;;  %v5672_v47 = vpop.eup %5671 }
 0x47b   : > { %v7328_v5 = vadd.f32 %v2471_v4, %v2470_v42  ;;  %v2371_v39 = vpop.f32.mrb[8].mxu0  ;;  %v2442_v31 = vpop.f32.mrb[40].mxu1 }
 0x47c   : > { %v5482_v34 = vadd.f32 %v2371_v39, %v7043_v43  ;;  %v2373_v59 = vpop.f32.mrb[9].mxu0  ;;  %v2444_v57 = vpop.f32.mrb[41].mxu1  ;;  %v5498_v18 = vadd.f32 %v2442_v31, %v7053_v32 }
 0x47d   : > { %v5483_v17 = vadd.f32 %v2373_v59, %v7040_v2  ;;  %5673 = vtanh.f32 %v7328_v5  ;;  %v5499_v16 = vadd.f32 %v2444_v57, %v7058_v35 }
 0x47e   : > { %v4154_v20 = vmul.f32 -1.442695, %v5482_v34 }
 0x47f   : > { %v4155_v26 = vmul.f32 -1.442695, %v5483_v17  ;;  %v4156_v0 = vmul.f32 -1.442695, %v5499_v16 }
 0x480   : > { %5675 = vpow2.f32 %v4154_v20 }
 0x481   : > { %5677 = vpow2.f32 %v4155_v26 }
 0x482   : > { %5679 = vpow2.f32 %v4156_v0  ;;  %v8000_v0 = vld [vmem:[#allocation4_spill] sm:$0xff] }
 0x483   : > { %5681 = vtanh.f32 %v5498_v18  ;;  %v8001_v18 = vld [vmem:[#allocation17_spill] sm:$0xff] }
 0x487   : > { %v5674_v54 = vpop.eup %5673 }
 0x488   : > { %v7335_v13 = vmul.f32 %v5674_v54, %v5672_v47 }
 0x48a   : > { %7998 = vst [vmem:[#allocation34_spill] sm:$0xff] %v7335_v13  ;;  %v5676_v4 = vpop.eup %5675  ;;  %2570 = vmatmul.mubr.f32.vlgmr.msra.gmra.mrb[24].mxu0 %v7335_v13  ;;  %2641 = vmatmul.mubr.f32.vlgmr.msra.gmra.mrb[24].mxu1 %v7335_v13  ;;  %v8016_v13 = vld [vmem:[#allocation12_spill] sm:$0xff] }
 0x48b   : > { %v5678_v46 = vpop.eup %5677  ;;  %v2478_v42 = vadd.f32 1.0, %v5676_v4  ;;  %4949 = vmatpush1.bf16.msra.mxu0 %v6436_v52  ;;  %4981 = vmatpush1.bf16.msra.mxu1 %v6841_v38  ;;  %v8002_v4 = vld [vmem:[#allocation5_spill] sm:$0xff] }
 0x48c   : > { %v2484_v39 = vadd.f32 1.0, %v5678_v46  ;;  %4951 = vmatprep.subr.bf16.mxu0 %v6440_v53  ;;  %4983 = vmatprep.subr.bf16.mxu1 %v6844_v44  ;;  %v5680_v31 = vpop.eup %5679  ;;  %v8003_v46 = vld [vmem:[#allocation18_spill] sm:$0xff] }
 0x48d   : > { %5683 = vrcp.f32 %v2478_v42  ;;  %2719 = vmatprep.mubr.f32.mxu0 %v7895_v10  ;;  %2790 = vmatprep.mubr.f32.mxu1 %v7895_v10  ;;  %v5682_v34 = vpop.eup %5681  ;;  %v2491_v20 = vadd.f32 1.0, %v5680_v31  ;;  %v8004_v42 = vld [vmem:[#allocation6_spill] sm:$0xff]  ;;  %v8006_v31 = vld [vmem:[#allocation7_spill] sm:$0xff] }
 0x48e   : > { %5685 = vrcp.f32 %v2484_v39  ;;  %v8005_v39 = vld [vmem:[#allocation19_spill] sm:$0xff] }
 0x48f   : > { %4953 = vmatpush1.bf16.msra.mxu0 %v6469_v8  ;;  %4985 = vmatpush1.bf16.msra.mxu1 %v6862_v1  ;;  %5687 = vrcp.f32 %v2491_v20  ;;  %v8011_v20 = vld [vmem:[#allocation22_spill] sm:$0xff] }
 0x490   : > { %4955 = vmatprep.subr.bf16.mxu0 %v6474_v11  ;;  %4987 = vmatprep.subr.bf16.mxu1 %v6866_v51 }
 0x493   : > { %4957 = vmatpush1.bf16.msra.mxu0 %v6502_v29  ;;  %4989 = vmatpush1.bf16.msra.mxu1 %v6881_v22 }
 0x494   : > { %4959 = vmatprep.subr.bf16.mxu0 %v6506_v30  ;;  %4991 = vmatprep.subr.bf16.mxu1 %v6884_v33 }
 0x497   : > { %v5684_v59 = vpop.eup %5683  ;;  %4961 = vmatpush1.bf16.msra.mxu0 %v6534_v48  ;;  %4993 = vmatpush1.bf16.msra.mxu1 %v6899_v15 }
 0x498   : > { %v5686_v57 = vpop.eup %5685  ;;  %v2495_v17 = vmul.f32 %v5684_v59, %v5682_v34  ;;  %4963 = vmatprep.subr.bf16.mxu0 %v6538_v49  ;;  %4995 = vmatprep.subr.bf16.mxu1 %v6902_v9  ;;  %v8007_v34 = vld [vmem:[#allocation20_spill] sm:$0xff] }
 0x499   : > { %v2494_v26 = vmul.f32 %v5686_v57, %v7266_v28  ;;  %v5688_v28 = vpop.eup %5687  ;;  %v8008_v59 = vld [vmem:[#allocation8_spill] sm:$0xff]  ;;  %v8009_v57 = vld [vmem:[#allocation21_spill] sm:$0xff] }
 0x49b   : > { %v7358_v16 = vadd.f32 %v2495_v17, %v2494_v26  ;;  %4965 = vmatpush1.bf16.msra.mxu0 %v6566_v12  ;;  %4997 = vmatpush1.bf16.msra.mxu1 %v6917_v21  ;;  %v8010_v17 = vld [vmem:[#allocation9_spill] sm:$0xff]  ;;  %v8012_v26 = vld [vmem:[#allocation10_spill] sm:$0xff] }
 0x49c   : > { %4967 = vmatprep.subr.bf16.mxu0 %v6570_v14  ;;  %4999 = vmatprep.subr.bf16.mxu1 %v6920_v45 }
 0x49d   : > { %5689 = vtanh.f32 %v7358_v16 }
 0x49f   : > { %4969 = vmatpush1.bf16.msra.mxu0 %v6598_v36  ;;  %5001 = vmatpush1.bf16.msra.mxu1 %v6935_v7 }
 0x4a0   : > { %4971 = vmatprep.subr.bf16.mxu0 %v6602_v37  ;;  %5003 = vmatprep.subr.bf16.mxu1 %v6938_v3 }
 0x4a3   : > { %4973 = vmatpush1.bf16.msra.mxu0 %v6630_v61  ;;  %5005 = vmatpush1.bf16.msra.mxu1 %v6953_v27 }
 0x4a4   : > { %4975 = vmatprep.subr.bf16.mxu0 %v6634_v62  ;;  %5007 = vmatprep.subr.bf16.mxu1 %v6956_v58 }
 0x4a7   : > { %v5690_v47 = vpop.eup %5689  ;;  %4977 = vmatpush1.bf16.msra.mxu0 %v6658_v23  ;;  %5009 = vmatpush1.bf16.msra.mxu1 %v6965_v55 }
 0x4a8   : > { %v7375_v54 = vmul.f32 %v5690_v47, %v5688_v28  ;;  %5011 = vmatprep.subr.bf16.mxu0 %v6108_v41  ;;  %5043 = vmatprep.subr.bf16.mxu1 %v6643_v6  ;;  %v8013_v28 = vld [vmem:[#allocation23_spill] sm:$0xff] }
 0x4a9   : > { %v8014_v47 = vld [vmem:[#allocation11_spill] sm:$0xff] }
 0x4aa   : > { %7999 = vst [vmem:[#allocation35_spill] sm:$0xff] %v7375_v54  ;;  %2720 = vmatmul.mubr.f32.vlgmr.msra.gmra.mrb[6].mxu0 %v7375_v54  ;;  %2791 = vmatmul.mubr.f32.vlgmr.msra.gmra.mrb[38].mxu1 %v7375_v54  ;;  %v8015_v54 = vld [vmem:[#allocation24_spill] sm:$0xff] }
 0x4ab   : > { %5013 = vmatpush1.bf16.msra.mxu0 %v6131_v50  ;;  %5045 = vmatpush1.bf16.msra.mxu1 %v6663_v24 }
 0x4ac   : > { %5015 = vmatprep.subr.bf16.mxu0 %v6147_v56  ;;  %5047 = vmatprep.subr.bf16.mxu1 %v6666_v25 }
 0x4ad   : > { %2919 = vmatprep.mubr.f32.mxu0 %v7895_v10  ;;  %2990 = vmatprep.mubr.f32.mxu1 %v7895_v10 }
 0x4af   : > { %5017 = vmatpush1.bf16.msra.mxu0 %v6167_v63  ;;  %5049 = vmatpush1.bf16.msra.mxu1 %v6685_v40 }
 0x4b0   : > { %5019 = vmatprep.subr.bf16.mxu0 %v8000_v0  ;;  %5051 = vmatprep.subr.bf16.mxu1 %v8001_v18 }
 0x4b3   : > { %5021 = vmatpush1.bf16.msra.mxu0 %v8002_v4  ;;  %5053 = vmatpush1.bf16.msra.mxu1 %v8003_v46  ;;  %v8027_v46 = vld [vmem:[#allocation37_spill] sm:$0xff] }
 0x4b4   : > { %5023 = vmatprep.subr.bf16.mxu0 %v8004_v42  ;;  %5055 = vmatprep.subr.bf16.mxu1 %v8005_v39  ;;  %v8026_v39 = vld [vmem:[#allocation36_spill] sm:$0xff] }
 0x4b7   : > { %5025 = vmatpush1.bf16.msra.mxu0 %v8006_v31  ;;  %5057 = vmatpush1.bf16.msra.mxu1 %v8007_v34  ;;  %v8017_v31 = vld [vmem:[#allocation25_spill] sm:$0xff] }
 0x4b8   : > { %5027 = vmatprep.subr.bf16.mxu0 %v8008_v59  ;;  %5059 = vmatprep.subr.bf16.mxu1 %v8009_v57  ;;  %v8018_v34 = vld [vmem:[#allocation13_spill] sm:$0xff]  ;;  %v8019_v59 = vld [vmem:[#allocation26_spill] sm:$0xff] }
 0x4b9   : > { %v8020_v57 = vld [vmem:[#allocation14_spill] sm:$0xff] }
 0x4bb   : > { %5029 = vmatpush1.bf16.msra.mxu0 %v8010_v17  ;;  %5061 = vmatpush1.bf16.msra.mxu1 %v8011_v20  ;;  %v8021_v17 = vld [vmem:[#allocation27_spill] sm:$0xff] }
 0x4bc   : > { %5031 = vmatprep.subr.bf16.mxu0 %v8012_v26  ;;  %5063 = vmatprep.subr.bf16.mxu1 %v8013_v28  ;;  %v8022_v20 = vld [vmem:[#allocation15_spill] sm:$0xff]  ;;  %v8023_v26 = vld [vmem:[#allocation28_spill] sm:$0xff] }
 0x4bd   : > { %v8024_v28 = vld [vmem:[#allocation16_spill] sm:$0xff] }
 0x4bf   : > { %5033 = vmatpush1.bf16.msra.mxu0 %v8014_v47  ;;  %5065 = vmatpush1.bf16.msra.mxu1 %v8015_v54  ;;  %v8025_v47 = vld [vmem:[#allocation29_spill] sm:$0xff] }
 0x4c0   : > { %5035 = vmatprep.subr.bf16.mxu0 %v8016_v13  ;;  %5067 = vmatprep.subr.bf16.mxu1 %v8017_v31 }
 0x4c3   : > { %5037 = vmatpush1.bf16.msra.mxu0 %v8018_v34  ;;  %5069 = vmatpush1.bf16.msra.mxu1 %v8019_v59 }
 0x4c4   : > { %5039 = vmatprep.subr.bf16.mxu0 %v8020_v57  ;;  %5071 = vmatprep.subr.bf16.mxu1 %v8021_v17 }
 0x4c7   : > { %5041 = vmatpush1.bf16.msra.mxu0 %v8022_v20  ;;  %5073 = vmatpush1.bf16.msra.mxu1 %v8023_v26 }
 0x4c8   : > { %5075 = vmatprep.subr.bf16.mxu0 %v8024_v28  ;;  %5107 = vmatprep.subr.bf16.mxu1 %v8025_v47 }
 0x55d   : > { %v2571_v54 = vpop.f32.mrb[24].mxu0  ;;  %v2642_v13 = vpop.f32.mrb[24].mxu1 }
 0x55e   : > { %v2647_v31 = vadd.f32 %v2571_v54, %v8026_v39  ;;  %v2573_v42 = vpop.f32.mrb[25].mxu0  ;;  %v2644_v34 = vpop.f32.mrb[25].mxu1  ;;  %v5466_v26 = vadd.f32 %v2642_v13, %v7030_v60 }
 0x55f   : > { %v2648_v59 = vadd.f32 %v2573_v42, %v8027_v46  ;;  %v5467_v20 = vadd.f32 %v2644_v34, %v7033_v19 }
 0x560   : > { %v4157_v4 = vmul.f32 -1.442695, %v2647_v31 }
 0x561   : > { %v4158_v57 = vmul.f32 -1.442695, %v2648_v59  ;;  %v4159_v17 = vmul.f32 -1.442695, %v5467_v20 }
 0x562   : > { %5691 = vpow2.f32 %v4157_v4 }
 0x563   : > { %5693 = vpow2.f32 %v4158_v57 }
 0x564   : > { %5695 = vpow2.f32 %v4159_v17 }
 0x565   : > { %5697 = vtanh.f32 %v5466_v26 }
 0x56c   : > { %v5692_v28 = vpop.eup %5691 }
 0x56d   : > { %v5694_v18 = vpop.eup %5693  ;;  %v2804_v47 = vadd.f32 1.0, %v5692_v28 }
 0x56e   : > { %v2810_v0 = vadd.f32 1.0, %v5694_v18  ;;  %v5696_v54 = vpop.eup %5695 }
 0x56f   : > { %5699 = vrcp.f32 %v2804_v47  ;;  %v5698_v39 = vpop.eup %5697  ;;  %v2817_v4 = vadd.f32 1.0, %v5696_v54 }
 0x570   : > { %5701 = vrcp.f32 %v2810_v0 }
 0x571   : > { %5703 = vrcp.f32 %v2817_v4 }
 0x579   : > { %v5700_v46 = vpop.eup %5699 }
 0x57a   : > { %v5702_v42 = vpop.eup %5701  ;;  %v2821_v31 = vmul.f32 %v5700_v46, %v5698_v39 }
 0x57b   : > { %v2820_v59 = vmul.f32 %v5702_v42, %v7328_v5  ;;  %v5704_v5 = vpop.eup %5703 }
 0x57d   : > { %v7420_v34 = vadd.f32 %v2821_v31, %v2820_v59  ;;  %v2721_v57 = vpop.f32.mrb[6].mxu0  ;;  %v2792_v13 = vpop.f32.mrb[38].mxu1 }
 0x57e   : > { %v5480_v20 = vadd.f32 %v2721_v57, %v7043_v43  ;;  %v2723_v17 = vpop.f32.mrb[7].mxu0  ;;  %v2794_v26 = vpop.f32.mrb[39].mxu1  ;;  %v5496_v46 = vadd.f32 %v2792_v13, %v7053_v32 }
 0x57f   : > { %v5481_v18 = vadd.f32 %v2723_v17, %v7040_v2  ;;  %5705 = vtanh.f32 %v7420_v34  ;;  %v5497_v47 = vadd.f32 %v2794_v26, %v7058_v35 }
 0x580   : > { %v4160_v0 = vmul.f32 -1.442695, %v5480_v20 }
 0x581   : > { %v4161_v28 = vmul.f32 -1.442695, %v5481_v18  ;;  %v4162_v39 = vmul.f32 -1.442695, %v5497_v47 }
 0x582   : > { %5707 = vpow2.f32 %v4160_v0 }
 0x583   : > { %5709 = vpow2.f32 %v4161_v28 }
 0x584   : > { %5711 = vpow2.f32 %v4162_v39  ;;  %v8030_v39 = vld [vmem:[#allocation4_spill] sm:$0xff] }
 0x585   : > { %5713 = vtanh.f32 %v5496_v46  ;;  %v8031_v46 = vld [vmem:[#allocation17_spill] sm:$0xff] }
 0x589   : > { %v5706_v54 = vpop.eup %5705 }
 0x58a   : > { %v7427_v42 = vmul.f32 %v5706_v54, %v5704_v5 }
 0x58c   : > { %8028 = vst [vmem:[#allocation36_spill] sm:$0xff] %v7427_v42  ;;  %v5708_v31 = vpop.eup %5707  ;;  %2920 = vmatmul.mubr.f32.vlgmr.msra.gmra.mrb[26].mxu0 %v7427_v42  ;;  %2991 = vmatmul.mubr.f32.vlgmr.msra.gmra.mrb[26].mxu1 %v7427_v42  ;;  %v8045_v42 = vld [vmem:[#allocation24_spill] sm:$0xff] }
 0x58d   : > { %v5710_v4 = vpop.eup %5709  ;;  %v2828_v59 = vadd.f32 1.0, %v5708_v31  ;;  %5077 = vmatpush1.bf16.msra.mxu0 %v6436_v52  ;;  %5109 = vmatpush1.bf16.msra.mxu1 %v6841_v38  ;;  %v8032_v31 = vld [vmem:[#allocation5_spill] sm:$0xff] }
 0x58e   : > { %v2834_v57 = vadd.f32 1.0, %v5710_v4  ;;  %5079 = vmatprep.subr.bf16.mxu0 %v6440_v53  ;;  %5111 = vmatprep.subr.bf16.mxu1 %v6844_v44  ;;  %v5712_v13 = vpop.eup %5711  ;;  %v8033_v4 = vld [vmem:[#allocation18_spill] sm:$0xff] }
 0x58f   : > { %5715 = vrcp.f32 %v2828_v59  ;;  %3069 = vmatprep.mubr.f32.mxu0 %v7895_v10  ;;  %3140 = vmatprep.mubr.f32.mxu1 %v7895_v10  ;;  %v5714_v20 = vpop.eup %5713  ;;  %v2841_v0 = vadd.f32 1.0, %v5712_v13  ;;  %v8034_v59 = vld [vmem:[#allocation6_spill] sm:$0xff]  ;;  %v8036_v13 = vld [vmem:[#allocation7_spill] sm:$0xff] }
 0x590   : > { %5717 = vrcp.f32 %v2834_v57  ;;  %v8035_v57 = vld [vmem:[#allocation19_spill] sm:$0xff] }
 0x591   : > { %5081 = vmatpush1.bf16.msra.mxu0 %v6469_v8  ;;  %5113 = vmatpush1.bf16.msra.mxu1 %v6862_v1  ;;  %5719 = vrcp.f32 %v2841_v0  ;;  %v8041_v0 = vld [vmem:[#allocation22_spill] sm:$0xff] }
 0x592   : > { %5083 = vmatprep.subr.bf16.mxu0 %v6474_v11  ;;  %5115 = vmatprep.subr.bf16.mxu1 %v6866_v51 }
 0x595   : > { %5085 = vmatpush1.bf16.msra.mxu0 %v6502_v29  ;;  %5117 = vmatpush1.bf16.msra.mxu1 %v6881_v22 }
 0x596   : > { %5087 = vmatprep.subr.bf16.mxu0 %v6506_v30  ;;  %5119 = vmatprep.subr.bf16.mxu1 %v6884_v33 }
 0x599   : > { %v5716_v17 = vpop.eup %5715  ;;  %5089 = vmatpush1.bf16.msra.mxu0 %v6534_v48  ;;  %5121 = vmatpush1.bf16.msra.mxu1 %v6899_v15 }
 0x59a   : > { %v5718_v26 = vpop.eup %5717  ;;  %v2845_v18 = vmul.f32 %v5716_v17, %v5714_v20  ;;  %5091 = vmatprep.subr.bf16.mxu0 %v6538_v49  ;;  %5123 = vmatprep.subr.bf16.mxu1 %v6902_v9  ;;  %v8037_v20 = vld [vmem:[#allocation20_spill] sm:$0xff] }
 0x59b   : > { %v2844_v28 = vmul.f32 %v5718_v26, %v7358_v16  ;;  %v5720_v16 = vpop.eup %5719  ;;  %v8038_v17 = vld [vmem:[#allocation8_spill] sm:$0xff]  ;;  %v8039_v26 = vld [vmem:[#allocation21_spill] sm:$0xff] }
 0x59d   : > { %v7450_v47 = vadd.f32 %v2845_v18, %v2844_v28  ;;  %5093 = vmatpush1.bf16.msra.mxu0 %v6566_v12  ;;  %5125 = vmatpush1.bf16.msra.mxu1 %v6917_v21  ;;  %v8040_v18 = vld [vmem:[#allocation9_spill] sm:$0xff]  ;;  %v8042_v28 = vld [vmem:[#allocation10_spill] sm:$0xff] }
 0x59e   : > { %5095 = vmatprep.subr.bf16.mxu0 %v6570_v14  ;;  %5127 = vmatprep.subr.bf16.mxu1 %v6920_v45 }
 0x59f   : > { %5721 = vtanh.f32 %v7450_v47 }
 0x5a1   : > { %5097 = vmatpush1.bf16.msra.mxu0 %v6598_v36  ;;  %5129 = vmatpush1.bf16.msra.mxu1 %v6935_v7 }
 0x5a2   : > { %5099 = vmatprep.subr.bf16.mxu0 %v6602_v37  ;;  %5131 = vmatprep.subr.bf16.mxu1 %v6938_v3 }
 0x5a5   : > { %5101 = vmatpush1.bf16.msra.mxu0 %v6630_v61  ;;  %5133 = vmatpush1.bf16.msra.mxu1 %v6953_v27 }
 0x5a6   : > { %5103 = vmatprep.subr.bf16.mxu0 %v6634_v62  ;;  %5135 = vmatprep.subr.bf16.mxu1 %v6956_v58 }
 0x5a9   : > { %v5722_v5 = vpop.eup %5721  ;;  %5105 = vmatpush1.bf16.msra.mxu0 %v6658_v23  ;;  %5137 = vmatpush1.bf16.msra.mxu1 %v6965_v55 }
 0x5aa   : > { %v7467_v54 = vmul.f32 %v5722_v5, %v5720_v16  ;;  %5139 = vmatprep.subr.bf16.mxu0 %v6108_v41  ;;  %5171 = vmatprep.subr.bf16.mxu1 %v6643_v6  ;;  %v8043_v16 = vld [vmem:[#allocation23_spill] sm:$0xff] }
 0x5ab   : > { %v8044_v5 = vld [vmem:[#allocation11_spill] sm:$0xff] }
 0x5ac   : > { %8029 = vst [vmem:[#allocation37_spill] sm:$0xff] %v7467_v54  ;;  %3070 = vmatmul.mubr.f32.vlgmr.msra.gmra.mrb[4].mxu0 %v7467_v54  ;;  %3141 = vmatmul.mubr.f32.vlgmr.msra.gmra.mrb[36].mxu1 %v7467_v54  ;;  %v8046_v54 = vld [vmem:[#allocation12_spill] sm:$0xff] }
 0x5ad   : > { %5141 = vmatpush1.bf16.msra.mxu0 %v6131_v50  ;;  %5173 = vmatpush1.bf16.msra.mxu1 %v6663_v24 }
 0x5ae   : > { %5143 = vmatprep.subr.bf16.mxu0 %v6147_v56  ;;  %5175 = vmatprep.subr.bf16.mxu1 %v6666_v25 }
 0x5af   : > { %3269 = vmatprep.mubr.f32.mxu0 %v7895_v10  ;;  %3340 = vmatprep.mubr.f32.mxu1 %v7895_v10 }
 0x5b1   : > { %5145 = vmatpush1.bf16.msra.mxu0 %v6167_v63  ;;  %5177 = vmatpush1.bf16.msra.mxu1 %v6685_v40 }
 0x5b2   : > { %5147 = vmatprep.subr.bf16.mxu0 %v8030_v39  ;;  %5179 = vmatprep.subr.bf16.mxu1 %v8031_v46 }
 0x5b5   : > { %5149 = vmatpush1.bf16.msra.mxu0 %v8032_v31  ;;  %5181 = vmatpush1.bf16.msra.mxu1 %v8033_v4  ;;  %v8057_v4 = vld [vmem:[#allocation39_spill] sm:$0xff] }
 0x5b6   : > { %5151 = vmatprep.subr.bf16.mxu0 %v8034_v59  ;;  %5183 = vmatprep.subr.bf16.mxu1 %v8035_v57  ;;  %v8056_v57 = vld [vmem:[#allocation38_spill] sm:$0xff] }
 0x5b9   : > { %5153 = vmatpush1.bf16.msra.mxu0 %v8036_v13  ;;  %5185 = vmatpush1.bf16.msra.mxu1 %v8037_v20  ;;  %v8047_v13 = vld [vmem:[#allocation25_spill] sm:$0xff] }
 0x5ba   : > { %5155 = vmatprep.subr.bf16.mxu0 %v8038_v17  ;;  %5187 = vmatprep.subr.bf16.mxu1 %v8039_v26  ;;  %v8048_v20 = vld [vmem:[#allocation13_spill] sm:$0xff]  ;;  %v8049_v17 = vld [vmem:[#allocation26_spill] sm:$0xff] }
 0x5bb   : > { %v8050_v26 = vld [vmem:[#allocation14_spill] sm:$0xff] }
 0x5bd   : > { %5157 = vmatpush1.bf16.msra.mxu0 %v8040_v18  ;;  %5189 = vmatpush1.bf16.msra.mxu1 %v8041_v0  ;;  %v8051_v18 = vld [vmem:[#allocation27_spill] sm:$0xff] }
 0x5be   : > { %5159 = vmatprep.subr.bf16.mxu0 %v8042_v28  ;;  %5191 = vmatprep.subr.bf16.mxu1 %v8043_v16  ;;  %v8052_v0 = vld [vmem:[#allocation15_spill] sm:$0xff]  ;;  %v8053_v28 = vld [vmem:[#allocation28_spill] sm:$0xff] }
 0x5bf   : > { %v8054_v16 = vld [vmem:[#allocation16_spill] sm:$0xff] }
 0x5c1   : > { %5161 = vmatpush1.bf16.msra.mxu0 %v8044_v5  ;;  %5193 = vmatpush1.bf16.msra.mxu1 %v8045_v42  ;;  %v8055_v5 = vld [vmem:[#allocation29_spill] sm:$0xff] }
 0x5c2   : > { %5163 = vmatprep.subr.bf16.mxu0 %v8046_v54  ;;  %5195 = vmatprep.subr.bf16.mxu1 %v8047_v13 }
 0x5c5   : > { %5165 = vmatpush1.bf16.msra.mxu0 %v8048_v20  ;;  %5197 = vmatpush1.bf16.msra.mxu1 %v8049_v17 }
 0x5c6   : > { %5167 = vmatprep.subr.bf16.mxu0 %v8050_v26  ;;  %5199 = vmatprep.subr.bf16.mxu1 %v8051_v18 }
 0x5c9   : > { %5169 = vmatpush1.bf16.msra.mxu0 %v8052_v0  ;;  %5201 = vmatpush1.bf16.msra.mxu1 %v8053_v28 }
 0x5ca   : > { %5203 = vmatprep.subr.bf16.mxu0 %v8054_v16  ;;  %5235 = vmatprep.subr.bf16.mxu1 %v8055_v5 }
 0x65f   : > { %v2921_v42 = vpop.f32.mrb[26].mxu0  ;;  %v2992_v54 = vpop.f32.mrb[26].mxu1 }
 0x660   : > { %v2997_v13 = vadd.f32 %v2921_v42, %v8056_v57  ;;  %v2923_v59 = vpop.f32.mrb[27].mxu0  ;;  %v2994_v20 = vpop.f32.mrb[27].mxu1  ;;  %v5468_v28 = vadd.f32 %v2992_v54, %v7030_v60 }
 0x661   : > { %v2998_v17 = vadd.f32 %v2923_v59, %v8057_v4  ;;  %v5469_v0 = vadd.f32 %v2994_v20, %v7033_v19 }
 0x662   : > { %v4163_v31 = vmul.f32 -1.442695, %v2997_v13 }
 0x663   : > { %v4164_v26 = vmul.f32 -1.442695, %v2998_v17  ;;  %v4165_v18 = vmul.f32 -1.442695, %v5469_v0 }
 0x664   : > { %5723 = vpow2.f32 %v4163_v31 }
 0x665   : > { %5725 = vpow2.f32 %v4164_v26 }
 0x666   : > { %5727 = vpow2.f32 %v4165_v18 }
 0x667   : > { %5729 = vtanh.f32 %v5468_v28 }
 0x66e   : > { %v5724_v16 = vpop.eup %5723 }
 0x66f   : > { %v5726_v46 = vpop.eup %5725  ;;  %v3154_v5 = vadd.f32 1.0, %v5724_v16 }
 0x670   : > { %v3160_v39 = vadd.f32 1.0, %v5726_v46  ;;  %v5728_v42 = vpop.eup %5727 }
 0x671   : > { %5731 = vrcp.f32 %v3154_v5  ;;  %v5730_v57 = vpop.eup %5729  ;;  %v3167_v31 = vadd.f32 1.0, %v5728_v42 }
 0x672   : > { %5733 = vrcp.f32 %v3160_v39 }
 0x673   : > { %5735 = vrcp.f32 %v3167_v31 }
 0x67b   : > { %v5732_v4 = vpop.eup %5731 }
 0x67c   : > { %v5734_v59 = vpop.eup %5733  ;;  %v3171_v13 = vmul.f32 %v5732_v4, %v5730_v57 }
 0x67d   : > { %v3170_v17 = vmul.f32 %v5734_v59, %v7420_v34  ;;  %v5736_v34 = vpop.eup %5735 }
 0x67f   : > { %v7512_v20 = vadd.f32 %v3171_v13, %v3170_v17  ;;  %v3071_v26 = vpop.f32.mrb[4].mxu0  ;;  %v3142_v54 = vpop.f32.mrb[36].mxu1 }
 0x680   : > { %v5478_v0 = vadd.f32 %v3071_v26, %v7043_v43  ;;  %v3073_v18 = vpop.f32.mrb[5].mxu0  ;;  %v3144_v28 = vpop.f32.mrb[37].mxu1  ;;  %v5494_v4 = vadd.f32 %v3142_v54, %v7053_v32 }
 0x681   : > { %v5479_v46 = vadd.f32 %v3073_v18, %v7040_v2  ;;  %5737 = vtanh.f32 %v7512_v20  ;;  %v5495_v5 = vadd.f32 %v3144_v28, %v7058_v35 }
 0x682   : > { %v4166_v39 = vmul.f32 -1.442695, %v5478_v0 }
 0x683   : > { %v4167_v16 = vmul.f32 -1.442695, %v5479_v46  ;;  %v4168_v57 = vmul.f32 -1.442695, %v5495_v5 }
 0x684   : > { %5739 = vpow2.f32 %v4166_v39 }
 0x685   : > { %5741 = vpow2.f32 %v4167_v16 }
 0x686   : > { %5743 = vpow2.f32 %v4168_v57  ;;  %v8060_v57 = vld [vmem:[#allocation5_spill] sm:$0xff] }
 0x687   : > { %5745 = vtanh.f32 %v5494_v4  ;;  %v8065_v4 = vld [vmem:[#allocation20_spill] sm:$0xff] }
 0x68b   : > { %v5738_v42 = vpop.eup %5737 }
 0x68c   : > { %v7519_v59 = vmul.f32 %v5738_v42, %v5736_v34 }
 0x68e   : > { %v5740_v13 = vpop.eup %5739  ;;  %3270 = vmatmul.mubr.f32.vlgmr.msra.gmra.mrb[28].mxu0 %v7519_v59  ;;  %3341 = vmatmul.mubr.f32.vlgmr.msra.gmra.mrb[28].mxu1 %v7519_v59 }
 0x68f   : > { %v5742_v31 = vpop.eup %5741  ;;  %v3178_v17 = vadd.f32 1.0, %v5740_v13  ;;  %5205 = vmatpush1.bf16.msra.mxu0 %v6436_v52  ;;  %5237 = vmatpush1.bf16.msra.mxu1 %v6841_v38  ;;  %v8066_v13 = vld [vmem:[#allocation8_spill] sm:$0xff] }
 0x690   : > { %v3184_v26 = vadd.f32 1.0, %v5742_v31  ;;  %5207 = vmatprep.subr.bf16.mxu0 %v6440_v53  ;;  %5239 = vmatprep.subr.bf16.mxu1 %v6844_v44  ;;  %v5744_v54 = vpop.eup %5743  ;;  %v8069_v31 = vld [vmem:[#allocation22_spill] sm:$0xff] }
 0x691   : > { %5747 = vrcp.f32 %v3178_v17  ;;  %3419 = vmatprep.mubr.f32.mxu0 %v7895_v10  ;;  %3490 = vmatprep.mubr.f32.mxu1 %v7895_v10  ;;  %v5746_v0 = vpop.eup %5745  ;;  %v3191_v39 = vadd.f32 1.0, %v5744_v54  ;;  %v8070_v17 = vld [vmem:[#allocation10_spill] sm:$0xff]  ;;  %v8072_v54 = vld [vmem:[#allocation11_spill] sm:$0xff] }
 0x692   : > { %5749 = vrcp.f32 %v3184_v26  ;;  %v8071_v26 = vld [vmem:[#allocation23_spill] sm:$0xff] }
 0x693   : > { %5209 = vmatpush1.bf16.msra.mxu0 %v6469_v8  ;;  %5241 = vmatpush1.bf16.msra.mxu1 %v6862_v1  ;;  %5751 = vrcp.f32 %v3191_v39  ;;  %v8077_v39 = vld [vmem:[#allocation26_spill] sm:$0xff] }
 0x694   : > { %5211 = vmatprep.subr.bf16.mxu0 %v6474_v11  ;;  %5243 = vmatprep.subr.bf16.mxu1 %v6866_v51 }
 0x697   : > { %5213 = vmatpush1.bf16.msra.mxu0 %v6502_v29  ;;  %5245 = vmatpush1.bf16.msra.mxu1 %v6881_v22 }
 0x698   : > { %5215 = vmatprep.subr.bf16.mxu0 %v6506_v30  ;;  %5247 = vmatprep.subr.bf16.mxu1 %v6884_v33 }
 0x69b   : > { %v5748_v18 = vpop.eup %5747  ;;  %5217 = vmatpush1.bf16.msra.mxu0 %v6534_v48  ;;  %5249 = vmatpush1.bf16.msra.mxu1 %v6899_v15 }
 0x69c   : > { %v5750_v28 = vpop.eup %5749  ;;  %v3195_v46 = vmul.f32 %v5748_v18, %v5746_v0  ;;  %5219 = vmatprep.subr.bf16.mxu0 %v6538_v49  ;;  %5251 = vmatprep.subr.bf16.mxu1 %v6902_v9  ;;  %v8073_v0 = vld [vmem:[#allocation24_spill] sm:$0xff] }
 0x69d   : > { %v3194_v16 = vmul.f32 %v5750_v28, %v7450_v47  ;;  %v5752_v47 = vpop.eup %5751  ;;  %v8074_v18 = vld [vmem:[#allocation12_spill] sm:$0xff]  ;;  %v8075_v28 = vld [vmem:[#allocation25_spill] sm:$0xff] }
 0x69f   : > { %v7542_v5 = vadd.f32 %v3195_v46, %v3194_v16  ;;  %5221 = vmatpush1.bf16.msra.mxu0 %v6566_v12  ;;  %5253 = vmatpush1.bf16.msra.mxu1 %v6917_v21  ;;  %v8076_v46 = vld [vmem:[#allocation13_spill] sm:$0xff]  ;;  %v8078_v16 = vld [vmem:[#allocation14_spill] sm:$0xff] }
 0x6a0   : > { %5223 = vmatprep.subr.bf16.mxu0 %v6570_v14  ;;  %5255 = vmatprep.subr.bf16.mxu1 %v6920_v45 }
 0x6a1   : > { %5753 = vtanh.f32 %v7542_v5 }
 0x6a3   : > { %5225 = vmatpush1.bf16.msra.mxu0 %v6598_v36  ;;  %5257 = vmatpush1.bf16.msra.mxu1 %v6935_v7 }
 0x6a4   : > { %5227 = vmatprep.subr.bf16.mxu0 %v6602_v37  ;;  %5259 = vmatprep.subr.bf16.mxu1 %v6938_v3 }
 0x6a7   : > { %5229 = vmatpush1.bf16.msra.mxu0 %v6630_v61  ;;  %5261 = vmatpush1.bf16.msra.mxu1 %v6953_v27 }
 0x6a8   : > { %5231 = vmatprep.subr.bf16.mxu0 %v6634_v62  ;;  %5263 = vmatprep.subr.bf16.mxu1 %v6956_v58 }
 0x6ab   : > { %v5754_v34 = vpop.eup %5753  ;;  %5233 = vmatpush1.bf16.msra.mxu0 %v6658_v23  ;;  %5265 = vmatpush1.bf16.msra.mxu1 %v6965_v55 }
 0x6ac   : > { %v7559_v42 = vmul.f32 %v5754_v34, %v5752_v47  ;;  %5267 = vmatprep.subr.bf16.mxu0 %v6108_v41  ;;  %5299 = vmatprep.subr.bf16.mxu1 %v6643_v6  ;;  %v8058_v41 = vld [vmem:[#allocation4_spill] sm:$0xff]  ;;  %v8059_v6 = vld [vmem:[#allocation17_spill] sm:$0xff]  ;;  %v8079_v47 = vld [vmem:[#allocation27_spill] sm:$0xff] }
 0x6ad   : > { %v8080_v34 = vld [vmem:[#allocation15_spill] sm:$0xff] }
 0x6ae   : > { %3420 = vmatmul.mubr.f32.vlgmr.msra.gmra.mrb[2].mxu0 %v7559_v42  ;;  %3491 = vmatmul.mubr.f32.vlgmr.msra.gmra.mrb[34].mxu1 %v7559_v42 }
 0x6af   : > { %5269 = vmatpush1.bf16.msra.mxu0 %v6131_v50  ;;  %5301 = vmatpush1.bf16.msra.mxu1 %v6663_v24  ;;  %v8061_v50 = vld [vmem:[#allocation18_spill] sm:$0xff] }
 0x6b0   : > { %5271 = vmatprep.subr.bf16.mxu0 %v6147_v56  ;;  %5303 = vmatprep.subr.bf16.mxu1 %v6666_v25  ;;  %v8062_v24 = vld [vmem:[#allocation6_spill] sm:$0xff]  ;;  %v8063_v56 = vld [vmem:[#allocation19_spill] sm:$0xff] }
 0x6b1   : > { %3619 = vmatprep.mubr.f32.mxu0 %v7895_v10  ;;  %3690 = vmatprep.mubr.f32.mxu1 %v7895_v10  ;;  %v8064_v25 = vld [vmem:[#allocation7_spill] sm:$0xff] }
 0x6b3   : > { %5273 = vmatpush1.bf16.msra.mxu0 %v6167_v63  ;;  %5305 = vmatpush1.bf16.msra.mxu1 %v6685_v40  ;;  %v8067_v63 = vld [vmem:[#allocation21_spill] sm:$0xff] }
 0x6b4   : > { %5275 = vmatprep.subr.bf16.mxu0 %v8058_v41  ;;  %5307 = vmatprep.subr.bf16.mxu1 %v8059_v6  ;;  %v8068_v40 = vld [vmem:[#allocation9_spill] sm:$0xff]  ;;  %v8081_v41 = vld [vmem:[#allocation28_spill] sm:$0xff] }
 0x6b5   : > { %v8082_v6 = vld [vmem:[#allocation16_spill] sm:$0xff] }
 0x6b7   : > { %5277 = vmatpush1.bf16.msra.mxu0 %v8060_v57  ;;  %5309 = vmatpush1.bf16.msra.mxu1 %v8061_v50  ;;  %v8083_v57 = vld [vmem:[#allocation29_spill] sm:$0xff] }
 0x6b8   : > { %5279 = vmatprep.subr.bf16.mxu0 %v8062_v24  ;;  %5311 = vmatprep.subr.bf16.mxu1 %v8063_v56  ;;  %v8084_v56 = vld [vmem:[#allocation40_spill] sm:$0xff] }
 0x6bb   : > { %5281 = vmatpush1.bf16.msra.mxu0 %v8064_v25  ;;  %5313 = vmatpush1.bf16.msra.mxu1 %v8065_v4 }
 0x6bc   : > { %5283 = vmatprep.subr.bf16.mxu0 %v8066_v13  ;;  %5315 = vmatprep.subr.bf16.mxu1 %v8067_v63  ;;  %v8085_v63 = vld [vmem:[#allocation41_spill] sm:$0xff] }
 0x6bf   : > { %5285 = vmatpush1.bf16.msra.mxu0 %v8068_v40  ;;  %5317 = vmatpush1.bf16.msra.mxu1 %v8069_v31 }
 0x6c0   : > { %5287 = vmatprep.subr.bf16.mxu0 %v8070_v17  ;;  %5319 = vmatprep.subr.bf16.mxu1 %v8071_v26 }
 0x6c3   : > { %5289 = vmatpush1.bf16.msra.mxu0 %v8072_v54  ;;  %5321 = vmatpush1.bf16.msra.mxu1 %v8073_v0 }
 0x6c4   : > { %5291 = vmatprep.subr.bf16.mxu0 %v8074_v18  ;;  %5323 = vmatprep.subr.bf16.mxu1 %v8075_v28 }
 0x6c7   : > { %5293 = vmatpush1.bf16.msra.mxu0 %v8076_v46  ;;  %5325 = vmatpush1.bf16.msra.mxu1 %v8077_v39 }
 0x6c8   : > { %5295 = vmatprep.subr.bf16.mxu0 %v8078_v16  ;;  %5327 = vmatprep.subr.bf16.mxu1 %v8079_v47 }
 0x6cb   : > { %5297 = vmatpush1.bf16.msra.mxu0 %v8080_v34  ;;  %5329 = vmatpush1.bf16.msra.mxu1 %v8081_v41 }
 0x6cc   : > { %5331 = vmatprep.subr.bf16.mxu0 %v8082_v6  ;;  %5363 = vmatprep.subr.bf16.mxu1 %v8083_v57 }
 0x761   : > { %v3271_v50 = vpop.f32.mrb[28].mxu0  ;;  %v3342_v24 = vpop.f32.mrb[28].mxu1 }
 0x762   : > { %v3347_v25 = vadd.f32 %v3271_v50, %v8084_v56  ;;  %v3273_v4 = vpop.f32.mrb[29].mxu0  ;;  %v3344_v13 = vpop.f32.mrb[29].mxu1  ;;  %v5470_v0 = vadd.f32 %v3342_v24, %v7030_v60 }
 0x763   : > { %v3348_v40 = vadd.f32 %v3273_v4, %v8085_v63  ;;  %v5471_v26 = vadd.f32 %v3344_v13, %v7033_v19 }
 0x764   : > { %v4169_v31 = vmul.f32 -1.442695, %v3347_v25 }
 0x765   : > { %v4170_v17 = vmul.f32 -1.442695, %v3348_v40  ;;  %v4171_v54 = vmul.f32 -1.442695, %v5471_v26 }
 0x766   : > { %5755 = vpow2.f32 %v4169_v31 }
 0x767   : > { %5757 = vpow2.f32 %v4170_v17 }
 0x768   : > { %5759 = vpow2.f32 %v4171_v54 }
 0x769   : > { %5761 = vtanh.f32 %v5470_v0 }
 0x770   : > { %v5756_v18 = vpop.eup %5755 }
 0x771   : > { %v5758_v28 = vpop.eup %5757  ;;  %v3504_v46 = vadd.f32 1.0, %v5756_v18 }
 0x772   : > { %v3510_v39 = vadd.f32 1.0, %v5758_v28  ;;  %v5760_v16 = vpop.eup %5759 }
 0x773   : > { %5763 = vrcp.f32 %v3504_v46  ;;  %v5762_v47 = vpop.eup %5761  ;;  %v3517_v57 = vadd.f32 1.0, %v5760_v16 }
 0x774   : > { %5765 = vrcp.f32 %v3510_v39 }
 0x775   : > { %5767 = vrcp.f32 %v3517_v57  ;;  %v3941_v57 = vld [vmem:[%s7801_s5 + $0xc0] sm:$0xff] }
 0x77d   : > { %v5764_v34 = vpop.eup %5763 }
 0x77e   : > { %v5766_v41 = vpop.eup %5765  ;;  %v3521_v6 = vmul.f32 %v5764_v34, %v5762_v47  ;;  %v3923_v34 = vld [vmem:[%s7801_s5 + $0x30] sm:$0xff] }
 0x77f   : > { %v3520_v50 = vmul.f32 %v5766_v41, %v7512_v20  ;;  %v5768_v20 = vpop.eup %5767  ;;  %v3924_v41 = vld [vmem:[%s7801_s5 + $0x38] sm:$0xff] }
 0x781   : > { %v7604_v56 = vadd.f32 %v3521_v6, %v3520_v50  ;;  %v3421_v25 = vpop.f32.mrb[2].mxu0  ;;  %v3492_v24 = vpop.f32.mrb[34].mxu1  ;;  %v5408_v6 = vpack.c.bf16 %v3924_v41, %v3923_v34  ;;  %v3942_v50 = vld [vmem:[%s7801_s5 + $0xc8] sm:$0xff] }
 0x782   : > { %v5476_v4 = vadd.f32 %v3421_v25, %v7043_v43  ;;  %v3423_v13 = vpop.f32.mrb[3].mxu0  ;;  %v3494_v63 = vpop.f32.mrb[35].mxu1  ;;  %v5492_v18 = vadd.f32 %v3492_v24, %v7053_v32  ;;  %v3925_v25 = vld [vmem:[%s7801_s5 + $0x40] sm:$0xff]  ;;  %v5410_v24 = vpack.c.bf16 %v3942_v50, %v3941_v57 }
 0x783   : > { %v5477_v40 = vadd.f32 %v3423_v13, %v7040_v2  ;;  %5769 = vtanh.f32 %v7604_v56  ;;  %v5493_v26 = vadd.f32 %v3494_v63, %v7058_v35  ;;  %v3943_v13 = vld [vmem:[%s7801_s5 + $0xd0] sm:$0xff]  ;;  %v3944_v63 = vld [vmem:[%s7801_s5 + $0xd8] sm:$0xff] }
 0x784   : > { %v4172_v31 = vmul.f32 -1.442695, %v5476_v4  ;;  %v3926_v4 = vld [vmem:[%s7801_s5 + $0x48] sm:$0xff] }
 0x785   : > { %v4173_v17 = vmul.f32 -1.442695, %v5477_v40  ;;  %v4174_v0 = vmul.f32 -1.442695, %v5493_v26  ;;  %v5412_v40 = vpack.c.bf16 %v3926_v4, %v3925_v25  ;;  %v3928_v26 = vld [vmem:[%s7801_s5 + $0x58] sm:$0xff] }
 0x786   : > { %5771 = vpow2.f32 %v4172_v31  ;;  %v5414_v31 = vpack.c.bf16 %v3944_v63, %v3943_v13 }
 0x787   : > { %5773 = vpow2.f32 %v4173_v17  ;;  %v3927_v17 = vld [vmem:[%s7801_s5 + $0x50] sm:$0xff] }
 0x788   : > { %5775 = vpow2.f32 %v4174_v0  ;;  %v5416_v0 = vpack.c.bf16 %v3928_v26, %v3927_v17 }
 0x789   : > { %5777 = vtanh.f32 %v5492_v18 }
 0x78d   : > { %v5770_v54 = vpop.eup %5769 }
 0x78e   : > { %v7611_v28 = vmul.f32 %v5770_v54, %v5768_v20  ;;  %v3945_v20 = vld [vmem:[%s7801_s5 + $0xe0] sm:$0xff]  ;;  %v3946_v54 = vld [vmem:[%s7801_s5 + $0xe8] sm:$0xff] }
 0x78f   : > { %v5418_v18 = vpack.c.bf16 %v3946_v54, %v3945_v20 }
 0x790   : > { %v5772_v46 = vpop.eup %5771  ;;  %3620 = vmatmul.mubr.f32.vlgmr.msra.gmra.mrb[30].mxu0 %v7611_v28  ;;  %3691 = vmatmul.mubr.f32.vlgmr.msra.gmra.mrb[30].mxu1 %v7611_v28 }
 0x791   : > { %v5774_v39 = vpop.eup %5773  ;;  %v3528_v16 = vadd.f32 1.0, %v5772_v46  ;;  %5333 = vmatpush1.bf16.msra.mxu0 %v6436_v52  ;;  %5365 = vmatpush1.bf16.msra.mxu1 %v6841_v38  ;;  %v3929_v46 = vld [vmem:[%s7801_s5 + $0x60] sm:$0xff] }
 0x792   : > { %v3534_v47 = vadd.f32 1.0, %v5774_v39  ;;  %5335 = vmatprep.subr.bf16.mxu0 %v6440_v53  ;;  %5367 = vmatprep.subr.bf16.mxu1 %v6844_v44  ;;  %v5776_v52 = vpop.eup %5775  ;;  %v3930_v39 = vld [vmem:[%s7801_s5 + $0x68] sm:$0xff] }
 0x793   : > { %5779 = vrcp.f32 %v3528_v16  ;;  %3769 = vmatprep.mubr.f32.mxu0 %v7895_v10  ;;  %3840 = vmatprep.mubr.f32.mxu1 %v7895_v10  ;;  %v5778_v53 = vpop.eup %5777  ;;  %v3940_v10 = vld [vmem:[%s7801_s5 + $0xb8] sm:$0xff]  ;;  %v3947_v16 = vld [vmem:[%s7801_s5 + $0xf0] sm:$0xff] }
 0x794   : > { %5781 = vrcp.f32 %v3534_v47  ;;  %v3948_v47 = vld [vmem:[%s7801_s5 + $0xf8] sm:$0xff] }
 0x795   : > { %5337 = vmatpush1.bf16.msra.mxu0 %v6469_v8  ;;  %5369 = vmatpush1.bf16.msra.mxu1 %v6862_v1 }
 0x796   : > { %5339 = vmatprep.subr.bf16.mxu0 %v6474_v11  ;;  %5371 = vmatprep.subr.bf16.mxu1 %v6866_v51  ;;  %v3541_v11 = vadd.f32 1.0, %v5776_v52  ;;  %v5420_v52 = vpack.c.bf16 %v3930_v39, %v3929_v46 }
 0x798   : > { %5783 = vrcp.f32 %v3541_v11 }
 0x799   : > { %5341 = vmatpush1.bf16.msra.mxu0 %v6502_v29  ;;  %5373 = vmatpush1.bf16.msra.mxu1 %v6881_v22  ;;  %v3919_v22 = vld [vmem:[%s7801_s5 + $0x10] sm:$0xff] }
 0x79a   : > { %5343 = vmatprep.subr.bf16.mxu0 %v6506_v30  ;;  %5375 = vmatprep.subr.bf16.mxu1 %v6884_v33  ;;  %v3920_v33 = vld [vmem:[%s7801_s5 + $0x18] sm:$0xff] }
 0x79d   : > { %v5780_v38 = vpop.eup %5779  ;;  %5345 = vmatpush1.bf16.msra.mxu0 %v6534_v48  ;;  %5377 = vmatpush1.bf16.msra.mxu1 %v6899_v15  ;;  %v5400_v15 = vpack.c.bf16 %v3920_v33, %v3919_v22 }
 0x79e   : > { %v5782_v8 = vpop.eup %5781  ;;  %v3545_v44 = vmul.f32 %v5780_v38, %v5778_v53  ;;  %5347 = vmatprep.subr.bf16.mxu0 %v6538_v49  ;;  %5379 = vmatprep.subr.bf16.mxu1 %v6902_v9  ;;  %v3937_v9 = vld [vmem:[%s7801_s5 + $0xa0] sm:$0xff]  ;;  %v5422_v53 = vpack.c.bf16 %v3948_v47, %v3947_v16  ;;  %v3931_v38 = vld [vmem:[%s7801_s5 + $0x70] sm:$0xff] }
 0x79f   : > { %v3544_v29 = vmul.f32 %v5782_v8, %v7542_v5  ;;  %v3932_v8 = vld [vmem:[%s7801_s5 + $0x78] sm:$0xff] }
 0x7a1   : > { %v7634_v1 = vadd.f32 %v3545_v44, %v3544_v29  ;;  %5349 = vmatpush1.bf16.msra.mxu0 %v6566_v12  ;;  %5381 = vmatpush1.bf16.msra.mxu1 %v6917_v21  ;;  %v3933_v12 = vld [vmem:[%s7801_s5 + $0x80] sm:$0xff]  ;;  %v3938_v21 = vld [vmem:[%s7801_s5 + $0xa8] sm:$0xff]  ;;  %v5424_v44 = vpack.c.bf16 %v3932_v8, %v3931_v38 }
 0x7a2   : > { %5351 = vmatprep.subr.bf16.mxu0 %v6570_v14  ;;  %5383 = vmatprep.subr.bf16.mxu1 %v6920_v45  ;;  %v5784_v30 = vpop.eup %5783  ;;  %v3934_v14 = vld [vmem:[%s7801_s5 + $0x88] sm:$0xff]  ;;  %v5402_v45 = vpack.c.bf16 %v3938_v21, %v3937_v9  ;;  %v8090_v38 = vld [vmem:[#allocation32_spill] sm:$0xff] }
 0x7a3   : > { %5785 = vtanh.f32 %v7634_v1  ;;  %v8091_v8 = vld [vmem:[#allocation37_spill] sm:$0xff] }
 0x7a5   : > { %5353 = vmatpush1.bf16.msra.mxu0 %v6598_v36  ;;  %5385 = vmatpush1.bf16.msra.mxu1 %v6935_v7  ;;  %v5394_v36 = vpack.c.bf16 %v3934_v14, %v3933_v12  ;;  %v3921_v7 = vld [vmem:[%s7801_s5 + $0x20] sm:$0xff] }
 0x7a6   : > { %5355 = vmatprep.subr.bf16.mxu0 %v6602_v37  ;;  %5387 = vmatprep.subr.bf16.mxu1 %v6938_v3  ;;  %v3917_v37 = vld [vmem:[%s7801_s5] sm:$0xff]  ;;  %v3922_v3 = vld [vmem:[%s7801_s5 + $0x28] sm:$0xff] }
 0x7a9   : > { %5357 = vmatpush1.bf16.msra.mxu0 %v6630_v61  ;;  %5389 = vmatpush1.bf16.msra.mxu1 %v6953_v27  ;;  %v5404_v27 = vpack.c.bf16 %v3922_v3, %v3921_v7 }
 0x7aa   : > { %5359 = vmatprep.subr.bf16.mxu0 %v6634_v62  ;;  %5391 = vmatprep.subr.bf16.mxu1 %v6956_v58  ;;  %v3935_v62 = vld [vmem:[%s7801_s5 + $0x90] sm:$0xff] }
 0x7ab   : > { %v3939_v58 = vld [vmem:[%s7801_s5 + $0xb0] sm:$0xff] }
 0x7ac   : > { %v5406_v5 = vpack.c.bf16 %v3940_v10, %v3939_v58 }
 0x7ad   : > { %v5786_v48 = vpop.eup %5785  ;;  %5361 = vmatpush1.bf16.msra.mxu0 %v6658_v23  ;;  %5393 = vmatpush1.bf16.msra.mxu1 %v6965_v55  ;;  %v3918_v55 = vld [vmem:[%s7801_s5 + $0x8] sm:$0xff]  ;;  %v3936_v23 = vld [vmem:[%s7801_s5 + $0x98] sm:$0xff] }
 0x7ae   : > { %v7651_v49 = vmul.f32 %v5786_v48, %v5784_v30  ;;  %v5396_v61 = vpack.c.bf16 %v3918_v55, %v3917_v37  ;;  %5395 = vmatprep.subr.bf16.mxu0 %v5394_v36  ;;  %v5398_v51 = vpack.c.bf16 %v3936_v23, %v3935_v62  ;;  %v8086_v30 = vld [vmem:[#allocation42_spill] sm:$0xff]  ;;  %v8087_v36 = vld [vmem:[#allocation43_spill] sm:$0xff] }
 0x7b0   : > { %3770 = vmatmul.mubr.f32.vlgmr.msra.gmra.mrb[0].mxu0 %v7651_v49  ;;  %3841 = vmatmul.mubr.f32.vlgmr.msra.gmra.mrb[32].mxu1 %v7651_v49 }
 0x7b1   : > { %5397 = vmatpush3.bf16.msra.mxu0 %v5396_v61 }
 0x7b2   : > { %5399 = vmatprep.subr.bf16.mxu0 %v5398_v51 }
 0x7b5   : > { %5401 = vmatpush3.bf16.msra.mxu0 %v5400_v15 }
 0x7b6   : > { %5403 = vmatprep.subr.bf16.mxu0 %v5402_v45 }
 0x7b9   : > { %5405 = vmatpush3.bf16.msra.mxu0 %v5404_v27 }
 0x7ba   : > { %5407 = vmatprep.subr.bf16.mxu0 %v5406_v5 }
 0x7bd   : > { %5409 = vmatpush3.bf16.msra.mxu0 %v5408_v6 }
 0x7be   : > { %5411 = vmatprep.subr.bf16.mxu0 %v5410_v24 }
 0x7c1   : > { %5413 = vmatpush3.bf16.msra.mxu0 %v5412_v40 }
 0x7c2   : > { %5415 = vmatprep.subr.bf16.mxu0 %v5414_v31 }
 0x7c5   : > { %5417 = vmatpush3.bf16.msra.mxu0 %v5416_v0 }
 0x7c6   : > { %5419 = vmatprep.subr.bf16.mxu0 %v5418_v18 }
 0x7c9   : > { %5421 = vmatpush3.bf16.msra.mxu0 %v5420_v52  ;;  %v8088_v52 = vld [vmem:[#allocation44_spill] sm:$0xff] }
 0x7ca   : > { %5423 = vmatprep.subr.bf16.mxu0 %v5422_v53  ;;  %v8089_v53 = vld [vmem:[#allocation30_spill] sm:$0xff] }
 0x7cd   : > { %5425 = vmatpush3.bf16.msra.mxu0 %v5424_v44  ;;  %v8093_v44 = vld [vmem:[#allocation35_spill] sm:$0xff] }
 0x863   : > { %v3621_v11 = vpop.f32.mrb[30].mxu0  ;;  %v3692_v29 = vpop.f32.mrb[30].mxu1 }
 0x864   : > { %v3697_v48 = vadd.f32 %v3621_v11, %v8086_v30  ;;  %v3623_v12 = vpop.f32.mrb[31].mxu0  ;;  %v3694_v14 = vpop.f32.mrb[31].mxu1  ;;  %v5472_v51 = vadd.f32 %v3692_v29, %v7030_v60  ;;  %v8094_v11 = vld [vmem:[#allocation36_spill] sm:$0xff]  ;;  %v8095_v29 = vld [vmem:[#allocation33_spill] sm:$0xff] }
 0x865   : > { %v3698_v37 = vadd.f32 %v3623_v12, %v8087_v36  ;;  %v5473_v62 = vadd.f32 %v3694_v14, %v7033_v19 }
 0x866   : > { %v4175_v55 = vmul.f32 -1.442695, %v3697_v48  ;;  %v4181_v48 = vld [vmem:[%s7802_s6] ss:$0 sm:$0xff] }
 0x867   : > { %v4176_v61 = vmul.f32 -1.442695, %v3698_v37  ;;  %v4177_v23 = vmul.f32 -1.442695, %v5473_v62 }
 0x868   : > { %5787 = vpow2.f32 %v4175_v55 }
 0x869   : > { %5789 = vpow2.f32 %v4176_v61 }
 0x86a   : > { %5791 = vpow2.f32 %v4177_v23 }
 0x86b   : > { %5793 = vtanh.f32 %v5472_v51 }
 0x872   : > { %v5788_v22 = vpop.eup %5787 }
 0x873   : > { %v5790_v33 = vpop.eup %5789  ;;  %v3854_v15 = vadd.f32 1.0, %v5788_v22 }
 0x874   : > { %v3860_v9 = vadd.f32 1.0, %v5790_v33  ;;  %v5792_v21 = vpop.eup %5791 }
 0x875   : > { %5795 = vrcp.f32 %v3854_v15  ;;  %v5794_v45 = vpop.eup %5793  ;;  %v3867_v58 = vadd.f32 1.0, %v5792_v21 }
 0x876   : > { %5797 = vrcp.f32 %v3860_v9 }
 0x877   : > { %5799 = vrcp.f32 %v3867_v58 }
 0x87f   : > { %v5796_v7 = vpop.eup %5795 }
 0x880   : > { %v5798_v3 = vpop.eup %5797  ;;  %v3871_v27 = vmul.f32 %v5796_v7, %v5794_v45 }
 0x881   : > { %v3870_v10 = vmul.f32 %v5798_v3, %v7604_v56  ;;  %v5800_v4 = vpop.eup %5799 }
 0x883   : > { %v3771_v19 = vpop.f32.mrb[0].mxu0  ;;  %v3842_v5 = vpop.f32.mrb[32].mxu1  ;;  %v3872_v34 = vadd.f32 %v3871_v27, %v3870_v10 }
 0x884   : > { %v5474_v60 = vadd.f32 %v3771_v19, %v7043_v43  ;;  %v3773_v41 = vpop.f32.mrb[1].mxu0  ;;  %v3844_v6 = vpop.f32.mrb[33].mxu1  ;;  %v5490_v63 = vadd.f32 %v3842_v5, %v7053_v32 }
 0x885   : > { %v5475_v57 = vadd.f32 %v3773_v41, %v7040_v2  ;;  %5801 = vtanh.f32 %v3872_v34  ;;  %v5491_v24 = vadd.f32 %v3844_v6, %v7058_v35 }
 0x886   : > { %v4178_v50 = vmul.f32 -1.442695, %v5474_v60 }
 0x887   : > { %v4179_v25 = vmul.f32 -1.442695, %v5475_v57  ;;  %v4180_v56 = vmul.f32 -1.442695, %v5491_v24 }
 0x888   : > { %5803 = vpow2.f32 %v4178_v50 }
 0x889   : > { %5805 = vpow2.f32 %v4179_v25 }
 0x88a   : > { %5807 = vpow2.f32 %v4180_v56 }
 0x88b   : > { %5809 = vtanh.f32 %v5490_v63 }
 0x88f   : > { %v5802_v13 = vpop.eup %5801 }
 0x890   : > { %v3874_v40 = vmul.f32 %v5802_v13, %v5800_v4 }
 0x892   : > { %v5804_v31 = vpop.eup %5803 }
 0x893   : > { %v5806_v17 = vpop.eup %5805  ;;  %v3878_v43 = vadd.f32 1.0, %v5804_v31 }
 0x894   : > { %v3884_v26 = vadd.f32 1.0, %v5806_v17  ;;  %v5808_v2 = vpop.eup %5807 }
 0x895   : > { %5811 = vrcp.f32 %v3878_v43  ;;  %v5810_v20 = vpop.eup %5809  ;;  %v3891_v35 = vadd.f32 1.0, %v5808_v2 }
 0x896   : > { %5813 = vrcp.f32 %v3884_v26 }
 0x897   : > { %5815 = vrcp.f32 %v3891_v35 }
 0x89f   : > { %v5812_v54 = vpop.eup %5811 }
 0x8a0   : > { %v5814_v0 = vpop.eup %5813  ;;  %v3895_v18 = vmul.f32 %v5812_v54, %v5810_v20 }
 0x8a1   : > { %v3894_v46 = vmul.f32 %v5814_v0, %v7634_v1  ;;  %v5816_v32 = vpop.eup %5815  ;;  %v8092_v1 = vld [vmem:[#allocation34_spill] sm:$0xff] }
 0x8a3   : > { %v3896_v39 = vadd.f32 %v3895_v18, %v3894_v46 }
 0x8a5   : > { %5817 = vtanh.f32 %v3896_v39 }
 0x8af   : > { %v5818_v16 = vpop.eup %5817 }
 0x8b0   : > { %v3898_v47 = vmul.f32 %v5818_v16, %v5816_v32 }
 0x8b2   : > { %4020 = vmatprep.mubr.f32.mxu0 %v3898_v47 }
 0x8b3   : > { %4021 = vmatmul.mubr.f32.vlgmr.msra.gmra.mrb[32].mxu0 %v8088_v52 }
 0x8b4   : > { %4025 = vmatprep.mubr.f32.mxu0 %v7651_v49  ;;  %v8096_v49 = vld [vmem:[#allocation31_spill] sm:$0xff] }
 0x8b7   : > { %4026 = vmatmul.mubr.f32.gmra.mrb[34].mxu0 %v8089_v53 }
 0x8b8   : > { %4030 = vmatprep.mubr.f32.mxu0 %v7559_v42  ;;  %v8097_v42 = vld [vmem:[#allocation45_spill] sm:$0xff] }
 0x8bb   : > { %4031 = vmatmul.mubr.f32.gmra.mrb[36].mxu0 %v8090_v38 }
 0x8bc   : > { %4035 = vmatprep.mubr.f32.mxu0 %v8091_v8 }
 0x8bf   : > { %4036 = vmatmul.mubr.f32.gmra.mrb[38].mxu0 %v8092_v1 }
 0x8c0   : > { %4040 = vmatprep.mubr.f32.mxu0 %v8093_v44 }
 0x8c3   : > { %4041 = vmatmul.mubr.f32.gmra.mrb[40].mxu0 %v8094_v11 }
 0x8c4   : > { %4045 = vmatprep.mubr.f32.mxu0 %v8095_v29 }
 0x8c7   : > { %4046 = vmatmul.mubr.f32.gmra.mrb[42].mxu0 %v7519_v59 }
 0x8c8   : > { %4050 = vmatprep.mubr.f32.mxu0 %v8096_v49 }
 0x8cb   : > { %4051 = vmatmul.mubr.f32.gmra.mrb[44].mxu0 %v7611_v28 }
 0x8cc   : > { %4055 = vmatprep.mubr.f32.mxu0 %v8097_v42 }
 0x8cf   : > { %4056 = vmatmul.mubr.f32.gmra.mrb[46].mxu0 %v3874_v40 }
 0x986   : > { %v4218_v30 = vpop.f32.mrb[32].mxu0 }
 0x987   : > { %v4219_v12 = vpop.f32.mrb[33].mxu0 }
 0x988   : > { %v4220_v14 = vadd.f32 %v4219_v12, %v4218_v30 }
 0x98a   : > { %v4023_v59 = vadd.f32 %v4220_v14, %v4181_v48  ;;  %v4221_v28 = vpop.f32.mrb[34].mxu0 }
 0x98b   : > { %v4222_v36 = vpop.f32.mrb[35].mxu0 }
 0x98c   : > { %4061 = vst [vmem:[%s7783_s10] sm:$0xff] %v4023_v59  ;;  %v4223_v37 = vadd.f32 %v4222_v36, %v4221_v28 }
 0x98e   : > { %v4028_v55 = vadd.f32 %v4223_v37, %v4181_v48  ;;  %v4224_v61 = vpop.f32.mrb[36].mxu0 }
 0x98f   : > { %v4225_v62 = vpop.f32.mrb[37].mxu0 }
 0x990   : > { %4062 = vst [vmem:[%s7783_s10 + $0x8] sm:$0xff] %v4028_v55  ;;  %v4226_v23 = vadd.f32 %v4225_v62, %v4224_v61 }
 0x992   : > { %v4033_v51 = vadd.f32 %v4226_v23, %v4181_v48  ;;  %v4227_v22 = vpop.f32.mrb[38].mxu0 }
 0x993   : > { %v4228_v33 = vpop.f32.mrb[39].mxu0 }
 0x994   : > { %4063 = vst [vmem:[%s7783_s10 + $0x10] sm:$0xff] %v4033_v51  ;;  %v4229_v15 = vadd.f32 %v4228_v33, %v4227_v22 }
 0x996   : > { %v4038_v9 = vadd.f32 %v4229_v15, %v4181_v48  ;;  %v4230_v21 = vpop.f32.mrb[40].mxu0 }
 0x997   : > { %v4231_v45 = vpop.f32.mrb[41].mxu0 }
 0x998   : > { %4064 = vst [vmem:[%s7783_s10 + $0x18] sm:$0xff] %v4038_v9  ;;  %v4232_v7 = vadd.f32 %v4231_v45, %v4230_v21 }
 0x99a   : > { %v4043_v3 = vadd.f32 %v4232_v7, %v4181_v48  ;;  %v4233_v27 = vpop.f32.mrb[42].mxu0 }
 0x99b   : > { %v4234_v58 = vpop.f32.mrb[43].mxu0 }
 0x99c   : > { %4065 = vst [vmem:[%s7783_s10 + $0x20] sm:$0xff] %v4043_v3  ;;  %v4235_v10 = vadd.f32 %v4234_v58, %v4233_v27 }
 0x99e   : > { %v4048_v19 = vadd.f32 %v4235_v10, %v4181_v48  ;;  %v4236_v5 = vpop.f32.mrb[44].mxu0 }
 0x99f   : > { %v4237_v34 = vpop.f32.mrb[45].mxu0 }
 0x9a0   : > { %4066 = vst [vmem:[%s7783_s10 + $0x28] sm:$0xff] %v4048_v19  ;;  %v4238_v60 = vadd.f32 %v4237_v34, %v4236_v5 }
 0x9a2   : > { %v4053_v41 = vadd.f32 %v4238_v60, %v4181_v48  ;;  %v4239_v6 = vpop.f32.mrb[46].mxu0 }
 0x9a3   : > { %v4240_v57 = vpop.f32.mrb[47].mxu0 }
 0x9a4   : > { %4067 = vst [vmem:[%s7783_s10 + $0x30] sm:$0xff] %v4053_v41  ;;  %v4241_v50 = vadd.f32 %v4240_v57, %v4239_v6 }
 0x9a6   : > { %v4058_v25 = vadd.f32 %v4241_v50, %v4181_v48 }
 0x9a8   : > { %4068 = vst [vmem:[%s7783_s10 + $0x38] sm:$0xff] %v4058_v25 }
 0x9a9 PF: > { %s17_s24 = sadd.s32 1, %s5825_s24  }
 0x9aa   : > { %p14_p4 = scmp.ge.s32.totalorder %s17_s24, 4  }
 0x9ac   :  { %16 = sbr.rel (!%p14_p4) target bundleno = 1 (0x1), region = 78 }

</bundles_post_ra>
